<compile_context>
chip_gen: v5e
topology: v5e:2x2
jax: 0.10.0
libtpu: 0.0.40
codegen_flags: <defaults>
</compile_context>

<pallas_src>
import jax
import jax.numpy as jnp
from jax import lax
from jax.experimental import pallas as pl
from jax.experimental.pallas import tpu as pltpu


# ------------------------------ fused kernel --------------------------------


def _bottleneck_kernel(x_ref, w1_ref, s1_ref, b1_ref, w2_ref, s2_ref, b2_ref,
                       w3_ref, s3_ref, b3_ref, o_ref, t1p_ref):
    """Fused conv1x1+bn+relu -> conv3x3+bn+relu -> conv1x1+bn+add+relu.

    x_ref  : (1, H, W, Cin)   bf16  full image for current batch element
    w1_ref : (Cin, P)         bf16
    w2_ref : (9P, P)          bf16  K ordered (ky, kx, ci)
    w3_ref : (P, Cout)        bf16
    s*/b*  : (1, C)           f32   folded BN scale / bias
    o_ref  : (1, TH, W, Cout) bf16  output tile
    t1p_ref: (TH+2, W+2, P)   bf16  VMEM scratch (conv2 input, zero-padded halo)
    """
    H, W, Cin = x_ref.shape[1], x_ref.shape[2], x_ref.shape[3]
    TH = o_ref.shape[1]
    P = w1_ref.shape[1]
    Cout = w3_ref.shape[1]

    h = pl.program_id(1)
    row0 = h * TH

    # Hoisted parameter loads (no per-use re-broadcast).
    w1 = w1_ref[...]
    s1 = s1_ref[...]
    b1 = b1_ref[...]
    w2 = w2_ref[...]
    s2 = s2_ref[...]
    b2 = b2_ref[...]
    w3 = w3_ref[...]
    s3 = s3_ref[...]
    b3 = b3_ref[...]

    def conv1_bn_relu(xr):  # xr: (R, W, Cin) bf16 -> (R, W, P) bf16
        R = xr.shape[0]
        y = jnp.dot(xr.reshape(R * W, Cin), w1, preferred_element_type=jnp.float32)
        y = jnp.maximum(y * s1 + b1, 0.0)
        return y.astype(jnp.bfloat16).reshape(R, W, P)

    # ---- stage 1: conv1 + bn1 + relu into zero-padded VMEM scratch --------
    zero_col = jnp.zeros((TH + 2, 1, P), jnp.bfloat16)
    t1p_ref[:, 0:1, :] = zero_col                 # left zero-pad column
    t1p_ref[:, W + 1:W + 2, :] = zero_col         # right zero-pad column

    # Main dot over the tile interior: M = TH*W.
    t1p_ref[1:TH + 1, 1:W + 1, :] = conv1_bn_relu(x_ref[0, pl.ds(row0, TH)])

    if TH == H:
        # Single tile covers the whole image: halo rows are just the zero pad.
        zero_row = jnp.zeros((1, W, P), jnp.bfloat16)
        t1p_ref[0:1, 1:W + 1, :] = zero_row
        t1p_ref[TH + 1:TH + 2, 1:W + 1, :] = zero_row
    else:
        # Merged halo: one 2-row dot.  Boundary rows read a clamped (valid)
        # source row and are overwritten with zeros via a select.
        top_src = jnp.maximum(row0 - 1, 0)
        bot_src = jnp.minimum(row0 + TH, H - 1)
        halo_x = jnp.concatenate(
            [x_ref[0, pl.ds(top_src, 1)], x_ref[0, pl.ds(bot_src, 1)]], axis=0)
        halo = conv1_bn_relu(halo_x)                        # (2, W, P)
        zrow = jnp.zeros((1, W, P), jnp.bfloat16)
        t1p_ref[0:1, 1:W + 1, :] = jnp.where(row0 > 0, halo[0:1], zrow)
        t1p_ref[TH + 1:TH + 2, 1:W + 1, :] = jnp.where(row0 + TH < H,
                                                       halo[1:2], zrow)

    # ---- stage 2: 3x3 conv + bn2 + relu as ONE dot with K = 9P ------------
    # kx shifts of the padded scratch taken once per tile (2 unaligned sublane
    # slices total); ky shifts are cheap leading-dim slices of the values.
    # TODO(synk): on v5e (128-deep MXU) a 3-way K=3P split may be preferable.
    kx_shift = [t1p_ref[:, kx:kx + W, :] for kx in range(3)]   # (TH+2, W, P) each
    taps = [kx_shift[kx][ky:ky + TH] for ky in range(3) for kx in range(3)]
    a2 = jnp.concatenate(taps, axis=-1).reshape(TH * W, 9 * P)
    y2 = jnp.dot(a2, w2, preferred_element_type=jnp.float32)
    t2 = jnp.maximum(y2 * s2 + b2, 0.0).astype(jnp.bfloat16)

    # ---- stage 3: conv3 + bn3 + residual add + relu ------------------------
    y3 = jnp.dot(t2, w3, preferred_element_type=jnp.float32)
    y3 = y3 * s3 + b3
    # Residual is re-read here (fresh VMEM load) instead of staying live from
    # stage 1; add happens in f32 from the bf16 read.
    res = x_ref[0, pl.ds(row0, TH)].astype(jnp.float32).reshape(TH * W, Cout)
    out = jnp.maximum(y3 + res, 0.0)
    o_ref[0] = out.reshape(TH, W, Cout).astype(o_ref.dtype)


# ------------------------------ wrapper --------------------------------------


def bottleneck_forward(x_nhwc, p, *, tile_h=None):
    """Full Bottleneck forward.  x_nhwc: (N, H, W, inplanes) bfloat16, NHWC.

    Activations are carried in bf16 in HBM (input and output) to halve HBM
    traffic; all accumulation / BN / residual math is f32 inside the kernel.
    (The PyTorch module is NCHW; keeping activations channels-last avoids a
    full HBM transpose pass on each side of the block.)
    """
    N, H, W, Cin = x_nhwc.shape
    Cin_w, P = p["w1"].shape
    Cout = p["w3"].shape[1]
    assert Cin == Cin_w
    # TODO(synk): downsample path not implemented -> residual requires matching channels.
    assert Cout == Cin, "downsample=None requires inplanes == planes * expansion"

    if tile_h is None:
        tile_h = H if H <= 32 else 16        # full-image tile when it fits
    tile_h = min(tile_h, H)
    assert H % tile_h == 0, "H must be divisible by tile_h"

    x_bf = x_nhwc.astype(jnp.bfloat16)
    w2k = p["w2"].reshape(9 * P, P)          # K ordered (ky, kx, ci)

    return pl.pallas_call(
        _bottleneck_kernel,
        out_shape=jax.ShapeDtypeStruct((N, H, W, Cout), jnp.bfloat16),
        grid=(N, H // tile_h),
        in_specs=[
            pl.BlockSpec((1, H, W, Cin), lambda n, h: (n, 0, 0, 0)),
            pl.BlockSpec((Cin, P), lambda n, h: (0, 0)),
            pl.BlockSpec((1, P), lambda n, h: (0, 0)),
            pl.BlockSpec((1, P), lambda n, h: (0, 0)),
            pl.BlockSpec((9 * P, P), lambda n, h: (0, 0)),
            pl.BlockSpec((1, P), lambda n, h: (0, 0)),
            pl.BlockSpec((1, P), lambda n, h: (0, 0)),
            pl.BlockSpec((P, Cout), lambda n, h: (0, 0)),
            pl.BlockSpec((1, Cout), lambda n, h: (0, 0)),
            pl.BlockSpec((1, Cout), lambda n, h: (0, 0)),
        ],
        out_specs=pl.BlockSpec((1, tile_h, W, Cout), lambda n, h: (n, h, 0, 0)),
        scratch_shapes=[pltpu.VMEM((tile_h + 2, W + 2, P), jnp.bfloat16)],
        compiler_params=pltpu.CompilerParams(
            dimension_semantics=("parallel", "arbitrary"),
            vmem_limit_bytes=32 * 1024 * 1024),
    )(x_bf, p["w1"], p["s1"], p["b1"], w2k, p["s2"], p["b2"],
      p["w3"], p["s3"], p["b3"])


# ------------------------- params & reference --------------------------------


def _fold_bn(gamma, beta, mean, var, eps=1e-5):
    scale = gamma / jnp.sqrt(var + eps)
    bias = beta - mean * scale
    return (scale.reshape(1, -1).astype(jnp.float32),
            bias.reshape(1, -1).astype(jnp.float32))


def init_params(key, inplanes, planes):
    exp4 = planes * 4
    ks = jax.random.split(key, 15)

    def bn(k0, k1, k2, k3, c):
        gamma = jax.random.uniform(k0, (c,), jnp.float32, 0.5, 1.5)
        beta = 0.1 * jax.random.normal(k1, (c,), jnp.float32)
        mean = 0.1 * jax.random.normal(k2, (c,), jnp.float32)
        var = jax.random.uniform(k3, (c,), jnp.float32, 0.5, 1.5)
        return _fold_bn(gamma, beta, mean, var)

    # Weights stored in bf16 (MXU operand dtype on v6e/v7x).
    w1 = (0.1 * jax.random.normal(ks[0], (inplanes, planes), jnp.float32)
          ).astype(jnp.bfloat16)                                    # (Cin, P)
    w2 = (0.1 * jax.random.normal(ks[1], (3, 3, planes, planes), jnp.float32)
          ).astype(jnp.bfloat16)                                    # (kh, kw, Ci, Co)
    w3 = (0.1 * jax.random.normal(ks[2], (planes, exp4), jnp.float32)
          ).astype(jnp.bfloat16)                                    # (P, Cout)
    s1, b1 = bn(ks[3], ks[4], ks[5], ks[6], planes)
    s2, b2 = bn(ks[7], ks[8], ks[9], ks[10], planes)
    s3, b3 = bn(ks[11], ks[12], ks[13], ks[14], exp4)
    return dict(w1=w1, w2=w2, w3=w3, s1=s1, b1=b1, s2=s2, b2=b2, s3=s3, b3=b3)


def reference_forward(x_nhwc_f32, p):
    """Pure-JAX (XLA) reference in NHWC, f32 compute, same folded-BN math."""
    def conv(x, w_hwio, pad):
        return lax.conv_general_dilated(
            x, w_hwio, (1, 1), [(pad, pad), (pad, pad)],
            dimension_numbers=("NHWC", "HWIO", "NHWC"))

    def bn(x, s, b):
        return x * s.reshape(1, 1, 1, -1) + b.reshape(1, 1, 1, -1)

    w1 = p["w1"].astype(jnp.float32)[None, None]      # (1,1,Cin,P)
    w2 = p["w2"].astype(jnp.float32)                  # (3,3,P,P)
    w3 = p["w3"].astype(jnp.float32)[None, None]      # (1,1,P,Cout)

    out = jax.nn.relu(bn(conv(x_nhwc_f32, w1, 0), p["s1"], p["b1"]))
    out = jax.nn.relu(bn(conv(out, w2, 1), p["s2"], p["b2"]))
    out = bn(conv(out, w3, 0), p["s3"], p["b3"]) + x_nhwc_f32
    return jax.nn.relu(out)


# ------------------------------ main ----------------------------------------

if __name__ == "__main__":
    # Lane-dense HBM channel counts: inplanes = planes * 4 = 128 (128-lane axis).
    inplanes, planes = 128, 32
    N, H, W = 2, 16, 16

    key = jax.random.PRNGKey(0)
    kx, kp = jax.random.split(key)
    x_f32 = jax.random.normal(kx, (N, H, W, inplanes), jnp.float32)   # NHWC
    params = init_params(kp, inplanes, planes)

    # Activations live in bf16 in HBM; reference sees the same quantized input.
    x_bf16 = x_f32.astype(jnp.bfloat16)
    ref = jax.block_until_ready(
        reference_forward(x_bf16.astype(jnp.float32), params))

    # Default path: full-image tile, no halo dots.
    out = jax.block_until_ready(bottleneck_forward(x_bf16, params))
    assert out.shape == (N, H, W, planes * 4)
    assert out.dtype == jnp.bfloat16
    err = float(jnp.max(jnp.abs(out.astype(jnp.float32) - ref)))
    # bf16 activations + bf16 MXU operands vs f32 reference -> relaxed tolerance.
    assert jnp.allclose(out.astype(jnp.float32), ref, rtol=5e-2, atol=5e-2), err

    # Also exercise the generic tiled path (tile_h < H, merged halo dot).
    out2 = jax.block_until_ready(bottleneck_forward(x_bf16, params, tile_h=8))
    err2 = float(jnp.max(jnp.abs(out2.astype(jnp.float32) - ref)))
    assert jnp.allclose(out2.astype(jnp.float32), ref, rtol=5e-2, atol=5e-2), err2

    print("KERNEL_OK")
</pallas_src>

<mosaic_0001>
module attributes {stable_mosaic.version = 11 : i64} {
  func.func @_bottleneck_kernel(%arg0: i32, %arg1: i32, %arg2: memref<1x16x16x128xbf16, #tpu.memory_space<vmem>>, %arg3: memref<128x32xbf16, #tpu.memory_space<vmem>>, %arg4: memref<1x32xf32, #tpu.memory_space<vmem>>, %arg5: memref<1x32xf32, #tpu.memory_space<vmem>>, %arg6: memref<288x32xbf16, #tpu.memory_space<vmem>>, %arg7: memref<1x32xf32, #tpu.memory_space<vmem>>, %arg8: memref<1x32xf32, #tpu.memory_space<vmem>>, %arg9: memref<32x128xbf16, #tpu.memory_space<vmem>>, %arg10: memref<1x128xf32, #tpu.memory_space<vmem>>, %arg11: memref<1x128xf32, #tpu.memory_space<vmem>>, %arg12: memref<1x16x16x128xbf16, #tpu.memory_space<vmem>>, %arg13: memref<18x18x32xbf16, #tpu.memory_space<vmem>>) attributes {dimension_semantics = [#tpu.dimension_semantics<parallel>, #tpu.dimension_semantics<arbitrary>], iteration_bounds = array<i64: 2, 1>, scalar_prefetch = 0 : i64, scratch_operands = 1 : i64, tpu.core_type = #tpu.core_type<tc>, window_params = [{transform_indices = @transform_0, window_bounds = array<i64: 1, 16, 16, 128>}, {pipeline_mode = #tpu.pipeline_mode<synchronous>, transform_indices = @transform_1, window_bounds = array<i64: 128, 32>}, {pipeline_mode = #tpu.pipeline_mode<synchronous>, transform_indices = @transform_2, window_bounds = array<i64: 1, 32>}, {pipeline_mode = #tpu.pipeline_mode<synchronous>, transform_indices = @transform_3, window_bounds = array<i64: 1, 32>}, {pipeline_mode = #tpu.pipeline_mode<synchronous>, transform_indices = @transform_4, window_bounds = array<i64: 288, 32>}, {pipeline_mode = #tpu.pipeline_mode<synchronous>, transform_indices = @transform_5, window_bounds = array<i64: 1, 32>}, {pipeline_mode = #tpu.pipeline_mode<synchronous>, transform_indices = @transform_6, window_bounds = array<i64: 1, 32>}, {pipeline_mode = #tpu.pipeline_mode<synchronous>, transform_indices = @transform_7, window_bounds = array<i64: 32, 128>}, {pipeline_mode = #tpu.pipeline_mode<synchronous>, transform_indices = @transform_8, window_bounds = array<i64: 1, 128>}, {pipeline_mode = #tpu.pipeline_mode<synchronous>, transform_indices = @transform_9, window_bounds = array<i64: 1, 128>}, {transform_indices = @transform_10, window_bounds = array<i64: 1, 16, 16, 128>}]} {
    %c16_i32 = arith.constant 16 : i32
    %0 = arith.muli %arg1, %c16_i32 : i32
    %c0 = arith.constant 0 : index
    %c0_0 = arith.constant 0 : index
    %1 = vector.load %arg3[%c0, %c0_0] : memref<128x32xbf16, #tpu.memory_space<vmem>>, vector<128x32xbf16>
    %c0_1 = arith.constant 0 : index
    %c0_2 = arith.constant 0 : index
    %2 = vector.load %arg4[%c0_1, %c0_2] : memref<1x32xf32, #tpu.memory_space<vmem>>, vector<1x32xf32>
    %c0_3 = arith.constant 0 : index
    %c0_4 = arith.constant 0 : index
    %3 = vector.load %arg5[%c0_3, %c0_4] : memref<1x32xf32, #tpu.memory_space<vmem>>, vector<1x32xf32>
    %c0_5 = arith.constant 0 : index
    %c0_6 = arith.constant 0 : index
    %4 = vector.load %arg6[%c0_5, %c0_6] : memref<288x32xbf16, #tpu.memory_space<vmem>>, vector<288x32xbf16>
    %c0_7 = arith.constant 0 : index
    %c0_8 = arith.constant 0 : index
    %5 = vector.load %arg7[%c0_7, %c0_8] : memref<1x32xf32, #tpu.memory_space<vmem>>, vector<1x32xf32>
    %c0_9 = arith.constant 0 : index
    %c0_10 = arith.constant 0 : index
    %6 = vector.load %arg8[%c0_9, %c0_10] : memref<1x32xf32, #tpu.memory_space<vmem>>, vector<1x32xf32>
    %c0_11 = arith.constant 0 : index
    %c0_12 = arith.constant 0 : index
    %7 = vector.load %arg9[%c0_11, %c0_12] : memref<32x128xbf16, #tpu.memory_space<vmem>>, vector<32x128xbf16>
    %c0_13 = arith.constant 0 : index
    %c0_14 = arith.constant 0 : index
    %8 = vector.load %arg10[%c0_13, %c0_14] : memref<1x128xf32, #tpu.memory_space<vmem>>, vector<1x128xf32>
    %c0_15 = arith.constant 0 : index
    %c0_16 = arith.constant 0 : index
    %9 = vector.load %arg11[%c0_15, %c0_16] : memref<1x128xf32, #tpu.memory_space<vmem>>, vector<1x128xf32>
    %cst = arith.constant 0.000000e+00 : bf16
    %10 = vector.broadcast %cst : bf16 to vector<18x1x32xbf16>
    %c0_17 = arith.constant 0 : index
    %c0_18 = arith.constant 0 : index
    %c0_19 = arith.constant 0 : index
    %11 = vector.load %arg13[%c0_17, %c0_18, %c0_19] : memref<18x18x32xbf16, #tpu.memory_space<vmem>>, vector<18x1x32xbf16>
    tpu.vector_store %arg13[%c0_17, %c0_18, %c0_19], %10 {strides = array<i32>} : memref<18x18x32xbf16, #tpu.memory_space<vmem>>, vector<18x1x32xbf16>,
    %c0_20 = arith.constant 0 : index
    %c17 = arith.constant 17 : index
    %c0_21 = arith.constant 0 : index
    %12 = vector.load %arg13[%c0_20, %c17, %c0_21] : memref<18x18x32xbf16, #tpu.memory_space<vmem>>, vector<18x1x32xbf16>
    tpu.vector_store %arg13[%c0_20, %c17, %c0_21], %10 {strides = array<i32>} : memref<18x18x32xbf16, #tpu.memory_space<vmem>>, vector<18x1x32xbf16>,
    %c0_22 = arith.constant 0 : index
    %13 = arith.index_cast %0 : i32 to index
    %c0_23 = arith.constant 0 : index
    %c0_24 = arith.constant 0 : index
    %14 = vector.load %arg2[%c0_22, %13, %c0_23, %c0_24] : memref<1x16x16x128xbf16, #tpu.memory_space<vmem>>, vector<1x16x16x128xbf16>
    %15 = vector.shape_cast %14 : vector<1x16x16x128xbf16> to vector<16x16x128xbf16>
    %16 = vector.shape_cast %15 : vector<16x16x128xbf16> to vector<256x128xbf16>
    %cst_25 = arith.constant dense<0.000000e+00> : vector<256x32xf32>
    %17 = tpu.matmul %16, %1, %cst_25 {dimension_numbers = #tpu.dot_dimension_numbers<[1], [0], [0], [1], [0, 0, 1, 1], [], []>} : vector<256x128xbf16>, vector<128x32xbf16>, vector<256x32xf32> -> vector<256x32xf32>
    %18 = vector.broadcast %2 : vector<1x32xf32> to vector<256x32xf32>
    %19 = arith.mulf %17, %18 : vector<256x32xf32>
    %20 = vector.broadcast %3 : vector<1x32xf32> to vector<256x32xf32>
    %21 = arith.addf %19, %20 : vector<256x32xf32>
    %cst_26 = arith.constant 0.000000e+00 : f32
    %22 = vector.broadcast %cst_26 : f32 to vector<256x32xf32>
    %23 = arith.maximumf %21, %22 : vector<256x32xf32>
    %24 = arith.truncf %23 : vector<256x32xf32> to vector<256x32xbf16>
    %25 = vector.shape_cast %24 : vector<256x32xbf16> to vector<16x16x32xbf16>
    %c1 = arith.constant 1 : index
    %c1_27 = arith.constant 1 : index
    %c0_28 = arith.constant 0 : index
    %26 = vector.load %arg13[%c1, %c1_27, %c0_28] : memref<18x18x32xbf16, #tpu.memory_space<vmem>>, vector<16x16x32xbf16>
    tpu.vector_store %arg13[%c1, %c1_27, %c0_28], %25 {strides = array<i32>} : memref<18x18x32xbf16, #tpu.memory_space<vmem>>, vector<16x16x32xbf16>,
    %cst_29 = arith.constant 0.000000e+00 : bf16
    %27 = vector.broadcast %cst_29 : bf16 to vector<1x16x32xbf16>
    %c0_30 = arith.constant 0 : index
    %c1_31 = arith.constant 1 : index
    %c0_32 = arith.constant 0 : index
    %28 = vector.load %arg13[%c0_30, %c1_31, %c0_32] : memref<18x18x32xbf16, #tpu.memory_space<vmem>>, vector<1x16x32xbf16>
    tpu.vector_store %arg13[%c0_30, %c1_31, %c0_32], %27 {strides = array<i32>} : memref<18x18x32xbf16, #tpu.memory_space<vmem>>, vector<1x16x32xbf16>,
    %c17_33 = arith.constant 17 : index
    %c1_34 = arith.constant 1 : index
    %c0_35 = arith.constant 0 : index
    %29 = vector.load %arg13[%c17_33, %c1_34, %c0_35] : memref<18x18x32xbf16, #tpu.memory_space<vmem>>, vector<1x16x32xbf16>
    tpu.vector_store %arg13[%c17_33, %c1_34, %c0_35], %27 {strides = array<i32>} : memref<18x18x32xbf16, #tpu.memory_space<vmem>>, vector<1x16x32xbf16>,
    %c0_36 = arith.constant 0 : index
    %c0_37 = arith.constant 0 : index
    %c0_38 = arith.constant 0 : index
    %30 = vector.load %arg13[%c0_36, %c0_37, %c0_38] : memref<18x18x32xbf16, #tpu.memory_space<vmem>>, vector<18x16x32xbf16>
    %c0_39 = arith.constant 0 : index
    %c1_40 = arith.constant 1 : index
    %c0_41 = arith.constant 0 : index
    %31 = vector.load %arg13[%c0_39, %c1_40, %c0_41] : memref<18x18x32xbf16, #tpu.memory_space<vmem>>, vector<18x16x32xbf16>
    %c0_42 = arith.constant 0 : index
    %c2 = arith.constant 2 : index
    %c0_43 = arith.constant 0 : index
    %32 = vector.load %arg13[%c0_42, %c2, %c0_43] : memref<18x18x32xbf16, #tpu.memory_space<vmem>>, vector<18x16x32xbf16>
    %33 = vector.extract_strided_slice %30 {offsets = [0, 0, 0], sizes = [16, 16, 32], strides = [1, 1, 1]} : vector<18x16x32xbf16> to vector<16x16x32xbf16>
    %34 = vector.extract_strided_slice %31 {offsets = [0, 0, 0], sizes = [16, 16, 32], strides = [1, 1, 1]} : vector<18x16x32xbf16> to vector<16x16x32xbf16>
    %35 = vector.extract_strided_slice %32 {offsets = [0, 0, 0], sizes = [16, 16, 32], strides = [1, 1, 1]} : vector<18x16x32xbf16> to vector<16x16x32xbf16>
    %36 = vector.extract_strided_slice %30 {offsets = [1, 0, 0], sizes = [16, 16, 32], strides = [1, 1, 1]} : vector<18x16x32xbf16> to vector<16x16x32xbf16>
    %37 = vector.extract_strided_slice %31 {offsets = [1, 0, 0], sizes = [16, 16, 32], strides = [1, 1, 1]} : vector<18x16x32xbf16> to vector<16x16x32xbf16>
    %38 = vector.extract_strided_slice %32 {offsets = [1, 0, 0], sizes = [16, 16, 32], strides = [1, 1, 1]} : vector<18x16x32xbf16> to vector<16x16x32xbf16>
    %39 = vector.extract_strided_slice %30 {offsets = [2, 0, 0], sizes = [16, 16, 32], strides = [1, 1, 1]} : vector<18x16x32xbf16> to vector<16x16x32xbf16>
    %40 = vector.extract_strided_slice %31 {offsets = [2, 0, 0], sizes = [16, 16, 32], strides = [1, 1, 1]} : vector<18x16x32xbf16> to vector<16x16x32xbf16>
    %41 = vector.extract_strided_slice %32 {offsets = [2, 0, 0], sizes = [16, 16, 32], strides = [1, 1, 1]} : vector<18x16x32xbf16> to vector<16x16x32xbf16>
    %42 = tpu.concatenate %33, %34, %35, %36, %37, %38, %39, %40, %41 in 2 : vector<16x16x32xbf16>, vector<16x16x32xbf16>, vector<16x16x32xbf16>, vector<16x16x32xbf16>, vector<16x16x32xbf16>, vector<16x16x32xbf16>, vector<16x16x32xbf16>, vector<16x16x32xbf16>, vector<16x16x32xbf16> -> vector<16x16x288xbf16>
    %43 = vector.shape_cast %42 : vector<16x16x288xbf16> to vector<256x288xbf16>
    %cst_44 = arith.constant dense<0.000000e+00> : vector<256x32xf32>
    %44 = tpu.matmul %43, %4, %cst_44 {dimension_numbers = #tpu.dot_dimension_numbers<[1], [0], [0], [1], [0, 0, 1, 1], [], []>} : vector<256x288xbf16>, vector<288x32xbf16>, vector<256x32xf32> -> vector<256x32xf32>
    %45 = vector.broadcast %5 : vector<1x32xf32> to vector<256x32xf32>
    %46 = arith.mulf %44, %45 : vector<256x32xf32>
    %47 = vector.broadcast %6 : vector<1x32xf32> to vector<256x32xf32>
    %48 = arith.addf %46, %47 : vector<256x32xf32>
    %cst_45 = arith.constant 0.000000e+00 : f32
    %49 = vector.broadcast %cst_45 : f32 to vector<256x32xf32>
    %50 = arith.maximumf %48, %49 : vector<256x32xf32>
    %51 = arith.truncf %50 : vector<256x32xf32> to vector<256x32xbf16>
    %cst_46 = arith.constant dense<0.000000e+00> : vector<256x128xf32>
    %52 = tpu.matmul %51, %7, %cst_46 {dimension_numbers = #tpu.dot_dimension_numbers<[1], [0], [0], [1], [0, 0, 1, 1], [], []>} : vector<256x32xbf16>, vector<32x128xbf16>, vector<256x128xf32> -> vector<256x128xf32>
    %53 = vector.broadcast %8 : vector<1x128xf32> to vector<256x128xf32>
    %54 = arith.mulf %52, %53 : vector<256x128xf32>
    %55 = vector.broadcast %9 : vector<1x128xf32> to vector<256x128xf32>
    %56 = arith.addf %54, %55 : vector<256x128xf32>
    %c0_47 = arith.constant 0 : index
    %57 = arith.index_cast %0 : i32 to index
    %c0_48 = arith.constant 0 : index
    %c0_49 = arith.constant 0 : index
    %58 = vector.load %arg2[%c0_47, %57, %c0_48, %c0_49] : memref<1x16x16x128xbf16, #tpu.memory_space<vmem>>, vector<1x16x16x128xbf16>
    %59 = vector.shape_cast %58 : vector<1x16x16x128xbf16> to vector<16x16x128xbf16>
    %60 = arith.extf %59 : vector<16x16x128xbf16> to vector<16x16x128xf32>
    %61 = vector.shape_cast %60 : vector<16x16x128xf32> to vector<256x128xf32>
    %62 = arith.addf %56, %61 : vector<256x128xf32>
    %cst_50 = arith.constant 0.000000e+00 : f32
    %63 = vector.broadcast %cst_50 : f32 to vector<256x128xf32>
    %64 = arith.maximumf %62, %63 : vector<256x128xf32>
    %65 = vector.shape_cast %64 : vector<256x128xf32> to vector<16x16x128xf32>
    %66 = arith.truncf %65 : vector<16x16x128xf32> to vector<16x16x128xbf16>
    %c0_51 = arith.constant 0 : index
    %c0_52 = arith.constant 0 : index
    %c0_53 = arith.constant 0 : index
    %c0_54 = arith.constant 0 : index
    %67 = vector.load %arg12[%c0_51, %c0_52, %c0_53, %c0_54] : memref<1x16x16x128xbf16, #tpu.memory_space<vmem>>, vector<1x16x16x128xbf16>
    %68 = vector.shape_cast %67 : vector<1x16x16x128xbf16> to vector<16x16x128xbf16>
    %69 = vector.shape_cast %66 : vector<16x16x128xbf16> to vector<1x16x16x128xbf16>
    tpu.vector_store %arg12[%c0_51, %c0_52, %c0_53, %c0_54], %69 {strides = array<i32>} : memref<1x16x16x128xbf16, #tpu.memory_space<vmem>>, vector<1x16x16x128xbf16>,
    return
  }
  func.func @transform_0(%arg0: i32, %arg1: i32) -> (i32, i32, i32, i32) {
    %c0_i32 = arith.constant 0 : i32
    %c0_i32_0 = arith.constant 0 : i32
    %c0_i32_1 = arith.constant 0 : i32
    %c0_i32_2 = arith.constant 0 : i32
    return %arg0, %c0_i32, %c0_i32_0, %c0_i32_1 : i32, i32, i32, i32
  }
  func.func @transform_1(%arg0: i32, %arg1: i32) -> (i32, i32) {
    %c0_i32 = arith.constant 0 : i32
    %c0_i32_0 = arith.constant 0 : i32
    %c0_i32_1 = arith.constant 0 : i32
    return %c0_i32, %c0_i32_0 : i32, i32
  }
  func.func @transform_2(%arg0: i32, %arg1: i32) -> (i32, i32) {
    %c0_i32 = arith.constant 0 : i32
    %c0_i32_0 = arith.constant 0 : i32
    %c0_i32_1 = arith.constant 0 : i32
    return %c0_i32, %c0_i32_0 : i32, i32
  }
  func.func @transform_3(%arg0: i32, %arg1: i32) -> (i32, i32) {
    %c0_i32 = arith.constant 0 : i32
    %c0_i32_0 = arith.constant 0 : i32
    %c0_i32_1 = arith.constant 0 : i32
    return %c0_i32, %c0_i32_0 : i32, i32
  }
  func.func @transform_4(%arg0: i32, %arg1: i32) -> (i32, i32) {
    %c0_i32 = arith.constant 0 : i32
    %c0_i32_0 = arith.constant 0 : i32
    %c0_i32_1 = arith.constant 0 : i32
    return %c0_i32, %c0_i32_0 : i32, i32
  }
  func.func @transform_5(%arg0: i32, %arg1: i32) -> (i32, i32) {
    %c0_i32 = arith.constant 0 : i32
    %c0_i32_0 = arith.constant 0 : i32
    %c0_i32_1 = arith.constant 0 : i32
    return %c0_i32, %c0_i32_0 : i32, i32
  }
  func.func @transform_6(%arg0: i32, %arg1: i32) -> (i32, i32) {
    %c0_i32 = arith.constant 0 : i32
    %c0_i32_0 = arith.constant 0 : i32
    %c0_i32_1 = arith.constant 0 : i32
    return %c0_i32, %c0_i32_0 : i32, i32
  }
  func.func @transform_7(%arg0: i32, %arg1: i32) -> (i32, i32) {
    %c0_i32 = arith.constant 0 : i32
    %c0_i32_0 = arith.constant 0 : i32
    %c0_i32_1 = arith.constant 0 : i32
    return %c0_i32, %c0_i32_0 : i32, i32
  }
  func.func @transform_8(%arg0: i32, %arg1: i32) -> (i32, i32) {
    %c0_i32 = arith.constant 0 : i32
    %c0_i32_0 = arith.constant 0 : i32
    %c0_i32_1 = arith.constant 0 : i32
    return %c0_i32, %c0_i32_0 : i32, i32
  }
  func.func @transform_9(%arg0: i32, %arg1: i32) -> (i32, i32) {
    %c0_i32 = arith.constant 0 : i32
    %c0_i32_0 = arith.constant 0 : i32
    %c0_i32_1 = arith.constant 0 : i32
    return %c0_i32, %c0_i32_0 : i32, i32
  }
  func.func @transform_10(%arg0: i32, %arg1: i32) -> (i32, i32, i32, i32) {
    %c0_i32 = arith.constant 0 : i32
    %c0_i32_0 = arith.constant 0 : i32
    %c0_i32_1 = arith.constant 0 : i32
    return %arg0, %arg1, %c0_i32, %c0_i32_0 : i32, i32, i32, i32
  }
}

</mosaic_0001>

<bundles_post_ra>
// kernel: tpu_custom_call.1
= control target key start
LH: loop header
LB: loop body
LE: loop exit
PB: predicated region body
PF: predicated region fallthrough
CT: control target
= control target key end

     0   :  { %15 = vsyncpa [#allocation4], 0  ;;  %s5676_s0 = inlined_call_operand.hbm [shape: bf16[2,16,16,128], index: 0, kind: input, shape index: {}]   ;;  %s5677_s1 = inlined_call_operand.vmem [shape: bf16[128,32], index: 1, kind: input, shape index: {}]   ;;  %s5678_s2 = inlined_call_operand.vmem [shape: f32[1,32], index: 2, kind: input, shape index: {}]   ;;  %s5679_s3 = inlined_call_operand.vmem [shape: f32[1,32], index: 3, kind: input, shape index: {}]   ;;  %s5680_s4 = inlined_call_operand.vmem [shape: bf16[288,32], index: 4, kind: input, shape index: {}]   ;;  %s5681_s5 = inlined_call_operand.vmem [shape: f32[1,32], index: 5, kind: input, shape index: {}]   ;;  %s5682_s6 = inlined_call_operand.vmem [shape: f32[1,32], index: 6, kind: input, shape index: {}]   ;;  %s5683_s7 = inlined_call_operand.vmem [shape: bf16[32,128], index: 7, kind: input, shape index: {}]   ;;  %s5684_s8 = inlined_call_operand.vmem [shape: f32[1,128], index: 8, kind: input, shape index: {}]   ;;  %s5685_s9 = inlined_call_operand.vmem [shape: f32[1,128], index: 9, kind: input, shape index: {}]   ;;  %s5686_s10 = inlined_call_operand.hbm [shape: bf16[2,16,16,128], index: 10, kind: output, shape index: {}]  }
   0x1   :  { %17 = vsyncpa [#allocation4 + $0x1], 0 }
   0x2   :  { %18 = vsyncpa [#allocation5], 0 }
   0x3   :  { %20 = vsyncpa [#allocation5 + $0x1], 0  ;;  %s4278_s13 = smov 0   ;;  %s4280_s14 = smov 0  }
   0x4   :  { %s4282_s15 = smov 0   ;;  %s4284_s16 = smov 0  }
   0x5   :  { %s4286_s17 = smov 0   ;;  %s4288_s18 = smov 0  }
   0x6 LB: > { %5692 = sst [smem:[#allocation9_spill]] %s4194_s13  ;;  %s3461_s19 = sadd.s32 4294967295, %s4214_s18   ;;  %s4214_s18 = sphi %s4288_s18, %s26_s18   ;;  %s4210_s17 = sphi %s4286_s17, %s5713_s17   ;;  %s4206_s16 = sphi %s4284_s16, %s5712_s16   ;;  %s4202_s15 = sphi %s4282_s15, %s5716_s15   ;;  %s4198_s14 = sphi %s4280_s14, %s5715_s14   ;;  %s4194_s13 = sphi %s4278_s13, %s5714_s13  }
   0x7   : > { %5693 = sst [smem:[#allocation10_spill]] %s4210_s17  ;;  %s3462_s20 = sadd.s32 4294967294, %s4214_s18  }
   0x8   : > { %s38_s21 = sadd.s32 1, %s4210_s17  ;;  %s45_s22 = sadd.s32 1, %s4202_s15 }
   0x9   : > { %p40_p0 = scmp.ge.s32.totalorder %s38_s21, 2  ;;  %p52_p1 = scmp.ne.s32.totalorder %s4202_s15, %s4198_s14 }
   0xa   : > { %p53_p2 = scmp.eq.s32.totalorder %s4214_s18, 0  ;;  %p58_p3 = scmp.ne.s32.totalorder %s4198_s14, %s4194_s13 }
   0xb   : > { %s5718_s21 = smov (%p40_p0, %s38_s21), 0  ;;  %p59_p5 = scmp.eq.s32.totalorder %s3461_s19, 0 }
   0xc   : > { %5694 = sst [smem:[#allocation11_spill]] %s5718_s21  ;;  %p4319_p4 = por %p53_p2, %p52_p1 }
   0xd   : > { %s42_s24 = ssub.s32 %s4210_s17, %s5718_s21  ;;  %p273_p6 = scmp.eq.s32.totalorder %s3461_s19, 1 }
   0xe   : > { %p43_p7 = scmp.eq.s32.totalorder %s42_s24, 0  ;;  %p4325_p8 = por %p59_p5, %p58_p3 }
   0xf   : > { %p4329_p9 = por %p273_p6, %p52_p1  ;;  %p279_p10 = scmp.eq.s32.totalorder %s3462_s20, 1 }
  0x10   : > { %s4334_s27 = scalar_select %p43_p7, %s4202_s15, %s45_s22  }
  0x11   : > { %s5697_s26 = scalar_select %p4329_p9, 1, 0 }
  0x12   : > { %5699 = sst [smem:[#allocation13_spill]] %s4334_s27  ;;  %p4336_p11 = por %p279_p10, %p58_p3 }
  0x13   : > { %5698 = sst [smem:[#allocation12_spill]] %s5697_s26  ;;  %p3464_p12 = scmp.ge.s32.totalorder %s4214_s18, 2 }
  0x14   : > { %p4005_p13 = scmp.lt.s32.totalorder %s4214_s18, 2  ;;  %s326_s29 = sand.u32 1, %s4202_s15  }
  0x15   : > { %s3465_s30 = sshll.u32 %s326_s29, 7  ;;  %s3684_s11 = sshll.u32 %s4210_s17, 7 }
  0x16   : > { %s335_s24 = scalar_lea.hbm %s5676_s0, %s3684_s11  ;;  %s330_s21 = scalar_lea.vmem [#allocation3], %s3465_s30 }
  0x17   : > { %s338_s13 = sshll.u32 %s330_s21, 4  ;;  %s336_s26 = sshll.u32 %s335_s24, 4  ;;  %s339_s13 = int_to_ptr.vmem [resolvable:$true] %s338_s13  ;;  %s337_s26 = int_to_ptr.hbm [resolvable:$true] %s336_s26 }
  0x18   : > { %p3998_p0 = pnand %p4005_p13, %p4319_p4  ;;  %p3468_p1 = scmp.ge.s32.totalorder %s4214_s18, 1 }
  0x19   : > { %s327_s20 = scalar_lea.sflag [#allocation4], %s326_s29  ;;  %s4216_s22 = smov 64  }
  0x1a   : > { %s4217_s27 = smov 4   ;;  %p346_p2 = scmp.lt.s32.totalorder %s4214_s18, 3 }
  0x1b   : > { %4000 = dma.hbm_to_vmem [thread:$0]  (!%p3998_p0), %s337_s26, 2048, %s339_s13, %s327_s20, %s4216_s22, %s4216_s22, %s4217_s27  }
  0x1c   : > { %p347_p3 = pnand %p3468_p1, %p346_p2 }
  0x1d   : > { %s4352_s17 = sand.u32 (!%p347_p3), 1, %s4198_s14  }
  0x1e   : > { %350 = sbr.rel (%p347_p3) target bundleno = 919 (0x397), region = 60  ;;  %s3469_s21 = sshll.u32 (!%p347_p3), %s4352_s17, 7 }
  0x1f   : > { %s353_s30 = scalar_lea.sflag (!%p347_p3), [#allocation4], %s4352_s17  ;;  %s4358_s23 = scalar_lea.vmem (!%p347_p3), [#allocation3], %s3469_s21 }
  0x23   : > { %4167 = dma.done.wait (%p4325_p8), %s353_s30, 2048  }
  0x24   : > { %4169 = vsyncadd (%p4325_p8), %s353_s30, 4294965248  ;;  %v3692_v0 = vld [vmem:[%s5677_s1 + $0x38] sm:$0xff]  ;;  %v3691_v1 = vld [vmem:[%s5677_s1 + $0x30] sm:$0xff]  ;;  %vm459_vm0 = vcmask 253952   ;;  %vm460_vm1 = vsmask.f32 256 }
  0x25   : > { %751 = vmatpush.bf16.msra.mxu0 %v3692_v0  ;;  %3975 = vmatpush.bf16.msra.mxu1 %v3692_v0  ;;  %v3690_v2 = vld [vmem:[%s5677_s1 + $0x28] sm:$0xff]  ;;  %v3689_v3 = vld [vmem:[%s5677_s1 + $0x20] sm:$0xff]  ;;  %v3688_v4 = vld [vmem:[%s5677_s1 + $0x18] sm:$0xff]  ;;  %vm516_vm3 = vsmask.f32 7938  ;;  %vm1297_vm5 = vcmask 257024  }
  0x26   : > { %3976 = vmatpush.bf16.msra.mxu2 %v3692_v0  ;;  %v3687_v5 = vld [vmem:[%s5677_s1 + $0x10] sm:$0xff]  ;;  %v3686_v6 = vld [vmem:[%s5677_s1 + $0x8] sm:$0xff]  ;;  %v3685_v7 = vld [vmem:[%s5677_s1] sm:$0xff]  ;;  %v4218_v31 = vmov 0   ;;  %vm1900_vm7 = vcmask 1046528   ;;  %s4219_s25 = smov 64  }
  0x27   : > { %v3713_v8 = vld [vmem:[%s4358_s23] sm:$0xff]  ;;  %v3714_v9 = vld [vmem:[%s4358_s23 + $0x8] sm:$0xff]  ;;  %v3715_v10 = vld [vmem:[%s4358_s23 + $0x10] sm:$0xff]  ;;  %1415 = vst.msk [vmem:[#allocation2 + $0x4] sm:$0xf] %vm1297_vm5, %v4218_v31  ;;  %s4220_s26 = smov 96  }
  0x28   : > { %v3716_v11 = vld [vmem:[%s4358_s23 + $0x18] sm:$0xff]  ;;  %v3717_v12 = vld [vmem:[%s4358_s23 + $0x20] sm:$0xff]  ;;  %v3718_v13 = vld [vmem:[%s4358_s23 + $0x28] sm:$0xff]  ;;  %1423 = vst.msk [vmem:[#allocation2 + $0xd0] sm:$0xf] %vm1297_vm5, %v4218_v31  ;;  %s4221_s27 = smov 32  }
  0x29   : > { %752 = vmatpush.bf16.msra.mxu0 %v3691_v1  ;;  %3977 = vmatpush.bf16.msra.mxu1 %v3691_v1  ;;  %v465_v14 = vld [vmem:[#allocation2 + $0xc] sm:$0x1]  ;;  %vm4395_vm2 = vmand %vm459_vm0, %vm460_vm1  ;;  %v518_v19 = vld [vmem:[#allocation2 + $0x8] sm:$0x1]  ;;  %vm974_vm8 = vsmask.f32 4368 }
  0x2a   : > { %3978 = vmatpush.bf16.msra.mxu2 %v3691_v1  ;;  %v466_v16 = vsel %vm4395_vm2, 0, %v465_v14  ;;  %v3719_v17 = vld [vmem:[%s4358_s23 + $0x30] sm:$0xff]  ;;  %vm4402_vm4 = vmand %vm459_vm0, %vm516_vm3  ;;  %v462_v21 = vld [vmem:[#allocation2] sm:$0x1]  ;;  %vm1627_vm10 = vsmask.f32 7424 }
  0x2b   : > { %467 = vst [vmem:[#allocation2 + $0xc] sm:$0x1] %v466_v16  ;;  %v519_v20 = vsel %vm4402_vm4, 0, %v518_v19  ;;  %v463_v22 = vsel %vm4395_vm2, 0, %v462_v21  ;;  %vm4411_vm6 = vmand %vm1297_vm5, %vm516_vm3  ;;  %v521_v25 = vld [vmem:[#allocation2 + $0x14] sm:$0x1] }
  0x2c   : > { %520 = vst [vmem:[#allocation2 + $0x8] sm:$0x1] %v519_v20  ;;  %v522_v27 = vsel %vm4402_vm4, 0, %v521_v25  ;;  %v3720_v29 = vld [vmem:[%s4358_s23 + $0x38] sm:$0xff]  ;;  %v3723_v32 = vld [vmem:[%s4358_s23 + $0x50] sm:$0xff]  ;;  %v3721_v47 = vld [vmem:[%s4358_s23 + $0x40] sm:$0xff] }
  0x2d   : > { %753 = vmatpush.bf16.msra.mxu0 %v3690_v2  ;;  %3979 = vmatpush.bf16.msra.mxu1 %v3690_v2  ;;  %464 = vst [vmem:[#allocation2] sm:$0x1] %v463_v22  ;;  %v468_v34 = vld [vmem:[#allocation2 + $0x18] sm:$0x1]  ;;  %v4433_v43 = vld [vmem:[%s5678_s2] ss:$0 sm:$0xff]  ;;  %vm4467_vm9 = vmor %vm460_vm1, %vm974_vm8 }
  0x2e   : > { %3980 = vmatpush.bf16.msra.mxu2 %v3690_v2  ;;  %523 = vst [vmem:[#allocation2 + $0x14] sm:$0x1] %v522_v27  ;;  %v469_v36 = vsel %vm4395_vm2, 0, %v468_v34  ;;  %v3918_v38 = vld [vmem:[#allocation2] sm:$0xf0]  ;;  %v3724_v52 = vld [vmem:[%s4358_s23 + $0x58] sm:$0xff] }
  0x2f   : > { %470 = vst [vmem:[#allocation2 + $0x18] sm:$0x1] %v469_v36  ;;  %v524_v45 = vld [vmem:[#allocation2 + $0x20] sm:$0x1]  ;;  %v3710_v58 = vld [vmem:[%s5680_s4 + $0x88] sm:$0xff]  ;;  %vm2161_vm11 = vcmask 261120  }
  0x30   : > { %v4440_v46 = vld [vmem:[%s5679_s3] ss:$0 sm:$0xff]  ;;  %v525_v48 = vsel %vm4402_vm4, 0, %v524_v45  ;;  %v471_v59 = vld [vmem:[#allocation2 + $0x24] sm:$0x1]  ;;  %3991 = vmatpush.bf16.msra.mxu3 %v3710_v58  ;;  %vm2194_vm12 = vcmask 523264  }
  0x31   : > { %754 = vmatpush.bf16.msra.mxu0 %v3689_v3  ;;  %3981 = vmatpush.bf16.msra.mxu1 %v3689_v3  ;;  %526 = vst [vmem:[#allocation2 + $0x20] sm:$0x1] %v525_v48  ;;  %v472_v60 = vsel %vm4395_vm2, 0, %v471_v59  ;;  %v3709_v16 = vld [vmem:[%s5680_s4 + $0x80] sm:$0xff]  ;;  %v474_v31 = vld [vmem:[#allocation2 + $0x30] sm:$0x1] }
  0x32   : > { %3982 = vmatpush.bf16.msra.mxu2 %v3689_v3  ;;  %473 = vst [vmem:[#allocation2 + $0x24] sm:$0x1] %v472_v60  ;;  %v1299_v0 = vld [vmem:[#allocation2 + $0xc] sm:$0xf]  ;;  %vm2227_vm13 = vcmask 785408   ;;  %s5502_s11 = scalar_lea.vmem [#allocation6], %s3469_s21 }
  0x33   : > { %v1416_v23 = vld [vmem:[#allocation2 + $0x8] sm:$0x1]  ;;  %v527_v3 = vld [vmem:[#allocation2 + $0x2c] sm:$0x1]  ;;  %s3729_s21 = sshll.u32 %s4206_s16, 7  ;;  %s3357_s16 = scalar_lea.sflag [#allocation5], %s4352_s17 }
  0x34   : > { %v1417_v26 = vsel %vm4395_vm2, 0, %v1416_v23  ;;  %v1412_v28 = vld [vmem:[#allocation2] sm:$0xf]  ;;  %3992 = vmatpush.bf16.msra.mxu3 %v3709_v16  ;;  %s4134_s29 = scalar_lea.hbm %s5686_s10, 256 }
  0x35   : > { %755 = vmatpush.bf16.msra.mxu0 %v3688_v4  ;;  %3983 = vmatpush.bf16.msra.mxu1 %v3688_v4  ;;  %1418 = vst [vmem:[#allocation2 + $0x8] sm:$0x1] %v1417_v26  ;;  %v1413_v30 = vsel %vm4411_vm6, 0, %v1412_v28  ;;  %v1304_v19 = vld [vmem:[#allocation2 + $0x14] sm:$0x1] }
  0x36   : > { %3984 = vmatpush.bf16.msra.mxu2 %v3688_v4  ;;  %1414 = vst [vmem:[#allocation2] sm:$0xf] %v1413_v30  ;;  %v3725_v4 = vld [vmem:[%s4358_s23 + $0x60] sm:$0xff] }
  0x37   : > { %v1307_v36 = vld [vmem:[#allocation2 + $0x18] sm:$0xf] }
  0x39   : > { %756 = vmatpush.bf16.msra.mxu0 %v3687_v5  ;;  %3985 = vmatpush.bf16.msra.mxu1 %v3687_v5 }
  0x3a   : > { %3986 = vmatpush.bf16.msra.mxu2 %v3687_v5 }
  0x3c   : > { %v1463_v33 = vld [vmem:[#allocation2 + $0x8] sm:$0x1] }
  0x3d   : > { %757 = vmatpush.bf16.msra.mxu0 %v3686_v6  ;;  %3987 = vmatpush.bf16.msra.mxu1 %v3686_v6  ;;  %v1595_v35 = vunpack.c.l.b16 %v1463_v33  ;;  %v3919_v37 = vld [vmem:[#allocation2] sm:$0xe] }
  0x3e   : > { %3988 = vmatpush.bf16.msra.mxu2 %v3686_v6  ;;  %v3920_v40 = vor.u32 %v3919_v37, %v3918_v38 }
  0x3f   : > { %v4427_v39 = vpack.c.b16 %v1595_v35, %v1595_v35 }
  0x40   : > { %v1901_v42 = vrot.slane %v3920_v40, 1 }
  0x41   : > { %758 = vmatpush.bf16.msra.mxu0 %v3685_v7  ;;  %3989 = vmatpush.bf16.msra.mxu1 %v3685_v7  ;;  %v1902_v41 = vrot.slane %v4427_v39, 1 }
  0x42   : > { %3990 = vmatpush.bf16.msra.mxu2 %v3685_v7  ;;  %v3722_v7 = vld [vmem:[%s4358_s23 + $0x48] sm:$0xff] }
  0x43   : > { %v1903_v44 = vsel %vm1900_vm7, %v1901_v42, %v1902_v41  ;;  %v530_v41 = vld [vmem:[#allocation2 + $0x38] sm:$0x1] }
  0x44   : > { %759 = vmatmul.bf16.vlgmr.msra.gmra.mxu0 %v3713_v8  ;;  %809 = vmatmul.bf16.vlgmr.msra.gmra.mxu1 %v3723_v32  ;;  %v528_v8 = vsel %vm4402_vm4, 0, %v527_v3  ;;  %v475_v32 = vsel %vm4395_vm2, 0, %v474_v31  ;;  %v531_v48 = vsel %vm4402_vm4, 0, %v530_v41 }
  0x45   : > { %1949 = vrot.lane.b32.xlu2 %v1903_v44, %s4219_s25  ;;  %2744 = vmatpush.bf16.msrb.mxu0 %v3710_v58  ;;  %529 = vst [vmem:[#allocation2 + $0x2c] sm:$0x1] %v528_v8 }
  0x46   : > { %819 = vmatmul.bf16.vlgmr.msra.gmra.mxu2 %v3725_v4  ;;  %476 = vst [vmem:[#allocation2 + $0x30] sm:$0x1] %v475_v32 }
  0x47   : > { %532 = vst [vmem:[#allocation2 + $0x38] sm:$0x1] %v531_v48 }
  0x49   : > { %2745 = vmatpush.bf16.msrb.mxu0 %v3709_v16  ;;  %v1314_v16 = vld [vmem:[#allocation2 + $0x24] sm:$0xf] }
  0x54   : > { %764 = vmatmul.bf16.gmra.mxu0 %v3714_v9  ;;  %814 = vmatmul.bf16.gmra.mxu1 %v3724_v52 }
  0x64   : > { %769 = vmatmul.bf16.gmra.mxu0 %v3715_v10 }
  0x74   : > { %774 = vmatmul.bf16.gmra.mxu0 %v3716_v11 }
  0x84   : > { %779 = vmatmul.bf16.gmra.mxu0 %v3717_v12 }
  0x94   : > { %784 = vmatmul.bf16.gmra.mxu0 %v3718_v13 }
  0xa4   : > { %789 = vmatmul.bf16.gmra.mxu0 %v3719_v17 }
  0xb4   : > { %794 = vmatmul.bf16.gmra.mxu0 %v3720_v29 }
  0xc1   : > { %v760_v49 = vpop.f32.mrf.mxu0 }
  0xc2   : > { %v843_v50 = vmul.f32 %v4433_v43, %v760_v49  ;;  %v3726_v49 = vld [vmem:[%s4358_s23 + $0x68] sm:$0xff] }
  0xc3   : > { %824 = vmatmul.bf16.gmra.mxu2 %v3726_v49 }
  0xc4   : > { %v878_v51 = vadd.f32 %v4440_v46, %v843_v50  ;;  %799 = vmatmul.bf16.gmra.mxu0 %v3721_v47 }
  0xc6   : > { %v910_v53 = vmax.f32 %v878_v51, 0.0 }
  0xc8   : > { %v942_v54 = vpack.c.bf16 %v910_v53, %v910_v53 }
  0xc9   : > { %v762_v55 = vpop.f32.mrf.mxu0 }
  0xca   : > { %v977_v56 = vshrl.u32 %v942_v54, 16  ;;  %v844_v57 = vmul.f32 %v4433_v43, %v762_v55  ;;  %v980_v62 = vshll.u32 %v942_v54, 16 }
  0xcc   : > { %v979_v61 = vrot.slane %v977_v56, 7  ;;  %v879_v63 = vadd.f32 %v4440_v46, %v844_v57 }
  0xce   : > { %v982_v1 = vor.u32 %v980_v62, %v979_v61  ;;  %v911_v2 = vmax.f32 %v879_v63, 0.0  ;;  %v983_v20 = vrot.slane %v979_v61, 4  ;;  %v1311_v61 = vld [vmem:[#allocation2 + $0x20] sm:$0x1] }
  0xd0   : > { %v1300_v5 = vsel %vm4411_vm6, %v982_v1, %v1299_v0  ;;  %v943_v6 = vpack.c.bf16 %v911_v2, %v911_v2 }
  0xd1   : > { %1301 = vst [vmem:[#allocation2 + $0xc] sm:$0xf] %v1300_v5  ;;  %v765_v9 = vpop.f32.mrf.mxu0 }
  0xd2   : > { %v985_v10 = vshrl.u32 %v943_v6, 16  ;;  %v845_v11 = vmul.f32 %v4433_v43, %v765_v9  ;;  %v988_v13 = vshll.u32 %v943_v6, 16 }
  0xd4   : > { %v987_v12 = vrot.slane %v985_v10, 7  ;;  %v880_v14 = vadd.f32 %v4440_v46, %v845_v11  ;;  %804 = vmatmul.bf16.gmra.mxu0 %v3722_v7  ;;  %v477_v11 = vld [vmem:[#allocation2 + $0x3c] sm:$0x1] }
  0xd6   : > { %v990_v21 = vor.u32 %v988_v13, %v987_v12  ;;  %v992_v22 = vrot.slane %v987_v12, 4  ;;  %v912_v23 = vmax.f32 %v880_v14, 0.0  ;;  %v478_v12 = vsel %vm4395_vm2, 0, %v477_v11  ;;  %v480_v11 = vld [vmem:[#allocation2 + $0x48] sm:$0x1] }
  0xd7   : > { %479 = vst [vmem:[#allocation2 + $0x3c] sm:$0x1] %v478_v12 }
  0xd8   : > { %v991_v25 = vsel %vm4467_vm9, %v983_v20, %v990_v21  ;;  %v1305_v26 = vsel %vm4395_vm2, %v992_v22, %v1304_v19  ;;  %v944_v27 = vpack.c.bf16 %v912_v23, %v912_v23  ;;  %v4076_v40 = vld [vmem:[#allocation2 + $0xc] sm:$0xe]  ;;  %v3731_v21 = vld [vmem:[#allocation2] sm:$0xff]  }
  0xd9   : > { %1303 = vst.msk [vmem:[#allocation2 + $0x10] sm:$0xf] %vm1297_vm5, %v991_v25  ;;  %v767_v28 = vpop.f32.mrf.mxu0 }
  0xda   : > { %1306 = vst [vmem:[#allocation2 + $0x14] sm:$0x1] %v1305_v26  ;;  %v994_v29 = vshrl.u32 %v944_v27, 16  ;;  %v846_v30 = vmul.f32 %v4433_v43, %v767_v28  ;;  %v997_v34 = vshll.u32 %v944_v27, 16  ;;  %v533_v28 = vld [vmem:[#allocation2 + $0x44] sm:$0x1] }
  0xdb   : > { %v534_v41 = vsel %vm4402_vm4, 0, %v533_v28 }
  0xdc   : > { %v996_v33 = vrot.slane %v994_v29, 7  ;;  %v881_v35 = vadd.f32 %v4440_v46, %v846_v30  ;;  %535 = vst [vmem:[#allocation2 + $0x44] sm:$0x1] %v534_v41 }
  0xde   : > { %v999_v37 = vor.u32 %v997_v34, %v996_v33  ;;  %v913_v38 = vmax.f32 %v881_v35, 0.0  ;;  %v1000_v60 = vrot.slane %v996_v33, 4  ;;  %v1631_v33 = vshll.u32 %v3731_v21, 16 }
  0xe0   : > { %v1308_v42 = vsel %vm4411_vm6, %v999_v37, %v1307_v36  ;;  %v945_v44 = vpack.c.bf16 %v913_v38, %v913_v38  ;;  %v4482_v45 = vld [vmem:[#allocation2 + $0xc] sm:$0xff]  }
  0xe1   : > { %v4075_v47 = vld [vmem:[#allocation2 + $0xc] sm:$0xf0]  ;;  %1309 = vst [vmem:[#allocation2 + $0x18] sm:$0xf] %v1308_v42  ;;  %v770_v50 = vpop.f32.mrf.mxu0  ;;  %v1464_v51 = vld [vmem:[#allocation2 + $0x14] sm:$0x1]  ;;  %1986 = vrot.lane.b32.xlu2 %v4482_v45, %s4220_s26 }
  0xe2   : > { %v1002_v52 = vshrl.u32 %v945_v44, 16  ;;  %v847_v53 = vmul.f32 %v4433_v43, %v770_v50  ;;  %v1596_v54 = vunpack.c.l.b16 %v1464_v51  ;;  %v4077_v55 = vor.u32 %v4076_v40, %v4075_v47  ;;  %v3727_v37 = vld [vmem:[%s4358_s23 + $0x70] sm:$0xff] }
  0xe3   : > { %v1005_v57 = vshll.u32 %v945_v44, 16  ;;  %v1643_v38 = vshll.u32 %v4482_v45, 16  ;;  %v1629_v40 = vshrl.u32 %v3731_v21, 16  ;;  %829 = vmatmul.bf16.gmra.mxu2 %v3727_v37  ;;  %v1318_v50 = vld [vmem:[#allocation2 + $0x2c] sm:$0x1] }
  0xe4   : > { %v1004_v56 = vrot.slane %v1002_v52, 7  ;;  %v882_v58 = vadd.f32 %v4440_v46, %v847_v53  ;;  %v4489_v59 = vpack.c.b16 %v1596_v54, %v1596_v54  ;;  %v1904_v62 = vrot.slane %v4077_v55, 1  ;;  %v1321_v21 = vld [vmem:[#allocation2 + $0x30] sm:$0xf] }
  0xe5   : > { %v1633_v53 = vrot.slane %v1631_v33, 1 }
  0xe6   : > { %v1007_v63 = vor.u32 %v1005_v57, %v1004_v56  ;;  %v1009_v0 = vrot.slane %v1004_v56, 4  ;;  %v914_v1 = vmax.f32 %v882_v58, 0.0  ;;  %v1905_v2 = vrot.slane %v4489_v59, 1 }
  0xe8   : > { %v1008_v3 = vsel %vm4467_vm9, %v1000_v60, %v1007_v63  ;;  %v1312_v4 = vsel %vm4395_vm2, %v1009_v0, %v1311_v61  ;;  %v946_v5 = vpack.c.bf16 %v914_v1, %v914_v1  ;;  %v4499_v6 = vsel %vm1900_vm7, %v1904_v62, %v1905_v2  ;;  %v3922_v22 = vld [vmem:[#allocation2 + $0x18] sm:$0xe] }
  0xe9   : > { %1310 = vst.msk [vmem:[#allocation2 + $0x1c] sm:$0xf] %vm1297_vm5, %v1008_v3  ;;  %2039 = vrot.lane.b32.xlu0 %v4499_v6, %s4221_s27  ;;  %v772_v7 = vpop.f32.mrf.mxu0  ;;  %v1645_v61 = vrot.slane %v1643_v38, 1  ;;  %v1636_v62 = vshll.u32 %v4427_v39, 16 }
  0xea   : > { %1313 = vst [vmem:[#allocation2 + $0x20] sm:$0x1] %v1312_v4  ;;  %v1011_v8 = vshrl.u32 %v946_v5, 16  ;;  %v1014_v9 = vshll.u32 %v946_v5, 16  ;;  %v848_v10 = vmul.f32 %v4433_v43, %v772_v7  ;;  %v1641_v5 = vshrl.u32 %v4482_v45, 16 }
  0xeb   : > { %v1648_v7 = vshll.u32 %v4489_v59, 16 }
  0xec   : > { %v1013_v13 = vrot.slane %v1011_v8, 7  ;;  %v883_v14 = vadd.f32 %v4440_v46, %v848_v10  ;;  %v1646_v59 = vor.u32 %v1645_v61, %v1641_v5 }
  0xee   : > { %v1016_v19 = vor.u32 %v1014_v9, %v1013_v13  ;;  %v915_v20 = vmax.f32 %v883_v14, 0.0  ;;  %v1017_v49 = vrot.slane %v1013_v13, 4  ;;  %v1634_v13 = vor.u32 %v1633_v53, %v1629_v40 }
  0xef   : > { %v481_v14 = vsel %vm4395_vm2, 0, %v480_v11 }
  0xf0   : > { %v1315_v23 = vsel %vm4411_vm6, %v1016_v19, %v1314_v16  ;;  %v947_v25 = vpack.c.bf16 %v915_v20, %v915_v20  ;;  %v4510_v26 = vld [vmem:[#allocation2 + $0x18] sm:$0xff]   ;;  %v1638_v20 = vrot.slane %v1636_v62, 1  ;;  %482 = vst [vmem:[#allocation2 + $0x48] sm:$0x1] %v481_v14 }
  0xf1   : > { %v3921_v27 = vld [vmem:[#allocation2 + $0x18] sm:$0xf0]  ;;  %1316 = vst [vmem:[#allocation2 + $0x24] sm:$0xf] %v1315_v23  ;;  %2076 = vrot.lane.b32.xlu0 %v4510_v26, %s4219_s25  ;;  %v775_v29 = vpop.f32.mrf.mxu0  ;;  %v1465_v30 = vld [vmem:[#allocation2 + $0x20] sm:$0x1] }
  0xf2   : > { %v3923_v31 = vor.u32 %v3922_v22, %v3921_v27  ;;  %v1655_v32 = vshll.u32 %v4510_v26, 16  ;;  %v1019_v34 = vshrl.u32 %v947_v25, 16  ;;  %v849_v35 = vmul.f32 %v4433_v43, %v775_v29 }
  0xf3   : > { %v1597_v36 = vunpack.c.l.b16 %v1465_v30  ;;  %v1022_v44 = vshll.u32 %v947_v25, 16  ;;  %v1653_v58 = vshrl.u32 %v4510_v26, 16  ;;  %v1650_v25 = vrot.slane %v1648_v7, 1 }
  0xf4   : > { %v1021_v42 = vrot.slane %v1019_v34, 7  ;;  %v884_v47 = vadd.f32 %v4440_v46, %v849_v35  ;;  %v1907_v51 = vrot.slane %v3923_v31, 1  ;;  %v1657_v52 = vrot.slane %v1655_v32, 1  ;;  %v536_v34 = vld [vmem:[#allocation2 + $0x50] sm:$0x1] }
  0xf5   : > { %v1613_v48 = vpack.c.b16 %v1597_v36, %v1597_v36  ;;  %v4549_v30 = vsel %vm1627_vm10, %v1646_v59, %v1650_v25  ;;  %v1639_v31 = vsel %vm1627_vm10, %v1634_v13, %v1638_v20  ;;  %v537_v37 = vsel %vm4402_vm4, 0, %v536_v34 }
  0xf6   : > { %v1024_v54 = vor.u32 %v1022_v44, %v1021_v42  ;;  %v1026_v55 = vrot.slane %v1021_v42, 4  ;;  %v916_v56 = vmax.f32 %v884_v47, 0.0  ;;  %v1658_v39 = vor.u32 %v1657_v52, %v1653_v58  ;;  %538 = vst [vmem:[#allocation2 + $0x50] sm:$0x1] %v537_v37  ;;  %v1325_v52 = vld [vmem:[#allocation2 + $0x38] sm:$0x1] }
  0xf7   : > { %v1908_v57 = vrot.slane %v1613_v48, 1  ;;  %v1660_v60 = vshll.u32 %v1613_v48, 16 }
  0xf8   : > { %v1025_v63 = vsel %vm4467_vm9, %v1017_v49, %v1024_v54  ;;  %v1319_v0 = vsel %vm4395_vm2, %v1026_v55, %v1318_v50  ;;  %v948_v1 = vpack.c.bf16 %v916_v56, %v916_v56  ;;  %v4079_v27 = vld [vmem:[#allocation2 + $0x24] sm:$0xe]  ;;  %v3728_v50 = vld [vmem:[%s4358_s23 + $0x78] sm:$0xff] }
  0xf9   : > { %v4528_v2 = vsel %vm1900_vm7, %v1907_v51, %v1908_v57  ;;  %1317 = vst.msk [vmem:[#allocation2 + $0x28] sm:$0xf] %vm1297_vm5, %v1025_v63  ;;  %v777_v3 = vpop.f32.mrf.mxu0  ;;  %v1662_v4 = vrot.slane %v1660_v60, 1  ;;  %834 = vmatmul.bf16.gmra.mxu2 %v3728_v50 }
  0xfa   : > { %3639 = vmatmul.msk.bf16.vlgmr.msrb.gmra.mxu0 %vm2161_vm11, %v4528_v2  ;;  %2041 = vrot.lane.b32.xlu0 %v4528_v2, %s4221_s27  ;;  %1320 = vst [vmem:[#allocation2 + $0x2c] sm:$0x1] %v1319_v0  ;;  %v1028_v8 = vshrl.u32 %v948_v1, 16  ;;  %v1031_v9 = vshll.u32 %v948_v1, 16  ;;  %v850_v10 = vmul.f32 %v4433_v43, %v777_v3 }
  0xfb   : > { %v4539_v12 = vsel %vm1627_vm10, %v1658_v39, %v1662_v4 }
  0xfc   : > { %v1030_v16 = vrot.slane %v1028_v8, 7  ;;  %v885_v19 = vadd.f32 %v4440_v46, %v850_v10  ;;  %2123 = vrot.lane.b32.xlu1 %v4539_v12, %s4220_s26  ;;  %v483_v10 = vld [vmem:[#allocation2 + $0x54] sm:$0x1] }
  0xfd   : > { %v484_v13 = vsel %vm4395_vm2, 0, %v483_v10 }
  0xfe   : > { %v1033_v22 = vor.u32 %v1031_v9, %v1030_v16  ;;  %v917_v23 = vmax.f32 %v885_v19, 0.0  ;;  %v1034_v51 = vrot.slane %v1030_v16, 4  ;;  %485 = vst [vmem:[#allocation2 + $0x54] sm:$0x1] %v484_v13  ;;  %v1328_v19 = vld [vmem:[#allocation2 + $0x3c] sm:$0xf] }
 0x100   : > { %v1322_v28 = vsel %vm4411_vm6, %v1033_v22, %v1321_v21  ;;  %v949_v29 = vpack.c.bf16 %v917_v23, %v917_v23  ;;  %v4552_v32 = vld [vmem:[#allocation2 + $0x24] sm:$0xff]  }
 0x101   : > { %v4078_v33 = vld [vmem:[#allocation2 + $0x24] sm:$0xf0]  ;;  %1323 = vst [vmem:[#allocation2 + $0x30] sm:$0xf] %v1322_v28  ;;  %v780_v35 = vpop.f32.mrf.mxu0  ;;  %v1466_v36 = vld [vmem:[#allocation2 + $0x2c] sm:$0x1] }
 0x102   : > { %1822 = vrot.lane.b32.xlu0 %v4549_v30, %s4221_s27  ;;  %v1036_v38 = vshrl.u32 %v949_v29, 16  ;;  %v851_v40 = vmul.f32 %v4433_v43, %v780_v35  ;;  %v1598_v41 = vunpack.c.l.b16 %v1466_v36  ;;  %v4080_v42 = vor.u32 %v4079_v27, %v4078_v33  ;;  %v539_v28 = vld [vmem:[#allocation2 + $0x5c] sm:$0x1] }
 0x103   : > { %v1039_v47 = vshll.u32 %v949_v29, 16  ;;  %v1667_v54 = vshll.u32 %v4552_v32, 16  ;;  %v1665_v60 = vshrl.u32 %v4552_v32, 16 }
 0x104   : > { %v1038_v44 = vrot.slane %v1036_v38, 7  ;;  %v886_v48 = vadd.f32 %v4440_v46, %v851_v40  ;;  %1820 = vrot.lane.b32.xlu1 %v1639_v31, %s4221_s27  ;;  %v1614_v49 = vpack.c.b16 %v1598_v41, %v1598_v41  ;;  %v1910_v53 = vrot.slane %v4080_v42, 1 }
 0x105   : > { %v1669_v61 = vrot.slane %v1667_v54, 1  ;;  %v540_v38 = vsel %vm4402_vm4, 0, %v539_v28 }
 0x106   : > { %v1041_v55 = vor.u32 %v1039_v47, %v1038_v44  ;;  %v1043_v56 = vrot.slane %v1038_v44, 4  ;;  %v918_v57 = vmax.f32 %v886_v48, 0.0  ;;  %v1911_v58 = vrot.slane %v1614_v49, 1  ;;  %541 = vst [vmem:[#allocation2 + $0x5c] sm:$0x1] %v540_v38 }
 0x107   : > { %v1672_v62 = vshll.u32 %v1614_v49, 16  ;;  %v1670_v4 = vor.u32 %v1669_v61, %v1665_v60  ;;  %v1332_v48 = vld [vmem:[#allocation2 + $0x44] sm:$0x1] }
 0x108   : > { %v1042_v63 = vsel %vm4467_vm9, %v1034_v51, %v1041_v55  ;;  %v1326_v0 = vsel %vm4395_vm2, %v1043_v56, %v1325_v52  ;;  %v950_v1 = vpack.c.bf16 %v918_v57, %v918_v57  ;;  %v4569_v3 = vsel %vm1900_vm7, %v1910_v53, %v1911_v58  ;;  %v3925_v21 = vld [vmem:[#allocation2 + $0x30] sm:$0xe] }
 0x109   : > { %1324 = vst.msk [vmem:[#allocation2 + $0x34] sm:$0xf] %vm1297_vm5, %v1042_v63  ;;  %v782_v39 = vpop.f32.mrf.mxu0  ;;  %v1674_v5 = vrot.slane %v1672_v62, 1 }
 0x10a   : > { %3640 = vmatmul.msk.bf16.gmra.mxu0 %vm2161_vm11, %v4569_v3  ;;  %2043 = vrot.lane.b32.xlu0 %v4569_v3, %s4221_s27  ;;  %1327 = vst [vmem:[#allocation2 + $0x38] sm:$0x1] %v1326_v0  ;;  %v1045_v7 = vshrl.u32 %v950_v1, 16  ;;  %v1048_v8 = vshll.u32 %v950_v1, 16  ;;  %v852_v9 = vmul.f32 %v4433_v43, %v782_v39  ;;  %v486_v39 = vld [vmem:[#allocation2 + $0x60] sm:$0x1] }
 0x10b   : > { %v4578_v11 = vsel %vm1627_vm10, %v1670_v4, %v1674_v5  ;;  %v487_v5 = vsel %vm4395_vm2, 0, %v486_v39 }
 0x10c   : > { %v1047_v14 = vrot.slane %v1045_v7, 7  ;;  %v887_v16 = vadd.f32 %v4440_v46, %v852_v9  ;;  %2078 = vrot.lane.b32.xlu1 %v4552_v32, %s4219_s25  ;;  %2125 = vrot.lane.b32.xlu2 %v4578_v11, %s4220_s26  ;;  %488 = vst [vmem:[#allocation2 + $0x60] sm:$0x1] %v487_v5  ;;  %v1335_v9 = vld [vmem:[#allocation2 + $0x48] sm:$0xf] }
 0x10e   : > { %v1050_v59 = vor.u32 %v1048_v8, %v1047_v14  ;;  %v919_v20 = vmax.f32 %v887_v16, 0.0  ;;  %v1051_v47 = vrot.slane %v1047_v14, 4 }
 0x110   : > { %v1329_v22 = vsel %vm4411_vm6, %v1050_v59, %v1328_v19  ;;  %v951_v23 = vpack.c.bf16 %v919_v20, %v919_v20  ;;  %v3924_v25 = vld [vmem:[#allocation2 + $0x30] sm:$0xf0] }
 0x111   : > { %v4589_v27 = vld [vmem:[#allocation2 + $0x30] sm:$0xff]   ;;  %1330 = vst [vmem:[#allocation2 + $0x3c] sm:$0xf] %v1329_v22  ;;  %v785_v29 = vpop.f32.mrf.mxu0  ;;  %v1467_v31 = vld [vmem:[#allocation2 + $0x38] sm:$0x1]  ;;  %v3926_v33 = vor.u32 %v3925_v21, %v3924_v25 }
 0x112   : > { %1824 = vrot.lane.b32.xlu0 %v4539_v12, %s4221_s27  ;;  %v1679_v34 = vshll.u32 %v4589_v27, 16  ;;  %v1053_v35 = vshrl.u32 %v951_v23, 16  ;;  %v853_v36 = vmul.f32 %v4433_v43, %v785_v29  ;;  %v1599_v37 = vunpack.c.l.b16 %v1467_v31  ;;  %v542_v21 = vld [vmem:[#allocation2 + $0x68] sm:$0x1]  ;;  %v3708_v25 = vld [vmem:[%s5680_s4 + $0x78] sm:$0xff] }
 0x113   : > { %v1056_v41 = vshll.u32 %v951_v23, 16  ;;  %v1913_v49 = vrot.slane %v3926_v33, 1  ;;  %v1677_v55 = vshrl.u32 %v4589_v27, 16  ;;  %v543_v28 = vsel %vm4402_vm4, 0, %v542_v21  ;;  %2649 = vmatpush.bf16.msrb.mxu2 %v3708_v25  ;;  %v545_v21 = vld [vmem:[#allocation2 + $0x74] sm:$0x1] }
 0x114   : > { %v1055_v40 = vrot.slane %v1053_v35, 7  ;;  %v888_v42 = vadd.f32 %v4440_v46, %v853_v36  ;;  %1951 = vrot.lane.b32.xlu1 %v4499_v6, %s4219_s25  ;;  %1988 = vrot.lane.b32.xlu2 %v4510_v26, %s4220_s26  ;;  %v1615_v44 = vpack.c.b16 %v1599_v37, %v1599_v37  ;;  %v1681_v50 = vrot.slane %v1679_v34, 1  ;;  %544 = vst [vmem:[#allocation2 + $0x68] sm:$0x1] %v543_v28 }
 0x116   : > { %v1058_v51 = vor.u32 %v1056_v41, %v1055_v40  ;;  %v1060_v52 = vrot.slane %v1055_v40, 4  ;;  %v920_v53 = vmax.f32 %v888_v42, 0.0  ;;  %v1914_v54 = vrot.slane %v1615_v44, 1  ;;  %v1339_v41 = vld [vmem:[#allocation2 + $0x50] sm:$0x1] }
 0x117   : > { %v1684_v56 = vshll.u32 %v1615_v44, 16  ;;  %v1682_v61 = vor.u32 %v1681_v50, %v1677_v55 }
 0x118   : > { %v1059_v57 = vsel %vm4467_vm9, %v1051_v47, %v1058_v51  ;;  %v1333_v6 = vsel %vm4395_vm2, %v1060_v52, %v1332_v48  ;;  %v952_v26 = vpack.c.bf16 %v920_v53, %v920_v53  ;;  %v4608_v58 = vsel %vm1900_vm7, %v1913_v49, %v1914_v54  ;;  %v4175_v14 = vld [vmem:[#allocation2 + $0x3c] sm:$0xe] }
 0x119   : > { %1331 = vst.msk [vmem:[#allocation2 + $0x40] sm:$0xf] %vm1297_vm5, %v1059_v57  ;;  %v787_v60 = vpop.f32.mrf.mxu0  ;;  %v1686_v62 = vrot.slane %v1684_v56, 1 }
 0x11a   : > { %3641 = vmatmul.msk.bf16.gmra.mxu0 %vm2161_vm11, %v4608_v58  ;;  %2045 = vrot.lane.b32.xlu0 %v4608_v58, %s4221_s27  ;;  %1334 = vst [vmem:[#allocation2 + $0x44] sm:$0x1] %v1333_v6  ;;  %v1062_v63 = vshrl.u32 %v952_v26, 16  ;;  %v1065_v0 = vshll.u32 %v952_v26, 16  ;;  %v854_v1 = vmul.f32 %v4433_v43, %v787_v60 }
 0x11b   : > { %v4617_v4 = vsel %vm1627_vm10, %v1682_v61, %v1686_v62 }
 0x11c   : > { %v1064_v7 = vrot.slane %v1062_v63, 7  ;;  %v889_v8 = vadd.f32 %v4440_v46, %v854_v1  ;;  %2080 = vrot.lane.b32.xlu1 %v4589_v27, %s4219_s25  ;;  %2127 = vrot.lane.b32.xlu2 %v4617_v4, %s4220_s26  ;;  %v3707_v63 = vld [vmem:[%s5680_s4 + $0x70] sm:$0xff]  ;;  %v489_v1 = vld [vmem:[#allocation2 + $0x6c] sm:$0x1] }
 0x11d   : > { %2650 = vmatpush.bf16.msrb.mxu2 %v3707_v63 }
 0x11e   : > { %v1067_v10 = vor.u32 %v1065_v0, %v1064_v7  ;;  %v921_v13 = vmax.f32 %v889_v8, 0.0  ;;  %v1068_v40 = vrot.slane %v1064_v7, 4  ;;  %v490_v7 = vsel %vm4395_vm2, 0, %v489_v1  ;;  %v1342_v8 = vld [vmem:[#allocation2 + $0x54] sm:$0xf]  ;;  %v3705_v1 = vld [vmem:[%s5680_s4 + $0x60] sm:$0xff] }
 0x11f   : > { %491 = vst [vmem:[#allocation2 + $0x6c] sm:$0x1] %v490_v7 }
 0x120   : > { %v1336_v16 = vsel %vm4411_vm6, %v1067_v10, %v1335_v9  ;;  %v953_v19 = vpack.c.bf16 %v921_v13, %v921_v13  ;;  %v4628_v59 = vld [vmem:[#allocation2 + $0x3c] sm:$0xff]  }
 0x121   : > { %v4174_v20 = vld [vmem:[#allocation2 + $0x3c] sm:$0xf0]  ;;  %1337 = vst [vmem:[#allocation2 + $0x48] sm:$0xf] %v1336_v16  ;;  %v790_v22 = vpop.f32.mrf.mxu0  ;;  %v1468_v23 = vld [vmem:[#allocation2 + $0x44] sm:$0x1] }
 0x122   : > { %1826 = vrot.lane.b32.xlu0 %v4578_v11, %s4221_s27  ;;  %v1070_v29 = vshrl.u32 %v953_v19, 16  ;;  %v855_v31 = vmul.f32 %v4433_v43, %v790_v22  ;;  %v1600_v33 = vunpack.c.l.b16 %v1468_v23  ;;  %v4176_v34 = vor.u32 %v4175_v14, %v4174_v20 }
 0x123   : > { %v1073_v36 = vshll.u32 %v953_v19, 16  ;;  %v1691_v44 = vshll.u32 %v4628_v59, 16  ;;  %v1689_v51 = vshrl.u32 %v4628_v59, 16 }
 0x124   : > { %v1072_v35 = vrot.slane %v1070_v29, 7  ;;  %v890_v37 = vadd.f32 %v4440_v46, %v855_v31  ;;  %1953 = vrot.lane.b32.xlu1 %v4528_v2, %s4219_s25  ;;  %1990 = vrot.lane.b32.xlu2 %v4552_v32, %s4220_s26  ;;  %v1616_v38 = vpack.c.b16 %v1600_v33, %v1600_v33  ;;  %v1916_v42 = vrot.slane %v4176_v34, 1  ;;  %v3706_v34 = vld [vmem:[%s5680_s4 + $0x68] sm:$0xff] }
 0x125   : > { %v1693_v52 = vrot.slane %v1691_v44, 1  ;;  %2651 = vmatpush.bf16.msrb.mxu2 %v3706_v34 }
 0x126   : > { %v1075_v47 = vor.u32 %v1073_v36, %v1072_v35  ;;  %v1077_v48 = vrot.slane %v1072_v35, 4  ;;  %v922_v49 = vmax.f32 %v890_v37, 0.0  ;;  %v1917_v50 = vrot.slane %v1616_v38, 1 }
 0x127   : > { %v1696_v53 = vshll.u32 %v1616_v38, 16  ;;  %v1694_v6 = vor.u32 %v1693_v52, %v1689_v51  ;;  %v546_v35 = vsel %vm4402_vm4, 0, %v545_v21 }
 0x128   : > { %v1076_v2 = vsel %vm4467_vm9, %v1068_v40, %v1075_v47  ;;  %v1340_v54 = vsel %vm4395_vm2, %v1077_v48, %v1339_v41  ;;  %v954_v55 = vpack.c.bf16 %v922_v49, %v922_v49  ;;  %v4650_v56 = vsel %vm1900_vm7, %v1916_v42, %v1917_v50  ;;  %v3928_v13 = vld [vmem:[#allocation2 + $0x48] sm:$0xe]  ;;  %547 = vst [vmem:[#allocation2 + $0x74] sm:$0x1] %v546_v35  ;;  %v1346_v42 = vld [vmem:[#allocation2 + $0x5c] sm:$0x1]  ;;  %v810_v48 = vpop.f32.mrf.mxu1 }
 0x129   : > { %1338 = vst.msk [vmem:[#allocation2 + $0x4c] sm:$0xf] %vm1297_vm5, %v1076_v2  ;;  %v792_v57 = vpop.f32.mrf.mxu0  ;;  %v1698_v26 = vrot.slane %v1696_v53, 1  ;;  %2652 = vmatpush.bf16.msrb.mxu2 %v3705_v1 }
 0x12a   : > { %3642 = vmatmul.msk.bf16.gmra.mxu0 %vm2161_vm11, %v4650_v56  ;;  %2047 = vrot.lane.b32.xlu0 %v4650_v56, %s4221_s27  ;;  %1341 = vst [vmem:[#allocation2 + $0x50] sm:$0x1] %v1340_v54  ;;  %v1079_v60 = vshrl.u32 %v954_v55, 16  ;;  %v1082_v61 = vshll.u32 %v954_v55, 16  ;;  %v856_v62 = vmul.f32 %v4433_v43, %v792_v57 }
 0x12b   : > { %v4662_v0 = vsel %vm1627_vm10, %v1694_v6, %v1698_v26 }
 0x12c   : > { %v1081_v39 = vrot.slane %v1079_v60, 7  ;;  %v891_v5 = vadd.f32 %v4440_v46, %v856_v62  ;;  %2082 = vrot.lane.b32.xlu1 %v4628_v59, %s4219_s25  ;;  %2129 = vrot.lane.b32.xlu2 %v4662_v0, %s4220_s26  ;;  %v3700_v60 = vld [vmem:[%s5680_s4 + $0x38] sm:$0xff] }
 0x12d   : > { %2560 = vmatpush.bf16.msrb.mxu1 %v3700_v60 }
 0x12e   : > { %v1084_v9 = vor.u32 %v1082_v61, %v1081_v39  ;;  %v923_v10 = vmax.f32 %v891_v5, 0.0  ;;  %v1085_v41 = vrot.slane %v1081_v39, 4  ;;  %v492_v5 = vld [vmem:[#allocation2 + $0x78] sm:$0x1] }
 0x130   : > { %v1343_v14 = vsel %vm4411_vm6, %v1084_v9, %v1342_v8  ;;  %v955_v16 = vpack.c.bf16 %v923_v10, %v923_v10  ;;  %v3927_v19 = vld [vmem:[#allocation2 + $0x48] sm:$0xf0]  ;;  %v493_v9 = vsel %vm4395_vm2, 0, %v492_v5  ;;  %v1349_v10 = vld [vmem:[#allocation2 + $0x60] sm:$0xf] }
 0x131   : > { %v4673_v20 = vld [vmem:[#allocation2 + $0x48] sm:$0xff]   ;;  %1344 = vst [vmem:[#allocation2 + $0x54] sm:$0xf] %v1343_v14  ;;  %v795_v22 = vpop.f32.mrf.mxu0  ;;  %v1469_v23 = vld [vmem:[#allocation2 + $0x50] sm:$0x1]  ;;  %v3929_v25 = vor.u32 %v3928_v13, %v3927_v19  ;;  %v812_v13 = vpop.f32.mrf.mxu1 }
 0x132   : > { %1828 = vrot.lane.b32.xlu0 %v4617_v4, %s4221_s27  ;;  %v1703_v28 = vshll.u32 %v4673_v20, 16  ;;  %v1087_v29 = vshrl.u32 %v955_v16, 16  ;;  %v857_v31 = vmul.f32 %v4433_v43, %v795_v22  ;;  %v1601_v33 = vunpack.c.l.b16 %v1469_v23  ;;  %494 = vst [vmem:[#allocation2 + $0x78] sm:$0x1] %v493_v9  ;;  %v3699_v14 = vld [vmem:[%s5680_s4 + $0x30] sm:$0xff]  ;;  %v3704_v22 = vld [vmem:[%s5680_s4 + $0x58] sm:$0xff] }
 0x133   : > { %v1090_v37 = vshll.u32 %v955_v16, 16  ;;  %v1919_v44 = vrot.slane %v3929_v25, 1  ;;  %v1701_v53 = vshrl.u32 %v4673_v20, 16  ;;  %2561 = vmatpush.bf16.msrb.mxu1 %v3699_v14  ;;  %2653 = vmatpush.bf16.msrb.mxu2 %v3704_v22 }
 0x134   : > { %v1089_v36 = vrot.slane %v1087_v29, 7  ;;  %v892_v38 = vadd.f32 %v4440_v46, %v857_v31  ;;  %1955 = vrot.lane.b32.xlu1 %v4569_v3, %s4219_s25  ;;  %1992 = vrot.lane.b32.xlu2 %v4589_v27, %s4220_s26  ;;  %v1617_v40 = vpack.c.b16 %v1601_v33, %v1601_v33  ;;  %v1705_v47 = vrot.slane %v1703_v28, 1  ;;  %v548_v33 = vld [vmem:[#allocation2 + $0x80] sm:$0x1] }
 0x136   : > { %v1092_v49 = vor.u32 %v1090_v37, %v1089_v36  ;;  %v1094_v50 = vrot.slane %v1089_v36, 4  ;;  %v924_v51 = vmax.f32 %v892_v38, 0.0  ;;  %v1920_v52 = vrot.slane %v1617_v40, 1  ;;  %v495_v36 = vld [vmem:[#allocation2 + $0x84] sm:$0x1] }
 0x137   : > { %v1708_v2 = vshll.u32 %v1617_v40, 16  ;;  %v1706_v6 = vor.u32 %v1705_v47, %v1701_v53  ;;  %v863_v37 = vmul.f32 %v4433_v43, %v810_v48 }
 0x138   : > { %v1093_v3 = vsel %vm4467_vm9, %v1085_v41, %v1092_v49  ;;  %v1347_v27 = vsel %vm4395_vm2, %v1094_v50, %v1346_v42  ;;  %v956_v54 = vpack.c.bf16 %v924_v51, %v924_v51  ;;  %v4695_v55 = vsel %vm1900_vm7, %v1919_v44, %v1920_v52  ;;  %v4178_v21 = vld [vmem:[#allocation2 + $0x54] sm:$0xe]  ;;  %v3698_v44 = vld [vmem:[%s5680_s4 + $0x28] sm:$0xff] }
 0x139   : > { %1345 = vst.msk [vmem:[#allocation2 + $0x58] sm:$0xf] %vm1297_vm5, %v1093_v3  ;;  %v797_v57 = vpop.f32.mrf.mxu0  ;;  %v1710_v26 = vrot.slane %v1708_v2, 1  ;;  %v496_v49 = vsel %vm4395_vm2, 0, %v495_v36  ;;  %v898_v50 = vadd.f32 %v4440_v46, %v863_v37  ;;  %v3703_v51 = vld [vmem:[%s5680_s4 + $0x50] sm:$0xff]  ;;  %v549_v3 = vsel %vm4402_vm4, 0, %v548_v33  ;;  %2562 = vmatpush.bf16.msrb.mxu1 %v3698_v44 }
 0x13a   : > { %3643 = vmatmul.msk.bf16.gmra.mxu0 %vm2161_vm11, %v4695_v55  ;;  %2049 = vrot.lane.b32.xlu0 %v4695_v55, %s4221_s27  ;;  %1348 = vst [vmem:[#allocation2 + $0x5c] sm:$0x1] %v1347_v27  ;;  %v1096_v61 = vshrl.u32 %v956_v54, 16  ;;  %v1099_v62 = vshll.u32 %v956_v54, 16  ;;  %v858_v63 = vmul.f32 %v4433_v43, %v797_v57  ;;  %v1353_v52 = vld [vmem:[#allocation2 + $0x68] sm:$0x1] }
 0x13b   : > { %v4710_v39 = vsel %vm1627_vm10, %v1706_v6, %v1710_v26  ;;  %497 = vst [vmem:[#allocation2 + $0x84] sm:$0x1] %v496_v49  ;;  %v930_v6 = vmax.f32 %v898_v50, 0.0  ;;  %2654 = vmatpush.bf16.msrb.mxu2 %v3703_v51  ;;  %v1356_v51 = vld [vmem:[#allocation2 + $0x6c] sm:$0xf] }
 0x13c   : > { %v4712_v7 = vrot.slane %v1096_v61, 7  ;;  %v893_v8 = vadd.f32 %v4440_v46, %v858_v63  ;;  %2084 = vrot.lane.b32.xlu1 %v4673_v20, %s4219_s25  ;;  %2131 = vrot.lane.b32.xlu2 %v4710_v39, %s4220_s26  ;;  %550 = vst [vmem:[#allocation2 + $0x80] sm:$0x1] %v549_v3  ;;  %v554_v3 = vld [vmem:[#allocation2 + $0x98] sm:$0x1] }
 0x13d   : > { %v962_v5 = vpack.c.bf16 %v930_v6, %v930_v6 }
 0x13e   : > { %v1101_v16 = vor.u32 %v1099_v62, %v4712_v7  ;;  %v925_v19 = vmax.f32 %v893_v8, 0.0  ;;  %v1102_v23 = vrot.slane %v4712_v7, 4  ;;  %v3697_v62 = vld [vmem:[%s5680_s4 + $0x20] sm:$0xff]  ;;  %v864_v7 = vmul.f32 %v4433_v43, %v812_v13  ;;  %v3702_v8 = vld [vmem:[%s5680_s4 + $0x48] sm:$0xff] }
 0x13f   : > { %v1150_v22 = vshll.u32 %v962_v5, 16  ;;  %2655 = vmatpush.bf16.msrb.mxu2 %v3702_v8  ;;  %2563 = vmatpush.bf16.msrb.mxu1 %v3697_v62 }
 0x140   : > { %v1350_v25 = vsel %vm4411_vm6, %v1101_v16, %v1349_v10  ;;  %v957_v28 = vpack.c.bf16 %v925_v19, %v925_v19  ;;  %v4731_v29 = vld [vmem:[#allocation2 + $0x54] sm:$0xff]  }
 0x141   : > { %v4177_v31 = vld [vmem:[#allocation2 + $0x54] sm:$0xf0]  ;;  %1351 = vst [vmem:[#allocation2 + $0x60] sm:$0xf] %v1350_v25  ;;  %v800_v34 = vpop.f32.mrf.mxu0  ;;  %v1470_v35 = vld [vmem:[#allocation2 + $0x5c] sm:$0x1] }
 0x142   : > { %1830 = vrot.lane.b32.xlu0 %v4662_v0, %s4221_s27  ;;  %v1104_v38 = vshrl.u32 %v957_v28, 16  ;;  %v1107_v40 = vshll.u32 %v957_v28, 16  ;;  %v859_v41 = vmul.f32 %v4433_v43, %v800_v34  ;;  %v1602_v42 = vunpack.c.l.b16 %v1470_v35  ;;  %v551_v34 = vld [vmem:[#allocation2 + $0x8c] sm:$0x1]  ;;  %v4786_v35 = vld [vmem:[%s5679_s3] ss:$0 sm:$0xff] }
 0x143   : > { %v4179_v47 = vor.u32 %v4178_v21, %v4177_v31  ;;  %v1713_v54 = vshrl.u32 %v4731_v29, 16  ;;  %v1715_v57 = vshll.u32 %v4731_v29, 16  ;;  %v1147_v21 = vshrl.u32 %v962_v5, 16  ;;  %v4780_v31 = vld [vmem:[%s5678_s2] ss:$0 sm:$0xff] }
 0x144   : > { %v1106_v48 = vrot.slane %v1104_v38, 7  ;;  %v894_v53 = vadd.f32 %v4440_v46, %v859_v41  ;;  %1957 = vrot.lane.b32.xlu1 %v4608_v58, %s4219_s25  ;;  %1994 = vrot.lane.b32.xlu2 %v4628_v59, %s4220_s26  ;;  %v1618_v2 = vpack.c.b16 %v1602_v42, %v1602_v42  ;;  %v815_v46 = vpop.f32.mrf.mxu1  ;;  %v899_v36 = vadd.f32 %v4786_v35, %v864_v7  ;;  %v498_v41 = vld [vmem:[#allocation2 + $0x90] sm:$0x1]  ;;  %v1370_v49 = vld [vmem:[#allocation2 + $0x84] sm:$0xf] }
 0x145   : > { %v1922_v27 = vrot.slane %v4179_v47, 1  ;;  %v1717_v63 = vrot.slane %v1715_v57, 1  ;;  %v4792_v38 = vrot.slane %v1147_v21, 7  ;;  %v865_v42 = vmul.f32 %v4780_v31, %v815_v46 }
 0x146   : > { %v1109_v26 = vor.u32 %v1107_v40, %v1106_v48  ;;  %v1111_v58 = vrot.slane %v1106_v48, 4  ;;  %v926_v60 = vmax.f32 %v894_v53, 0.0  ;;  %v1923_v61 = vrot.slane %v1618_v2, 1 }
 0x147   : > { %v1720_v1 = vshll.u32 %v1618_v2, 16  ;;  %v1718_v13 = vor.u32 %v1717_v63, %v1713_v54  ;;  %v552_v40 = vsel %vm4402_vm4, 0, %v551_v34  ;;  %v931_v50 = vmax.f32 %v899_v36, 0.0  ;;  %v3701_v2 = vld [vmem:[%s5680_s4 + $0x40] sm:$0xff] }
 0x148   : > { %v1110_v9 = vsel %vm4467_vm9, %v1102_v23, %v1109_v26  ;;  %v1354_v10 = vsel %vm4395_vm2, %v1111_v58, %v1353_v52  ;;  %v958_v14 = vpack.c.bf16 %v926_v60, %v926_v60  ;;  %v4767_v16 = vsel %vm1900_vm7, %v1922_v27, %v1923_v61  ;;  %v3696_v23 = vld [vmem:[%s5680_s4 + $0x18] sm:$0xff]  ;;  %553 = vst [vmem:[#allocation2 + $0x8c] sm:$0x1] %v552_v40  ;;  %v3695_v26 = vld [vmem:[%s5680_s4 + $0x10] sm:$0xff]  ;;  %v3931_v61 = vld [vmem:[#allocation2 + $0x60] sm:$0xe] }
 0x149   : > { %1352 = vst.msk [vmem:[#allocation2 + $0x64] sm:$0xf] %vm1297_vm5, %v1110_v9  ;;  %v802_v43 = vpop.f32.mrf.mxu0  ;;  %v1722_v19 = vrot.slane %v1720_v1, 1  ;;  %v1152_v48 = vor.u32 %v1150_v22, %v4792_v38  ;;  %v499_v52 = vsel %vm4395_vm2, 0, %v498_v41  ;;  %v900_v53 = vadd.f32 %v4786_v35, %v865_v42  ;;  %2564 = vmatpush.bf16.msrb.mxu1 %v3696_v23  ;;  %2656 = vmatpush.bf16.msrb.mxu2 %v3701_v2  ;;  %v4833_v41 = vpop.permute.xlu2 %1949 }
 0x14a   : > { %3644 = vmatmul.msk.bf16.gmra.mxu0 %vm2161_vm11, %v4767_v16  ;;  %2051 = vrot.lane.b32.xlu0 %v4767_v16, %s4221_s27  ;;  %1355 = vst [vmem:[#allocation2 + $0x68] sm:$0x1] %v1354_v10  ;;  %v1113_v25 = vshrl.u32 %v958_v14, 16  ;;  %v1116_v28 = vshll.u32 %v958_v14, 16  ;;  %v860_v33 = vmul.f32 %v4780_v31, %v802_v43  ;;  %v1153_v57 = vrot.slane %v4792_v38, 4 }
 0x14b   : > { %v4790_v37 = vsel %vm1627_vm10, %v1718_v13, %v1722_v19  ;;  %v963_v6 = vpack.c.bf16 %v931_v50, %v931_v50  ;;  %500 = vst [vmem:[#allocation2 + $0x90] sm:$0x1] %v499_v52  ;;  %v1371_v60 = vsel %vm4411_vm6, %v1152_v48, %v1370_v49  ;;  %v932_v62 = vmax.f32 %v900_v53, 0.0  ;;  %v1360_v48 = vld [vmem:[#allocation2 + $0x74] sm:$0x1] }
 0x14c   : > { %v4797_v44 = vrot.slane %v1113_v25, 7  ;;  %v895_v47 = vadd.f32 %v4786_v35, %v860_v33  ;;  %2086 = vrot.lane.b32.xlu1 %v4731_v29, %s4219_s25  ;;  %2133 = vrot.lane.b32.xlu2 %v4790_v37, %s4220_s26  ;;  %v817_v46 = vpop.f32.mrf.mxu1  ;;  %v555_v63 = vsel %vm4402_vm4, 0, %v554_v3  ;;  %1372 = vst [vmem:[#allocation2 + $0x84] sm:$0xf] %v1371_v60  ;;  %v3694_v33 = vld [vmem:[%s5680_s4 + $0x8] sm:$0xff] }
 0x14d   : > { %v1155_v9 = vshrl.u32 %v963_v6, 16  ;;  %v1158_v13 = vshll.u32 %v963_v6, 16  ;;  %v964_v19 = vpack.c.bf16 %v932_v62, %v932_v62  ;;  %v866_v21 = vmul.f32 %v4780_v31, %v817_v46  ;;  %556 = vst [vmem:[#allocation2 + $0x98] sm:$0x1] %v555_v63  ;;  %2565 = vmatpush.bf16.msrb.mxu1 %v3695_v26 }
 0x14e   : > { %v1118_v27 = vor.u32 %v1116_v28, %v4797_v44  ;;  %v927_v54 = vmax.f32 %v895_v47, 0.0  ;;  %v1119_v58 = vrot.slane %v4797_v44, 4 }
 0x14f   : > { %v1157_v36 = vrot.slane %v1155_v9, 7  ;;  %v1164_v40 = vshrl.u32 %v964_v19, 16  ;;  %v1374_v49 = vld [vmem:[#allocation2 + $0x8c] sm:$0x1]  ;;  %v1167_v50 = vshll.u32 %v964_v19, 16 }
 0x150   : > { %v1357_v1 = vsel %vm4411_vm6, %v1118_v27, %v1356_v51  ;;  %v959_v5 = vpack.c.bf16 %v927_v54, %v927_v54  ;;  %v3930_v7 = vld [vmem:[#allocation2 + $0x60] sm:$0xf0]  ;;  %v820_v51 = vpop.f32.mrf.mxu2 }
 0x151   : > { %v4823_v8 = vld [vmem:[#allocation2 + $0x60] sm:$0xff]   ;;  %1358 = vst [vmem:[#allocation2 + $0x6c] sm:$0xf] %v1357_v1  ;;  %v805_v10 = vpop.f32.mrf.mxu0  ;;  %v1471_v14 = vld [vmem:[#allocation2 + $0x68] sm:$0x1]  ;;  %v3932_v43 = vor.u32 %v3931_v61, %v3930_v7  ;;  %v1160_v52 = vor.u32 %v1158_v13, %v1157_v36  ;;  %v1162_v53 = vrot.slane %v1157_v36, 4  ;;  %2566 = vmatpush.bf16.msrb.mxu1 %v3694_v33 }
 0x152   : > { %1832 = vrot.lane.b32.xlu0 %v4710_v39, %s4221_s27  ;;  %v1121_v22 = vshrl.u32 %v959_v5, 16  ;;  %v1124_v23 = vshll.u32 %v959_v5, 16  ;;  %v861_v25 = vmul.f32 %v4780_v31, %v805_v10  ;;  %v1603_v28 = vunpack.c.l.b16 %v1471_v14  ;;  %v1377_v7 = vld [vmem:[#allocation2 + $0x90] sm:$0xf] }
 0x153   : > { %v1925_v34 = vrot.slane %v3932_v43, 1  ;;  %v1727_v38 = vshll.u32 %v4823_v8, 16  ;;  %v4840_v3 = vrot.slane %v1164_v40, 7  ;;  %v1375_v26 = vsel %vm4395_vm2, %v1162_v53, %v1374_v49  ;;  %v557_v40 = vld [vmem:[#allocation2 + $0xa4] sm:$0x1] }
 0x154   : > { %v1123_v42 = vrot.slane %v1121_v22, 7  ;;  %v896_v44 = vadd.f32 %v4786_v35, %v861_v25  ;;  %1959 = vrot.lane.b32.xlu1 %v4650_v56, %s4219_s25  ;;  %1996 = vrot.lane.b32.xlu2 %v4673_v20, %s4220_s26  ;;  %v1619_v47 = vpack.c.b16 %v1603_v28, %v1603_v28  ;;  %v3693_v56 = vld [vmem:[%s5680_s4] sm:$0xff]  ;;  %v1161_v20 = vsel %vm4467_vm9, %v1153_v57, %v1160_v52  ;;  %v501_v57 = vld [vmem:[#allocation2 + $0x9c] sm:$0x1] }
 0x155   : > { %v1729_v2 = vrot.slane %v1727_v38, 1  ;;  %v1725_v60 = vshrl.u32 %v4823_v8, 16  ;;  %1373 = vst.msk [vmem:[#allocation2 + $0x88] sm:$0xf] %vm1297_vm5, %v1161_v20  ;;  %v1169_v14 = vor.u32 %v1167_v50, %v4840_v3  ;;  %v901_v22 = vadd.f32 %v4786_v35, %v866_v21  ;;  %2567 = vmatpush.bf16.msrb.mxu1 %v3693_v56 }
 0x156   : > { %v1126_v27 = vor.u32 %v1124_v23, %v1123_v42  ;;  %v1128_v54 = vrot.slane %v1123_v42, 4  ;;  %v928_v6 = vmax.f32 %v896_v44, 0.0  ;;  %v1926_v46 = vrot.slane %v1619_v47, 1  ;;  %1376 = vst [vmem:[#allocation2 + $0x8c] sm:$0x1] %v1375_v26 }
 0x157   : > { %v1732_v61 = vshll.u32 %v1619_v47, 16  ;;  %v1730_v9 = vor.u32 %v1729_v2, %v1725_v60  ;;  %v1378_v28 = vsel %vm4411_vm6, %v1169_v14, %v1377_v7  ;;  %v933_v21 = vmax.f32 %v901_v22, 0.0  ;;  %v1363_v44 = vld [vmem:[#allocation2 + $0x78] sm:$0xf] }
 0x158   : > { %v1127_v62 = vsel %vm4467_vm9, %v1119_v58, %v1126_v27  ;;  %v1361_v63 = vsel %vm4395_vm2, %v1128_v54, %v1360_v48  ;;  %v960_v1 = vpack.c.bf16 %v928_v6, %v928_v6  ;;  %v4855_v5 = vsel %vm1900_vm7, %v1925_v34, %v1926_v46  ;;  %v4181_v33 = vld [vmem:[#allocation2 + $0x6c] sm:$0xe]  ;;  %1379 = vst [vmem:[#allocation2 + $0x90] sm:$0xf] %v1378_v28  ;;  %v822_v42 = vpop.f32.mrf.mxu2  ;;  %v4886_v48 = vpop.permute.xlu2 %1986  ;;  %v1381_v22 = vld [vmem:[#allocation2 + $0x98] sm:$0x1] }
 0x159   : > { %1359 = vst.msk [vmem:[#allocation2 + $0x70] sm:$0xf] %vm1297_vm5, %v1127_v62  ;;  %v807_v58 = vpop.f32.mrf.mxu0  ;;  %v1734_v10 = vrot.slane %v1732_v61, 1  ;;  %v502_v34 = vsel %vm4395_vm2, 0, %v501_v57  ;;  %v867_v47 = vmul.f32 %v4780_v31, %v820_v51  ;;  %v558_v49 = vsel %vm4402_vm4, 0, %v557_v40 }
 0x15a   : > { %3645 = vmatmul.msk.bf16.gmra.mxu0 %vm2161_vm11, %v4855_v5  ;;  %2053 = vrot.lane.b32.xlu0 %v4855_v5, %s4221_s27  ;;  %1362 = vst [vmem:[#allocation2 + $0x74] sm:$0x1] %v1361_v63  ;;  %v1130_v43 = vshrl.u32 %v960_v1, 16  ;;  %v1133_v13 = vshll.u32 %v960_v1, 16  ;;  %v862_v19 = vmul.f32 %v4780_v31, %v807_v58  ;;  %v868_v50 = vmul.f32 %v4780_v31, %v822_v42 }
 0x15b   : > { %v4866_v23 = vpop.permute.xlu0 %2039  ;;  %v4869_v25 = vsel %vm1627_vm10, %v1730_v9, %v1734_v10  ;;  %503 = vst [vmem:[#allocation2 + $0x9c] sm:$0x1] %v502_v34  ;;  %v965_v2 = vpack.c.bf16 %v933_v21, %v933_v21  ;;  %v1170_v27 = vrot.slane %v4840_v3, 4  ;;  %v902_v54 = vadd.f32 %v4786_v35, %v867_v47  ;;  %v1367_v34 = vld [vmem:[#allocation2 + $0x80] sm:$0x1] }
 0x15c   : > { %v4875_v36 = vrot.slane %v1130_v43, 7  ;;  %v897_v38 = vadd.f32 %v4786_v35, %v862_v19  ;;  %2088 = vrot.lane.b32.xlu1 %v4823_v8, %s4219_s25  ;;  %2135 = vrot.lane.b32.xlu2 %v4869_v25, %s4220_s26  ;;  %559 = vst [vmem:[#allocation2 + $0xa4] sm:$0x1] %v558_v49  ;;  %v903_v6 = vadd.f32 %v4786_v35, %v868_v50  ;;  %v504_v50 = vld [vmem:[#allocation2 + $0xa8] sm:$0x1] }
 0x15d   : > { %v1172_v26 = vshrl.u32 %v965_v2, 16  ;;  %v1175_v60 = vshll.u32 %v965_v2, 16  ;;  %v934_v62 = vmax.f32 %v902_v54, 0.0 }
 0x15e   : > { %v1135_v52 = vor.u32 %v1133_v13, %v4875_v36  ;;  %v929_v53 = vmax.f32 %v897_v38, 0.0  ;;  %v935_v3 = vmax.f32 %v903_v6, 0.0  ;;  %v1136_v58 = vrot.slane %v4875_v36, 4 }
 0x15f   : > { %v1174_v57 = vrot.slane %v1172_v26, 7  ;;  %v966_v14 = vpack.c.bf16 %v934_v62, %v934_v62 }
 0x160   : > { %v1364_v51 = vsel %vm4411_vm6, %v1135_v52, %v1363_v44  ;;  %v961_v46 = vpack.c.bf16 %v929_v53, %v929_v53  ;;  %v4894_v56 = vld [vmem:[#allocation2 + $0x6c] sm:$0xff]   ;;  %v967_v28 = vpack.c.bf16 %v935_v3, %v935_v3 }
 0x161   : > { %v4180_v20 = vld [vmem:[#allocation2 + $0x6c] sm:$0xf0]  ;;  %1365 = vst [vmem:[#allocation2 + $0x78] sm:$0xf] %v1364_v51  ;;  %v1472_v61 = vld [vmem:[#allocation2 + $0x74] sm:$0x1]  ;;  %v1177_v19 = vor.u32 %v1175_v60, %v1174_v57 }
 0x162   : > { %1834 = vrot.lane.b32.xlu0 %v4790_v37, %s4221_s27  ;;  %v1138_v63 = vshrl.u32 %v961_v46, 16  ;;  %v1141_v1 = vshll.u32 %v961_v46, 16  ;;  %v1604_v7 = vunpack.c.l.b16 %v1472_v61  ;;  %v4182_v10 = vor.u32 %v4181_v33, %v4180_v20  ;;  %v825_v33 = vpop.f32.mrf.mxu2  ;;  %v1384_v62 = vld [vmem:[#allocation2 + $0x9c] sm:$0xf] }
 0x163   : > { %v2077_v9 = vpop.permute.xlu0 %2076  ;;  %v1179_v21 = vrot.slane %v1174_v57, 4  ;;  %v1737_v36 = vshrl.u32 %v4894_v56, 16  ;;  %v1739_v40 = vshll.u32 %v4894_v56, 16  ;;  %v1178_v49 = vsel %vm4467_vm9, %v1170_v27, %v1177_v19  ;;  %v3937_v19 = vld [vmem:[#allocation2 + $0x90] sm:$0xe] }
 0x164   : > { %v1140_v43 = vrot.slane %v1138_v63, 7  ;;  %1961 = vrot.lane.b32.xlu1 %v4695_v55, %s4219_s25  ;;  %1998 = vrot.lane.b32.xlu2 %v4731_v29, %s4220_s26  ;;  %v1620_v13 = vpack.c.b16 %v1604_v7, %v1604_v7  ;;  %v1928_v38 = vrot.slane %v4182_v10, 1  ;;  %1380 = vst.msk [vmem:[#allocation2 + $0x94] sm:$0xf] %vm1297_vm5, %v1178_v49  ;;  %v1181_v54 = vshrl.u32 %v966_v14, 16 }
 0x165   : > { %v1382_v52 = vsel %vm4395_vm2, %v1179_v21, %v1381_v22  ;;  %v1741_v53 = vrot.slane %v1739_v40, 1  ;;  %v1184_v27 = vshll.u32 %v966_v14, 16  ;;  %v1189_v61 = vshrl.u32 %v967_v28, 16 }
 0x166   : > { %v1143_v42 = vor.u32 %v1141_v1, %v1140_v43  ;;  %v1145_v44 = vrot.slane %v1140_v43, 4  ;;  %v4905_v47 = vpop.permute.xlu2 %2125  ;;  %v1929_v55 = vrot.slane %v1620_v13, 1  ;;  %v1744_v2 = vshll.u32 %v1620_v13, 16  ;;  %1383 = vst [vmem:[#allocation2 + $0x98] sm:$0x1] %v1382_v52 }
 0x167   : > { %v1742_v20 = vor.u32 %v1741_v53, %v1737_v36  ;;  %v1183_v60 = vrot.slane %v1181_v54, 7  ;;  %v1192_v3 = vshll.u32 %v967_v28, 16  ;;  %v505_v63 = vsel %vm4395_vm2, 0, %v504_v50  ;;  %v1388_v43 = vld [vmem:[#allocation2 + $0xa4] sm:$0x1] }
 0x168   : > { %v1144_v6 = vsel %vm4467_vm9, %v1136_v58, %v1143_v42  ;;  %v1368_v51 = vsel %vm4395_vm2, %v1145_v44, %v1367_v34  ;;  %v4917_v46 = vsel %vm1900_vm7, %v1928_v38, %v1929_v55  ;;  %v1746_v26 = vrot.slane %v1744_v2, 1  ;;  %506 = vst [vmem:[#allocation2 + $0xa8] sm:$0x1] %v505_v63  ;;  %v3934_v50 = vld [vmem:[#allocation2 + $0x78] sm:$0xe] }
 0x169   : > { %1366 = vst.msk [vmem:[#allocation2 + $0x7c] sm:$0xf] %vm1297_vm5, %v1144_v6  ;;  %v869_v1 = vmul.f32 %v4780_v31, %v825_v33  ;;  %v1186_v58 = vor.u32 %v1184_v27, %v1183_v60  ;;  %v1187_v10 = vrot.slane %v1183_v60, 4  ;;  %v1191_v14 = vrot.slane %v1189_v61, 7  ;;  %v4959_v60 = vld [vmem:[#allocation2 + $0x84] sm:$0xf0] }
 0x16a   : > { %3646 = vmatmul.msk.bf16.gmra.mxu0 %vm2161_vm11, %v4917_v46  ;;  %2055 = vrot.lane.b32.xlu0 %v4917_v46, %s4221_s27  ;;  %1369 = vst [vmem:[#allocation2 + $0x80] sm:$0x1] %v1368_v51  ;;  %v4930_v57 = vsel %vm1627_vm10, %v1742_v20, %v1746_v26  ;;  %v2278_v22 = vsel %vm2161_vm11, %v4549_v30, %v4866_v23  ;;  %v827_v21 = vpop.f32.mrf.mxu2  ;;  %v4957_v26 = vld [vmem:[#allocation2 + $0x84] sm:$0xff]  }
 0x16b   : > { %v904_v13 = vadd.f32 %v4786_v35, %v869_v1  ;;  %v1385_v28 = vsel %vm4411_vm6, %v1186_v58, %v1384_v62  ;;  %v1194_v34 = vor.u32 %v1192_v3, %v1191_v14  ;;  %v1196_v38 = vrot.slane %v1191_v14, 4  ;;  %v3936_v44 = vld [vmem:[#allocation2 + $0x90] sm:$0xf0] }
 0x16c   : > { %v4927_v7 = vpop.permute.xlu0 %2041  ;;  %2090 = vrot.lane.b32.xlu1 %v4894_v56, %s4219_s25  ;;  %2137 = vrot.lane.b32.xlu2 %v4930_v57, %s4220_s26  ;;  %v2325_v36 = vsel %vm2194_vm12, %v2278_v22, %v2077_v9  ;;  %1386 = vst [vmem:[#allocation2 + $0x9c] sm:$0xf] %v1385_v28  ;;  %v870_v55 = vmul.f32 %v4780_v31, %v827_v21  ;;  %v560_v9 = vld [vmem:[#allocation2 + $0xb0] sm:$0x1] }
 0x16d   : > { %v936_v42 = vmax.f32 %v904_v13, 0.0  ;;  %v1195_v30 = vsel %vm4467_vm9, %v1187_v10, %v1194_v34  ;;  %v1389_v23 = vsel %vm4395_vm2, %v1196_v38, %v1388_v43  ;;  %v1475_v52 = vld [vmem:[#allocation2 + $0x98] sm:$0x1]  ;;  %v3938_v53 = vor.u32 %v3937_v19, %v3936_v44  ;;  %v4070_v44 = vld [vmem:[#allocation2] sm:$0xff]  }
 0x16e   : > { %v2124_v40 = vpop.permute.xlu1 %2123  ;;  %v4943_v33 = vpop.permute.xlu2 %1988  ;;  %1387 = vst.msk [vmem:[#allocation2 + $0xa0] sm:$0xf] %vm1297_vm5, %v1195_v30  ;;  %v1607_v51 = vunpack.c.l.b16 %v1475_v52  ;;  %v905_v61 = vadd.f32 %v4786_v35, %v870_v55  ;;  %v561_v22 = vsel %vm4402_vm4, 0, %v560_v9  ;;  %v507_v52 = vld [vmem:[#allocation2 + $0xb4] sm:$0x1] }
 0x16f   : > { %v2357_v49 = vsel %vm2227_vm13, %v2325_v36, %v2124_v40  ;;  %v968_v6 = vpack.c.bf16 %v936_v42, %v936_v42  ;;  %1390 = vst [vmem:[#allocation2 + $0xa4] sm:$0x1] %v1389_v23  ;;  %v1937_v14 = vrot.slane %v3938_v53, 1  ;;  %v1391_v19 = vld [vmem:[#allocation2 + $0xa8] sm:$0xf] }
 0x170   : > { %2657 = vmatmul.bf16.vlgmr.msrb.gmra.mxu2 %v2357_v49  ;;  %v3933_v2 = vld [vmem:[#allocation2 + $0x78] sm:$0xf0]  ;;  %v4964_v10 = vpack.c.b16 %v1607_v51, %v1607_v51  ;;  %562 = vst [vmem:[#allocation2 + $0xb0] sm:$0x1] %v561_v22  ;;  %v937_v38 = vmax.f32 %v905_v61, 0.0 }
 0x171   : > { %v4951_v54 = vld [vmem:[#allocation2 + $0x78] sm:$0xff]   ;;  %v1473_v27 = vld [vmem:[#allocation2 + $0x80] sm:$0x1]  ;;  %v3935_v3 = vor.u32 %v3934_v50, %v3933_v2  ;;  %v1198_v63 = vshrl.u32 %v968_v6, 16  ;;  %v1201_v1 = vshll.u32 %v968_v6, 16 }
 0x172   : > { %1836 = vrot.lane.b32.xlu0 %v4869_v25, %s4221_s27  ;;  %v1751_v20 = vshll.u32 %v4951_v54, 16  ;;  %v1605_v62 = vunpack.c.l.b16 %v1473_v27  ;;  %v1938_v34 = vrot.slane %v4964_v10, 1  ;;  %v1749_v49 = vshrl.u32 %v4951_v54, 16  ;;  %v1474_v50 = vld [vmem:[#allocation2 + $0x8c] sm:$0x1]  ;;  %v830_v53 = vpop.f32.mrf.mxu2 }
 0x173   : > { %v4970_v13 = vrot.slane %v1198_v63, 7  ;;  %v1931_v36 = vrot.slane %v3935_v3, 1  ;;  %v969_v23 = vpack.c.bf16 %v937_v38, %v937_v38  ;;  %v4990_v27 = vld [vmem:[#allocation2 + $0x84] sm:$0xe]  ;;  %v4184_v22 = vld [vmem:[#allocation2 + $0x9c] sm:$0xe] }
 0x174   : > { %v4962_v58 = vpop.permute.xlu0 %1822  ;;  %1963 = vrot.lane.b32.xlu1 %v4767_v16, %s4219_s25  ;;  %2000 = vrot.lane.b32.xlu2 %v4823_v8, %s4220_s26  ;;  %v1621_v43 = vpack.c.b16 %v1605_v62, %v1605_v62  ;;  %v1753_v28 = vrot.slane %v1751_v20, 1  ;;  %v4981_v30 = vsel %vm1900_vm7, %v1937_v14, %v1938_v34  ;;  %v1606_v14 = vunpack.c.l.b16 %v1474_v50 }
 0x175   : > { %v1203_v16 = vor.u32 %v1201_v1, %v4970_v13  ;;  %3649 = vmatmul.msk.bf16.vlgmr.msra.gmra.mxu3 %vm2161_vm11, %v4981_v30  ;;  %v4994_v20 = vld [vmem:[#allocation2 + $0x9c] sm:$0xff]   ;;  %v1206_v3 = vshrl.u32 %v969_v23, 16  ;;  %v1209_v63 = vshll.u32 %v969_v23, 16  ;;  %v1204_v38 = vrot.slane %v4970_v13, 4 }
 0x176   : > { %v1821_v21 = vpop.permute.xlu1 %1820  ;;  %v1932_v40 = vrot.slane %v1621_v43, 1  ;;  %v1756_v42 = vshll.u32 %v1621_v43, 16  ;;  %v4977_v55 = vpop.permute.xlu2 %2127  ;;  %v4183_v61 = vld [vmem:[#allocation2 + $0x9c] sm:$0xf0]  ;;  %v1476_v1 = vld [vmem:[#allocation2 + $0xa4] sm:$0x1]  ;;  %v1622_v13 = vpack.c.b16 %v1606_v14, %v1606_v14 }
 0x177   : > { %v2163_v8 = vsel %vm2161_vm11, %v4070_v44, %v1821_v21  ;;  %v1392_v51 = vsel %vm4411_vm6, %v1203_v16, %v1391_v19  ;;  %v508_v43 = vsel %vm4395_vm2, 0, %v507_v52  ;;  %v871_v19 = vmul.f32 %v4780_v31, %v830_v53  ;;  %v1395_v21 = vld [vmem:[#allocation2 + $0xb0] sm:$0x1] }
 0x178   : > { %v2196_v9 = vsel %vm2194_vm12, %v2163_v8, %v4833_v41  ;;  %v4986_v2 = vsel %vm1900_vm7, %v1931_v36, %v1932_v40  ;;  %v1758_v6 = vrot.slane %v1756_v42, 1  ;;  %v1754_v41 = vor.u32 %v1753_v28, %v1749_v49  ;;  %1393 = vst [vmem:[#allocation2 + $0xa8] sm:$0xf] %v1392_v51 }
 0x179   : > { %v2229_v62 = vsel %vm2227_vm13, %v2196_v9, %v4886_v48  ;;  %v1208_v28 = vrot.slane %v1206_v3, 7  ;;  %509 = vst [vmem:[#allocation2 + $0xb4] sm:$0x1] %v508_v43  ;;  %v906_v36 = vadd.f32 %v4786_v35, %v871_v19  ;;  %v1608_v40 = vunpack.c.l.b16 %v1476_v1 }
 0x17a   : > { %3647 = vmatmul.msk.bf16.gmra.mxu0 %vm2161_vm11, %v4986_v2  ;;  %2057 = vrot.lane.b32.xlu0 %v4986_v2, %s4221_s27  ;;  %v5008_v34 = vsel %vm1627_vm10, %v1754_v41, %v1758_v6  ;;  %v2281_v42 = vsel %vm2161_vm11, %v4539_v12, %v4927_v7  ;;  %v1763_v49 = vshll.u32 %v4957_v26, 16  ;;  %v4185_v12 = vor.u32 %v4184_v22, %v4183_v61  ;;  %v563_v7 = vld [vmem:[#allocation2 + $0xbc] sm:$0x1]  ;;  %v832_v51 = vpop.f32.mrf.mxu2 }
 0x17b   : > { %2568 = vmatmul.bf16.vlgmr.msrb.gmra.mxu1 %v2229_v62  ;;  %v1211_v16 = vor.u32 %v1209_v63, %v1208_v28  ;;  %v1213_v44 = vrot.slane %v1208_v28, 4  ;;  %v938_v50 = vmax.f32 %v906_v36, 0.0  ;;  %v5020_v23 = vpack.c.b16 %v1608_v40, %v1608_v40 }
 0x17c   : > { %v5005_v48 = vpop.permute.xlu0 %2043  ;;  %2092 = vrot.lane.b32.xlu1 %v4951_v54, %s4219_s25  ;;  %2139 = vrot.lane.b32.xlu2 %v5008_v34, %s4220_s26  ;;  %v4083_v41 = vor.u32 %v4990_v27, %v4959_v60  ;;  %v1940_v63 = vrot.slane %v4185_v12, 1  ;;  %v564_v61 = vsel %vm4402_vm4, 0, %v563_v7  ;;  %v872_v14 = vmul.f32 %v4780_v31, %v832_v51 }
 0x17d   : > { %v1212_v9 = vsel %vm4467_vm9, %v1204_v38, %v1211_v16  ;;  %v1396_v6 = vsel %vm4395_vm2, %v1213_v44, %v1395_v21  ;;  %v970_v3 = vpack.c.bf16 %v938_v50, %v938_v50  ;;  %v1941_v1 = vrot.slane %v5020_v23, 1  ;;  %565 = vst [vmem:[#allocation2 + $0xbc] sm:$0x1] %v564_v61 }
 0x17e   : > { %v2079_v8 = vpop.permute.xlu1 %2078  ;;  %v5023_v53 = vpop.permute.xlu2 %1990  ;;  %1394 = vst.msk [vmem:[#allocation2 + $0xac] sm:$0xf] %vm1297_vm5, %v1212_v9  ;;  %v1761_v60 = vshrl.u32 %v4957_v26, 16  ;;  %v1765_v27 = vrot.slane %v1763_v49, 1  ;;  %v1768_v22 = vshll.u32 %v1622_v13, 16  ;;  %v907_v38 = vadd.f32 %v4786_v35, %v872_v14  ;;  %v3712_v14 = vld [vmem:[%s5683_s7 + $0x8] sm:$0xff] }
 0x17f   : > { %v2327_v52 = vsel %vm2194_vm12, %v2281_v42, %v2079_v8  ;;  %1397 = vst [vmem:[#allocation2 + $0xb0] sm:$0x1] %v1396_v6  ;;  %v1218_v43 = vshll.u32 %v970_v3, 16  ;;  %v1934_v28 = vrot.slane %v4083_v41, 1  ;;  %v1935_v21 = vrot.slane %v1622_v13, 1  ;;  %3011 = vmatpush.bf16.msrb.mxu3 %v3712_v14 }
 0x180   : > { %v2360_v62 = vsel %vm2227_vm13, %v2327_v52, %v4905_v47  ;;  %v1215_v47 = vshrl.u32 %v970_v3, 16  ;;  %v1398_v40 = vld [vmem:[#allocation2 + $0xb4] sm:$0xf]  ;;  %v5049_v42 = vsel %vm1900_vm7, %v1940_v63, %v1941_v1  ;;  %v939_v16 = vmax.f32 %v907_v38, 0.0  ;;  %v510_v13 = vld [vmem:[#allocation2 + $0xc0] sm:$0x1] }
 0x181   : > { %2662 = vmatmul.bf16.gmra.mxu2 %v2360_v62  ;;  %v2165_v44 = vsel %vm2161_vm11, %v4482_v45, %v4962_v58  ;;  %v1766_v52 = vor.u32 %v1765_v27, %v1761_v60  ;;  %v1770_v9 = vrot.slane %v1768_v22, 1  ;;  %v5060_v7 = vsel %vm1900_vm7, %v1934_v28, %v1935_v21  ;;  %v3940_v3 = vld [vmem:[#allocation2 + $0xa8] sm:$0xe]  ;;  %v5085_v22 = vld [vmem:[#allocation2 + $0x90] sm:$0xff]  }
 0x182   : > { %1838 = vrot.lane.b32.xlu0 %v4930_v57, %s4221_s27  ;;  %v1217_v36 = vrot.slane %v1215_v47, 7  ;;  %v971_v6 = vpack.c.bf16 %v939_v16, %v939_v16  ;;  %v511_v45 = vsel %vm4395_vm2, 0, %v510_v13  ;;  %v835_v41 = vpop.f32.mrf.mxu2  ;;  %v1792_v17 = vshll.u32 %v5020_v23, 16 }
 0x183   : > { %512 = vst [vmem:[#allocation2 + $0xc0] sm:$0x1] %v511_v45  ;;  %v873_v1 = vmul.f32 %v4780_v31, %v835_v41 }
 0x184   : > { %v5040_v19 = vpop.permute.xlu0 %1824  ;;  %1965 = vrot.lane.b32.xlu1 %v4855_v5, %s4219_s25  ;;  %2002 = vrot.lane.b32.xlu2 %v4894_v56, %s4220_s26  ;;  %v1220_v49 = vor.u32 %v1218_v43, %v1217_v36  ;;  %v1226_v62 = vshll.u32 %v971_v6, 16  ;;  %v5079_v43 = vsel %vm1627_vm10, %v1766_v52, %v1770_v9  ;;  %v1221_v60 = vrot.slane %v1217_v36, 4  ;;  %v1402_v38 = vld [vmem:[#allocation2 + $0xbc] sm:$0x1] }
 0x185   : > { %3650 = vmatmul.msk.bf16.gmra.mxu3 %vm2161_vm11, %v5049_v42  ;;  %v3939_v61 = vld [vmem:[#allocation2 + $0xa8] sm:$0xf0]  ;;  %v908_v28 = vadd.f32 %v4786_v35, %v873_v1  ;;  %v2284_v36 = vsel %vm2161_vm11, %v4578_v11, %v5005_v48  ;;  %v1775_v9 = vshll.u32 %v5085_v22, 16  ;;  %v1794_v23 = vrot.slane %v1792_v17, 1 }
 0x186   : > { %v1952_v8 = vpop.permute.xlu1 %1951  ;;  %v5055_v5 = vpop.permute.xlu2 %2129  ;;  %v1399_v51 = vsel %vm4411_vm6, %v1220_v49, %v1398_v40  ;;  %v1477_v58 = vld [vmem:[#allocation2 + $0xb0] sm:$0x1] }
 0x187   : > { %v2198_v50 = vsel %vm2194_vm12, %v2165_v44, %v1952_v8  ;;  %1400 = vst [vmem:[#allocation2 + $0xb4] sm:$0xf] %v1399_v51  ;;  %v1609_v63 = vunpack.c.l.b16 %v1477_v58  ;;  %v3941_v44 = vor.u32 %v3940_v3, %v3939_v61  ;;  %v940_v49 = vmax.f32 %v908_v28, 0.0 }
 0x188   : > { %v2232_v12 = vsel %vm2227_vm13, %v2198_v50, %v4943_v33  ;;  %v1223_v33 = vshrl.u32 %v971_v6, 16  ;;  %v1777_v1 = vrot.slane %v1775_v9, 1  ;;  %v1780_v61 = vshll.u32 %v4964_v10, 16 }
 0x189   : > { %v5088_v16 = vpack.c.b16 %v1609_v63, %v1609_v63  ;;  %v972_v11 = vpack.c.bf16 %v940_v49, %v940_v49  ;;  %v1943_v45 = vrot.slane %v3941_v44, 1  ;;  %v1773_v63 = vshrl.u32 %v5085_v22, 16 }
 0x18a   : > { %3648 = vmatmul.msk.bf16.gmra.mxu0 %vm2161_vm11, %v5060_v7  ;;  %2059 = vrot.lane.b32.xlu0 %v5060_v7, %s4221_s27  ;;  %v1225_v27 = vrot.slane %v1223_v33, 7  ;;  %v837_v33 = vpop.f32.mrf.mxu2  ;;  %v1782_v49 = vrot.slane %v1780_v61, 1 }
 0x18b   : > { %2573 = vmatmul.bf16.gmra.mxu1 %v2232_v12  ;;  %v566_v12 = vld [vmem:[#allocation2 + $0xc8] sm:$0x1]  ;;  %v1944_v58 = vrot.slane %v5088_v16, 1  ;;  %v1235_v41 = vshll.u32 %v972_v11, 16 }
 0x18c   : > { %v5076_v47 = vpop.permute.xlu0 %2045  ;;  %2094 = vrot.lane.b32.xlu1 %v4957_v26, %s4219_s25  ;;  %2141 = vrot.lane.b32.xlu2 %v5079_v43, %s4220_s26  ;;  %v1228_v21 = vor.u32 %v1226_v62, %v1225_v27  ;;  %v1230_v40 = vrot.slane %v1225_v27, 4  ;;  %v567_v48 = vsel %vm4402_vm4, 0, %v566_v12  ;;  %v1232_v62 = vshrl.u32 %v972_v11, 16  ;;  %v1405_v27 = vld [vmem:[#allocation2 + $0xc0] sm:$0xf] }
 0x18d   : > { %568 = vst [vmem:[#allocation2 + $0xc8] sm:$0x1] %v567_v48 }
 0x18e   : > { %v2081_v8 = vpop.permute.xlu1 %2080  ;;  %v5094_v52 = vpop.permute.xlu2 %1992  ;;  %v1229_v6 = vsel %vm4467_vm9, %v1221_v60, %v1228_v21  ;;  %v1403_v13 = vsel %vm4395_vm2, %v1230_v40, %v1402_v38  ;;  %v1234_v14 = vrot.slane %v1232_v62, 7  ;;  %v5120_v38 = vsel %vm1900_vm7, %v1943_v45, %v1944_v58  ;;  %v4187_v44 = vld [vmem:[#allocation2 + $0xb4] sm:$0xe] }
 0x18f   : > { %v2329_v50 = vsel %vm2194_vm12, %v2284_v36, %v2081_v8  ;;  %1401 = vst.msk [vmem:[#allocation2 + $0xb8] sm:$0xf] %vm1297_vm5, %v1229_v6  ;;  %v1778_v8 = vor.u32 %v1777_v1, %v1773_v63 }
 0x190   : > { %v2363_v51 = vsel %vm2227_vm13, %v2329_v50, %v4977_v55  ;;  %1404 = vst [vmem:[#allocation2 + $0xbc] sm:$0x1] %v1403_v13  ;;  %v874_v55 = vmul.f32 %v4780_v31, %v837_v33  ;;  %v4071_v31 = vld [vmem:[#allocation2 + $0x18] sm:$0xff]   ;;  %v1237_v40 = vor.u32 %v1235_v41, %v1234_v14 }
 0x191   : > { %2667 = vmatmul.bf16.gmra.mxu2 %v2363_v51  ;;  %v2167_v28 = vsel %vm2161_vm11, %v4071_v31, %v5040_v19  ;;  %v5138_v45 = vsel %vm1627_vm10, %v1778_v8, %v1782_v49  ;;  %v1787_v31 = vshll.u32 %v4994_v20, 16 }
 0x192   : > { %1840 = vrot.lane.b32.xlu0 %v5008_v34, %s4221_s27  ;;  %v909_v60 = vadd.f32 %v4786_v35, %v874_v55  ;;  %v1406_v6 = vsel %vm4411_vm6, %v1237_v40, %v1405_v27  ;;  %v2287_v55 = vsel %vm2161_vm11, %v4617_v4, %v5076_v47 }
 0x193   : > { %1407 = vst [vmem:[#allocation2 + $0xc0] sm:$0xf] %v1406_v6 }
 0x194   : > { %v5110_v3 = vpop.permute.xlu0 %1826  ;;  %1967 = vrot.lane.b32.xlu1 %v4917_v46, %s4219_s25  ;;  %2004 = vrot.lane.b32.xlu2 %v4951_v54, %s4220_s26  ;;  %v941_v10 = vmax.f32 %v909_v60, 0.0  ;;  %v1409_v33 = vld [vmem:[#allocation2 + $0xc8] sm:$0x1] }
 0x195   : > { %3651 = vmatmul.msk.bf16.gmra.mxu3 %vm2161_vm11, %v5120_v38 }
 0x196   : > { %v1954_v21 = vpop.permute.xlu1 %1953  ;;  %v5125_v36 = vpop.permute.xlu2 %2131  ;;  %v5127_v50 = vld [vmem:[#allocation2 + $0xb4] sm:$0xff]   ;;  %v973_v19 = vpack.c.bf16 %v941_v10, %v941_v10  ;;  %v1785_v10 = vshrl.u32 %v4994_v20, 16 }
 0x197   : > { %v2200_v46 = vsel %vm2194_vm12, %v2167_v28, %v1954_v21  ;;  %v4186_v35 = vld [vmem:[#allocation2 + $0xb4] sm:$0xf0]  ;;  %v1478_v13 = vld [vmem:[#allocation2 + $0xbc] sm:$0x1] }
 0x198   : > { %v2235_v9 = vsel %vm2227_vm13, %v2200_v46, %v5023_v53  ;;  %v1610_v12 = vunpack.c.l.b16 %v1478_v13  ;;  %v1240_v51 = vshrl.u32 %v973_v19, 16  ;;  %v1243_v11 = vshll.u32 %v973_v19, 16 }
 0x199   : > { %v1238_v53 = vrot.slane %v1234_v14, 4  ;;  %v4188_v41 = vor.u32 %v4187_v44, %v4186_v35  ;;  %v2169_v46 = vsel %vm2161_vm11, %v4552_v32, %v5110_v3 }
 0x19a   : > { %2061 = vrot.lane.b32.xlu0 %v4981_v30, %s4221_s27  ;;  %v1242_v58 = vrot.slane %v1240_v51, 7  ;;  %v5144_v62 = vpack.c.b16 %v1610_v12, %v1610_v12  ;;  %v3943_v32 = vld [vmem:[#allocation2 + $0xc0] sm:$0xe] }
 0x19b   : > { %2578 = vmatmul.bf16.gmra.mxu1 %v2235_v9  ;;  %v1946_v4 = vrot.slane %v4188_v41, 1 }
 0x19c   : > { %v2048_v48 = vpop.permute.xlu0 %2047  ;;  %2096 = vrot.lane.b32.xlu1 %v5085_v22, %s4219_s25  ;;  %2143 = vrot.lane.b32.xlu2 %v5138_v45, %s4220_s26  ;;  %v1245_v1 = vor.u32 %v1243_v11, %v1242_v58  ;;  %v1247_v61 = vrot.slane %v1242_v58, 4  ;;  %v1947_v47 = vrot.slane %v5144_v62, 1 }
 0x19e   : > { %v2083_v63 = vpop.permute.xlu1 %2082  ;;  %v5150_v27 = vpop.permute.xlu2 %1994  ;;  %v1246_v28 = vsel %vm4467_vm9, %v1238_v53, %v1245_v1  ;;  %v1410_v21 = vsel %vm4395_vm2, %v1247_v61, %v1409_v33  ;;  %v5170_v44 = vsel %vm1900_vm7, %v1946_v4, %v1947_v47  ;;  %v2290_v53 = vsel %vm2161_vm11, %v4662_v0, %v2048_v48  ;;  %v513_v1 = vld [vmem:[#allocation2 + $0xcc] sm:$0x1]  ;;  %v569_v48 = vld [vmem:[#allocation2 + $0xd4] sm:$0x1] }
 0x19f   : > { %v2331_v60 = vsel %vm2194_vm12, %v2287_v55, %v2083_v63  ;;  %1408 = vst.msk [vmem:[#allocation2 + $0xc4] sm:$0xf] %vm1297_vm5, %v1246_v28  ;;  %v514_v0 = vsel %vm4395_vm2, 0, %v513_v1  ;;  %v4072_v47 = vld [vmem:[#allocation2 + $0x30] sm:$0xff]  }
 0x1a0   : > { %v2366_v14 = vsel %vm2227_vm13, %v2331_v60, %v5055_v5  ;;  %1411 = vst [vmem:[#allocation2 + $0xc8] sm:$0x1] %v1410_v21  ;;  %v1789_v5 = vrot.slane %v1787_v31, 1  ;;  %v1804_v21 = vshll.u32 %v5088_v16, 16 }
 0x1a1   : > { %2672 = vmatmul.bf16.gmra.mxu2 %v2366_v14  ;;  %515 = vst [vmem:[#allocation2 + $0xcc] sm:$0x1] %v514_v0 }
 0x1a2   : > { %1842 = vrot.lane.b32.xlu0 %v5079_v43, %s4221_s27  ;;  %v1790_v9 = vor.u32 %v1789_v5, %v1785_v10  ;;  %v1806_v18 = vrot.slane %v1804_v21, 1 }
 0x1a4   : > { %v1829_v40 = vpop.permute.xlu0 %1828  ;;  %1969 = vrot.lane.b32.xlu1 %v4986_v2, %s4219_s25  ;;  %2006 = vrot.lane.b32.xlu2 %v4957_v26, %s4220_s26  ;;  %v5185_v12 = vsel %vm1627_vm10, %v1790_v9, %v1794_v23 }
 0x1a5   : > { %3652 = vmatmul.msk.bf16.gmra.mxu3 %vm2161_vm11, %v5170_v44  ;;  %v2171_v10 = vsel %vm2161_vm11, %v4072_v47, %v1829_v40  ;;  %v3711_v40 = vld [vmem:[%s5683_s7] sm:$0xff] }
 0x1a6   : > { %v1956_v8 = vpop.permute.xlu1 %1955  ;;  %v5176_v35 = vpop.permute.xlu2 %2133  ;;  %v3942_v19 = vld [vmem:[#allocation2 + $0xc0] sm:$0xf0]  ;;  %3012 = vmatpush.bf16.msrb.mxu3 %v3711_v40 }
 0x1a7   : > { %v2202_v49 = vsel %vm2194_vm12, %v2169_v46, %v1956_v8  ;;  %v1479_v6 = vld [vmem:[#allocation2 + $0xc8] sm:$0x1]  ;;  %v3944_v11 = vor.u32 %v3943_v32, %v3942_v19 }
 0x1a8   : > { %v2238_v2 = vsel %vm2227_vm13, %v2202_v49, %v5094_v52  ;;  %v2019_v3 = vunpack.c.l.b16 %v1479_v6  ;;  %v5191_v52 = vld [vmem:[#allocation2 + $0xa8] sm:$0xff]  }
 0x1a9   : > { %v1799_v55 = vshll.u32 %v5191_v52, 16  ;;  %v2036_v61 = vrot.slane %v3944_v11, 1  ;;  %v1797_v14 = vshrl.u32 %v5191_v52, 16 }
 0x1aa   : > { %2063 = vrot.lane.b32.xlu0 %v5049_v42, %s4221_s27  ;;  %v5193_v51 = vpack.c.b16 %v2019_v3, %v2019_v3  ;;  %v1811_v3 = vshll.u32 %v5127_v50, 16 }
 0x1ab   : > { %2583 = vmatmul.bf16.gmra.mxu1 %v2238_v2  ;;  %v1801_v28 = vrot.slane %v1799_v55, 1 }
 0x1ac   : > { %v2050_v13 = vpop.permute.xlu0 %2049  ;;  %2098 = vrot.lane.b32.xlu1 %v4994_v20, %s4219_s25  ;;  %2145 = vrot.lane.b32.xlu2 %v5185_v12, %s4220_s26  ;;  %v2037_v60 = vrot.slane %v5193_v51, 1 }
 0x1ad   : > { %v1802_v46 = vor.u32 %v1801_v28, %v1797_v14  ;;  %v2293_v24 = vsel %vm2161_vm11, %v4710_v39, %v2050_v13 }
 0x1ae   : > { %v2085_v58 = vpop.permute.xlu1 %2084  ;;  %v5198_v41 = vpop.permute.xlu2 %1996  ;;  %v5217_v4 = vsel %vm1900_vm7, %v2036_v61, %v2037_v60 }
 0x1af   : > { %v2333_v33 = vsel %vm2194_vm12, %v2290_v53, %v2085_v58  ;;  %v5233_v23 = vsel %vm1627_vm10, %v1802_v46, %v1806_v18  ;;  %v1809_v53 = vshrl.u32 %v5127_v50, 16  ;;  %v1813_v58 = vrot.slane %v1811_v3, 1 }
 0x1b0   : > { %v2369_v63 = vsel %vm2227_vm13, %v2333_v33, %v5125_v36  ;;  %v570_v36 = vsel %vm4402_vm4, 0, %v569_v48  ;;  %v1816_v33 = vshll.u32 %v5144_v62, 16  ;;  %v4189_v62 = vld [vmem:[#allocation2 + $0xcc] sm:$0xf0] }
 0x1b1   : > { %2677 = vmatmul.bf16.gmra.mxu2 %v2369_v63  ;;  %571 = vst [vmem:[#allocation2 + $0xd4] sm:$0x1] %v570_v36  ;;  %v1814_v63 = vor.u32 %v1813_v58, %v1809_v53 }
 0x1b2   : > { %1844 = vrot.lane.b32.xlu0 %v5138_v45, %s4221_s27  ;;  %v1818_v1 = vrot.slane %v1816_v33, 1 }
 0x1b4   : > { %v1831_v31 = vpop.permute.xlu0 %1830  ;;  %1971 = vrot.lane.b32.xlu1 %v5060_v7, %s4219_s25  ;;  %2008 = vrot.lane.b32.xlu2 %v5085_v22, %s4220_s26  ;;  %v1420_v7 = vld [vmem:[#allocation2 + $0xcc] sm:$0xf] }
 0x1b5   : > { %3653 = vmatmul.msk.bf16.gmra.mxu3 %vm2161_vm11, %v5217_v4  ;;  %v1421_v49 = vsel %vm4411_vm6, 0, %v1420_v7  ;;  %v2173_v39 = vsel %vm2161_vm11, %v4628_v59, %v1831_v31  ;;  %v5265_v59 = vsel %vm1627_vm10, %v1814_v63, %v1818_v1 }
 0x1b6   : > { %v1958_v5 = vpop.permute.xlu1 %1957  ;;  %v2136_v16 = vpop.permute.xlu2 %2135  ;;  %1422 = vst [vmem:[#allocation2 + $0xcc] sm:$0xf] %v1421_v49  ;;  %v2029_v49 = vshll.u32 %v5193_v51, 16 }
 0x1b7   : > { %v2204_v17 = vsel %vm2194_vm12, %v2171_v10, %v1958_v5 }
 0x1b8   : > { %v2241_v8 = vsel %vm2227_vm13, %v2204_v17, %v5150_v27  ;;  %v1424_v27 = vld [vmem:[#allocation2 + $0xd4] sm:$0x1]  ;;  %v2031_v3 = vrot.slane %v2029_v49, 1 }
 0x1b9   : > { %v1425_v2 = vsel %vm4395_vm2, 0, %v1424_v27 }
 0x1ba   : > { %2065 = vrot.lane.b32.xlu0 %v5120_v38, %s4221_s27  ;;  %1426 = vst [vmem:[#allocation2 + $0xd4] sm:$0x1] %v1425_v2 }
 0x1bb   : > { %2588 = vmatmul.bf16.gmra.mxu1 %v2241_v8  ;;  %v5280_v8 = vpop.f32.mrf.mxu0 }
 0x1bc   : > { %v2052_v9 = vpop.permute.xlu0 %2051  ;;  %2100 = vrot.lane.b32.xlu1 %v5191_v52, %s4219_s25  ;;  %2147 = vrot.lane.b32.xlu2 %v5233_v23, %s4220_s26 }
 0x1bd   : > { %v4190_v31 = vld [vmem:[#allocation2 + $0xcc] sm:$0xe]  ;;  %v2296_v14 = vsel %vm2161_vm11, %v4790_v37, %v2052_v9 }
 0x1be   : > { %v2087_v6 = vpop.permute.xlu1 %2086  ;;  %v1999_v32 = vpop.permute.xlu2 %1998  ;;  %v4191_v5 = vor.u32 %v4190_v31, %v4189_v62 }
 0x1bf   : > { %v2335_v19 = vsel %vm2194_vm12, %v2293_v24, %v2087_v6 }
 0x1c0   : > { %v2372_v11 = vsel %vm2227_vm13, %v2335_v19, %v5176_v35  ;;  %v2158_v46 = vrot.slane %v4191_v5, 1 }
 0x1c1   : > { %2682 = vmatmul.bf16.gmra.mxu2 %v2372_v11  ;;  %v1480_v60 = vld [vmem:[#allocation2 + $0xd4] sm:$0x1] }
 0x1c2   : > { %1846 = vrot.lane.b32.xlu0 %v5185_v12, %s4221_s27  ;;  %v2109_v48 = vunpack.c.l.b16 %v1480_v60 }
 0x1c3   : > { %v5298_v53 = vpop.f32.mrf.mxu0 }
 0x1c4   : > { %v1833_v15 = vpop.permute.xlu0 %1832  ;;  %1973 = vrot.lane.b32.xlu1 %v4981_v30, %s4219_s25  ;;  %2010 = vrot.lane.b32.xlu2 %v4994_v20, %s4220_s26  ;;  %v5262_v30 = vld [vmem:[#allocation2 + $0xcc] sm:$0xff]   ;;  %v2110_v10 = vpack.c.b16 %v2109_v48, %v2109_v48 }
 0x1c6   : > { %v1960_v35 = vpop.permute.xlu1 %1959  ;;  %v2138_v55 = vpop.permute.xlu2 %2137  ;;  %v2159_v18 = vrot.slane %v2110_v10, 1  ;;  %v2119_v63 = vshll.u32 %v2110_v10, 16 }
 0x1c7   : > { %v2206_v13 = vsel %vm2194_vm12, %v2173_v39, %v1960_v35  ;;  %v2112_v35 = vshrl.u32 %v5262_v30, 16 }
 0x1c8   : > { %v2244_v61 = vsel %vm2227_vm13, %v2206_v13, %v5198_v41  ;;  %v5271_v41 = vld [vmem:[#allocation2 + $0xc0] sm:$0xff]   ;;  %v2160_v9 = vsel %vm1900_vm7, %v2158_v46, %v2159_v18 }
 0x1c9   : > { %v2024_v47 = vshll.u32 %v5271_v41, 16  ;;  %v2022_v37 = vshrl.u32 %v5271_v41, 16  ;;  %3654 = vmatmul.msk.bf16.gmra.mxu3 %vm2161_vm11, %v2160_v9 }
 0x1ca   : > { %2067 = vrot.lane.b32.xlu0 %v5170_v44, %s4221_s27 }
 0x1cb   : > { %2593 = vmatmul.bf16.gmra.mxu1 %v2244_v61  ;;  %v2026_v40 = vrot.slane %v2024_v47, 1  ;;  %v2121_v61 = vrot.slane %v2119_v63, 1  ;;  %v5316_v60 = vpop.f32.mrf.mxu0 }
 0x1cc   : > { %v2054_v0 = vpop.permute.xlu0 %2053  ;;  %2102 = vrot.lane.b32.xlu1 %v5127_v50, %s4219_s25  ;;  %2149 = vrot.lane.b32.xlu2 %v5265_v59, %s4220_s26 }
 0x1cd   : > { %v2027_v19 = vor.u32 %v2026_v40, %v2022_v37 }
 0x1ce   : > { %v2089_v28 = vpop.permute.xlu1 %2088  ;;  %v2001_v36 = vpop.permute.xlu2 %2000 }
 0x1cf   : > { %v2337_v21 = vsel %vm2194_vm12, %v2296_v14, %v2089_v28  ;;  %v5296_v11 = vsel %vm1627_vm10, %v2027_v19, %v2031_v3 }
 0x1d0   : > { %v2375_v17 = vsel %vm2227_vm13, %v2337_v21, %v2136_v16  ;;  %v4073_v16 = vld [vmem:[#allocation2 + $0x48] sm:$0xff]  }
 0x1d1   : > { %2687 = vmatmul.bf16.gmra.mxu2 %v2375_v17  ;;  %v2175_v27 = vsel %vm2161_vm11, %v4073_v16, %v1833_v15  ;;  %v2114_v15 = vshll.u32 %v5262_v30, 16 }
 0x1d2   : > { %1848 = vrot.lane.b32.xlu0 %v5233_v23, %s4221_s27 }
 0x1d3   : > { %v2116_v13 = vrot.slane %v2114_v15, 1  ;;  %v2754_v10 = vpop.f32.mrf.mxu0 }
 0x1d4   : > { %v1835_v7 = vpop.permute.xlu0 %1834  ;;  %1975 = vrot.lane.b32.xlu1 %v5049_v42, %s4219_s25  ;;  %2012 = vrot.lane.b32.xlu2 %v5191_v52, %s4220_s26 }
 0x1d6   : > { %v1962_v2 = vpop.permute.xlu1 %1961  ;;  %v2140_v6 = vpop.permute.xlu2 %2139 }
 0x1d7   : > { %v2208_v24 = vsel %vm2194_vm12, %v2175_v27, %v1962_v2 }
 0x1d8   : > { %v2247_v51 = vsel %vm2227_vm13, %v2208_v24, %v1999_v32  ;;  %v2299_v32 = vsel %vm2161_vm11, %v4869_v25, %v2054_v0  ;;  %v2117_v25 = vor.u32 %v2116_v13, %v2112_v35 }
 0x1da   : > { %2069 = vrot.lane.b32.xlu0 %v5217_v4, %s4221_s27  ;;  %v2122_v14 = vsel %vm1627_vm10, %v2117_v25, %v2121_v61 }
 0x1db   : > { %2598 = vmatmul.bf16.gmra.mxu1 %v2247_v51  ;;  %v5337_v9 = vpop.f32.mrf.mxu0  ;;  %v5352_v51 = vld [vmem:[%s5682_s6] ss:$0 sm:$0xff] }
 0x1dc   : > { %v2056_v42 = vpop.permute.xlu0 %2055  ;;  %2104 = vrot.lane.b32.xlu1 %v5271_v41, %s4219_s25  ;;  %2151 = vrot.lane.b32.xlu2 %v5296_v11, %s4220_s26 }
 0x1dd   : > { %v2302_v28 = vsel %vm2161_vm11, %v4930_v57, %v2056_v42 }
 0x1de   : > { %v2091_v58 = vpop.permute.xlu1 %2090  ;;  %v2003_v33 = vpop.permute.xlu2 %2002 }
 0x1df   : > { %v2339_v4 = vsel %vm2194_vm12, %v2299_v32, %v2091_v58 }
 0x1e0   : > { %v2378_v39 = vsel %vm2227_vm13, %v2339_v4, %v2138_v55  ;;  %v2177_v55 = vsel %vm2161_vm11, %v4731_v29, %v1835_v7 }
 0x1e1   : > { %2692 = vmatmul.bf16.gmra.mxu2 %v2378_v39 }
 0x1e2   : > { %1850 = vrot.lane.b32.xlu0 %v5265_v59, %s4221_s27 }
 0x1e4   : > { %v1837_v1 = vpop.permute.xlu0 %1836  ;;  %1977 = vrot.lane.b32.xlu1 %v5120_v38, %s4219_s25  ;;  %2014 = vrot.lane.b32.xlu2 %v5127_v50, %s4220_s26 }
 0x1e6   : > { %v1964_v62 = vpop.permute.xlu1 %1963  ;;  %v2142_v48 = vpop.permute.xlu2 %2141 }
 0x1e7   : > { %v2210_v0 = vsel %vm2194_vm12, %v2177_v55, %v1964_v62 }
 0x1e8   : > { %v2250_v31 = vsel %vm2227_vm13, %v2210_v0, %v2001_v36 }
 0x1eb   : > { %2603 = vmatmul.bf16.gmra.mxu1 %v2250_v31 }
 0x1ec   : > { %v2058_v38 = vpop.permute.xlu0 %2057  ;;  %2106 = vrot.lane.b32.xlu1 %v5262_v30, %s4219_s25  ;;  %2153 = vrot.lane.b32.xlu2 %v2122_v14, %s4220_s26  ;;  %v4074_v30 = vld [vmem:[#allocation2 + $0x60] sm:$0xff]  }
 0x1ed   : > { %v2179_v46 = vsel %vm2161_vm11, %v4074_v30, %v1837_v1  ;;  %v2305_v2 = vsel %vm2161_vm11, %v5008_v34, %v2058_v38  ;;  %v2759_v34 = vpop.f32.mrf.mxu0 }
 0x1ee   : > { %v2093_v21 = vpop.permute.xlu1 %2092  ;;  %v2005_v47 = vpop.permute.xlu2 %2004 }
 0x1ef   : > { %v2341_v29 = vsel %vm2194_vm12, %v2302_v28, %v2093_v21 }
 0x1f0   : > { %v2381_v5 = vsel %vm2227_vm13, %v2341_v29, %v2140_v6 }
 0x1f1   : > { %2697 = vmatmul.bf16.gmra.mxu2 %v2381_v5 }
 0x1f3   : > { %v2658_v36 = vpop.f32.mrf.mxu2 }
 0x1f4   : > { %v1839_v17 = vpop.permute.xlu0 %1838  ;;  %1979 = vrot.lane.b32.xlu1 %v5170_v44, %s4219_s25  ;;  %2016 = vrot.lane.b32.xlu2 %v5271_v41, %s4220_s26  ;;  %v5343_v41 = vld [vmem:[%s5681_s5] ss:$0 sm:$0xff]  ;;  %s3371_s26 = scalar_lea.hbm %s5686_s10, %s3729_s21 }
 0x1f5   : > { %v2181_v35 = vsel %vm2161_vm11, %v4894_v56, %v1839_v17  ;;  %v2762_v38 = vpop.f32.mrf.mxu0  ;;  %s3374_s24 = sshll.u32 %s3371_s26, 4  ;;  %s3375_s24 = int_to_ptr.hbm [resolvable:$true] %s3374_s24 }
 0x1f6   : > { %v1966_v57 = vpop.permute.xlu1 %1965  ;;  %v2144_v49 = vpop.permute.xlu2 %2143  ;;  %s4128_s20 = sshra.s32 %s3375_s24, 4  ;;  %s4129_s20 = int_to_ptr.hbm [resolvable:$true] %s4128_s20 }
 0x1f7   : > { %v2212_v18 = vsel %vm2194_vm12, %v2179_v46, %v1966_v57  ;;  %s4130_s22 = scalar_lea.hbm %s4129_s20, 128  ;;  %p4135_p7 = scmp.lt.s32.totalorder %s4129_s20, %s5686_s10 }
 0x1f8   : > { %v2569_v7 = vpop.f32.mrf.mxu1  ;;  %v2253_v40 = vsel %vm2227_vm13, %v2212_v18, %v2003_v33  ;;  %p4131_p4 = scmp.ne.s32.totalorder %s4129_s20, %s4130_s22  ;;  %p4136_p8 = scmp.lt.s32.totalorder %s4134_s29, %s4130_s22 }
 0x1f9   : > { %v2659_v37 = vadd.f32 %v2658_v36, %v2569_v7 }
 0x1fa   : > { %p4132_p5 = pnand %p4131_p4, %p4329_p9  ;;  %p4137_p10 = por %p4136_p8, %p4135_p7 }
 0x1fb   : > { %2608 = vmatmul.bf16.gmra.mxu1 %v2253_v40  ;;  %v2660_v16 = vpop.f32.mrf.mxu2  ;;  %v2748_v44 = vadd.f32 %v5280_v8, %v2659_v37 }
 0x1fc   : > { %v2060_v27 = vpop.permute.xlu0 %2059  ;;  %p4133_p6 = pneg %p4132_p5 }
 0x1fd   : > { %v2830_v3 = vmul.f32 %v5343_v41, %v2748_v44  ;;  %v2308_v28 = vsel %vm2161_vm11, %v5079_v43, %v2060_v27  ;;  %v2764_v44 = vpop.f32.mrf.mxu0 }
 0x1fe   : > { %v2095_v24 = vpop.permute.xlu1 %2094  ;;  %v2007_v32 = vpop.permute.xlu2 %2006  ;;  %p4138_p13 = pnand %p4137_p10, %p4133_p6 }
 0x1ff   : > { %v2343_v6 = vsel %vm2194_vm12, %v2305_v2, %v2095_v24  ;;  %v2865_v4 = vadd.f32 %v5352_v51, %v2830_v3 }
 0x200   : > { %v2571_v19 = vpop.f32.mrf.mxu1  ;;  %v2384_v42 = vsel %vm2227_vm13, %v2343_v6, %v2142_v48 }
 0x201   : > { %v2661_v8 = vadd.f32 %v2660_v16, %v2571_v19  ;;  %2702 = vmatmul.bf16.gmra.mxu2 %v2384_v42  ;;  %v2897_v61 = vmax.f32 %v2865_v4, 0.0 }
 0x203   : > { %v2750_v15 = vadd.f32 %v5298_v53, %v2661_v8 }
 0x204   : > { %v1841_v58 = vpop.permute.xlu0 %1840  ;;  %v2663_v39 = vpop.f32.mrf.mxu2 }
 0x205   : > { %v2831_v33 = vmul.f32 %v5343_v41, %v2750_v15  ;;  %v2183_v43 = vsel %vm2161_vm11, %v4951_v54, %v1841_v58  ;;  %v5381_v15 = vpop.f32.mrf.mxu3 }
 0x206   : > { %v1968_v63 = vpop.permute.xlu1 %1967  ;;  %v2146_v56 = vpop.permute.xlu2 %2145 }
 0x207   : > { %v2866_v13 = vadd.f32 %v5352_v51, %v2831_v33  ;;  %v2214_v1 = vsel %vm2194_vm12, %v2181_v35, %v1968_v63 }
 0x208   : > { %v2574_v25 = vpop.f32.mrf.mxu1  ;;  %v2256_v62 = vsel %vm2227_vm13, %v2214_v1, %v2005_v47 }
 0x209   : > { %v2898_v55 = vmax.f32 %v2866_v13, 0.0  ;;  %v2664_v53 = vadd.f32 %v2663_v39, %v2574_v25 }
 0x20b   : > { %2613 = vmatmul.bf16.gmra.mxu1 %v2256_v62  ;;  %v2929_v0 = vpack.c.bf16 %v2898_v55, %v2897_v61  ;;  %v2753_v31 = vadd.f32 %v5316_v60, %v2664_v53 }
 0x20c   : > { %v2062_v48 = vpop.permute.xlu0 %2061  ;;  %v2665_v14 = vpop.f32.mrf.mxu2 }
 0x20d   : > { %3663 = vmatmul.msk.bf16.vlgmr.msrb.gmra.mxu3 %vm2161_vm11, %v2929_v0  ;;  %v2832_v36 = vmul.f32 %v5343_v41, %v2753_v31  ;;  %v2311_v8 = vsel %vm2161_vm11, %v5138_v45, %v2062_v48 }
 0x20e   : > { %v2097_v21 = vpop.permute.xlu1 %2096  ;;  %v2009_v40 = vpop.permute.xlu2 %2008 }
 0x20f   : > { %v2345_v29 = vsel %vm2194_vm12, %v2308_v28, %v2097_v21  ;;  %v2867_v18 = vadd.f32 %v5352_v51, %v2832_v36 }
 0x210   : > { %v2576_v5 = vpop.f32.mrf.mxu1  ;;  %v2387_v17 = vsel %vm2227_vm13, %v2345_v29, %v2144_v49 }
 0x211   : > { %v2666_v47 = vadd.f32 %v2665_v14, %v2576_v5  ;;  %2707 = vmatmul.bf16.gmra.mxu2 %v2387_v17  ;;  %v2899_v2 = vmax.f32 %v2867_v18, 0.0 }
 0x213   : > { %v2755_v30 = vadd.f32 %v2754_v10, %v2666_v47 }
 0x214   : > { %v1843_v60 = vpop.permute.xlu0 %1842  ;;  %v2668_v57 = vpop.f32.mrf.mxu2 }
 0x215   : > { %v2833_v46 = vmul.f32 %v5343_v41, %v2755_v30  ;;  %v2185_v25 = vsel %vm2161_vm11, %v4957_v26, %v1843_v60 }
 0x216   : > { %v1970_v7 = vpop.permute.xlu1 %1969  ;;  %v2148_v35 = vpop.permute.xlu2 %2147 }
 0x217   : > { %v2868_v37 = vadd.f32 %v5352_v51, %v2833_v46  ;;  %v2216_v16 = vsel %vm2194_vm12, %v2183_v43, %v1970_v7 }
 0x218   : > { %v2579_v27 = vpop.f32.mrf.mxu1  ;;  %v2259_v10 = vsel %vm2227_vm13, %v2216_v16, %v2007_v32 }
 0x219   : > { %v2669_v49 = vadd.f32 %v2668_v57, %v2579_v27  ;;  %v2900_v24 = vmax.f32 %v2868_v37, 0.0 }
 0x21b   : > { %2618 = vmatmul.bf16.gmra.mxu1 %v2259_v10  ;;  %v2930_v6 = vpack.c.bf16 %v2900_v24, %v2899_v2  ;;  %v2758_v19 = vadd.f32 %v5337_v9, %v2669_v49  ;;  %v2767_v9 = vpop.f32.mrf.mxu0 }
 0x21c   : > { %v2670_v3 = vpop.f32.mrf.mxu2  ;;  %v2064_v54 = vpop.permute.xlu0 %2063 }
 0x21d   : > { %3664 = vmatmul.msk.bf16.gmra.mxu3 %vm2161_vm11, %v2930_v6  ;;  %v2834_v32 = vmul.f32 %v5343_v41, %v2758_v19  ;;  %v2314_v36 = vsel %vm2161_vm11, %v5185_v12, %v2064_v54 }
 0x21e   : > { %v2099_v42 = vpop.permute.xlu1 %2098  ;;  %v2011_v21 = vpop.permute.xlu2 %2010 }
 0x21f   : > { %v2347_v58 = vsel %vm2194_vm12, %v2311_v8, %v2099_v42  ;;  %v2869_v45 = vadd.f32 %v5352_v51, %v2834_v32 }
 0x220   : > { %v2581_v4 = vpop.f32.mrf.mxu1  ;;  %v2390_v39 = vsel %vm2227_vm13, %v2347_v58, %v2146_v56  ;;  %v5393_v56 = vpop.f32.mrf.mxu3 }
 0x221   : > { %v2671_v33 = vadd.f32 %v2670_v3, %v2581_v4  ;;  %2712 = vmatmul.bf16.gmra.mxu2 %v2390_v39  ;;  %v2901_v14 = vmax.f32 %v2869_v45, 0.0 }
 0x223   : > { %v2760_v13 = vadd.f32 %v2759_v34, %v2671_v33  ;;  %v2769_v29 = vpop.f32.mrf.mxu0 }
 0x224   : > { %v2673_v1 = vpop.f32.mrf.mxu2  ;;  %v1845_v53 = vpop.permute.xlu0 %1844 }
 0x225   : > { %v2835_v63 = vmul.f32 %v5343_v41, %v2760_v13  ;;  %v2187_v27 = vsel %vm2161_vm11, %v5085_v22, %v1845_v53 }
 0x226   : > { %v1972_v61 = vpop.permute.xlu1 %1971  ;;  %v2150_v12 = vpop.permute.xlu2 %2149 }
 0x227   : > { %v2870_v55 = vadd.f32 %v5352_v51, %v2835_v63  ;;  %v2218_v62 = vsel %vm2194_vm12, %v2185_v25, %v1972_v61 }
 0x228   : > { %v2584_v0 = vpop.f32.mrf.mxu1  ;;  %v2262_v31 = vsel %vm2227_vm13, %v2218_v62, %v2009_v40  ;;  %v5401_v7 = vpop.f32.mrf.mxu3 }
 0x229   : > { %v2674_v48 = vadd.f32 %v2673_v1, %v2584_v0  ;;  %v2902_v34 = vmax.f32 %v2870_v55, 0.0 }
 0x22b   : > { %2623 = vmatmul.bf16.gmra.mxu1 %v2262_v31  ;;  %v2931_v28 = vpack.c.bf16 %v2902_v34, %v2901_v14  ;;  %v2763_v5 = vadd.f32 %v2762_v38, %v2674_v48  ;;  %v2772_v16 = vpop.f32.mrf.mxu0 }
 0x22c   : > { %v2675_v26 = vpop.f32.mrf.mxu2  ;;  %v2066_v18 = vpop.permute.xlu0 %2065 }
 0x22d   : > { %3665 = vmatmul.msk.bf16.gmra.mxu3 %vm2161_vm11, %v2931_v28  ;;  %v2836_v60 = vmul.f32 %v5343_v41, %v2763_v5  ;;  %v2317_v22 = vsel %vm2161_vm11, %v5233_v23, %v2066_v18 }
 0x22e   : > { %v2101_v47 = vpop.permute.xlu1 %2100  ;;  %v2013_v33 = vpop.permute.xlu2 %2012 }
 0x22f   : > { %v2349_v17 = vsel %vm2194_vm12, %v2314_v36, %v2101_v47  ;;  %v2871_v40 = vadd.f32 %v5352_v51, %v2836_v60 }
 0x230   : > { %v2586_v30 = vpop.f32.mrf.mxu1  ;;  %v2393_v57 = vsel %vm2227_vm13, %v2349_v17, %v2148_v35  ;;  %v5411_v4 = vpop.f32.mrf.mxu3 }
 0x231   : > { %v2676_v46 = vadd.f32 %v2675_v26, %v2586_v30  ;;  %2717 = vmatmul.bf16.gmra.mxu2 %v2393_v57  ;;  %v2903_v19 = vmax.f32 %v2871_v40, 0.0 }
 0x233   : > { %v2765_v43 = vadd.f32 %v2764_v44, %v2676_v46  ;;  %v2774_v13 = vpop.f32.mrf.mxu0 }
 0x234   : > { %v2678_v37 = vpop.f32.mrf.mxu2  ;;  %v1847_v8 = vpop.permute.xlu0 %1846 }
 0x235   : > { %v2837_v38 = vmul.f32 %v5343_v41, %v2765_v43  ;;  %v2189_v23 = vsel %vm2161_vm11, %v4994_v20, %v1847_v8 }
 0x236   : > { %v1974_v49 = vpop.permute.xlu1 %1973  ;;  %v2152_v5 = vpop.permute.xlu2 %2151 }
 0x237   : > { %v2872_v10 = vadd.f32 %v5352_v51, %v2837_v38  ;;  %v2220_v2 = vsel %vm2194_vm12, %v2187_v27, %v1974_v49 }
 0x238   : > { %v2589_v24 = vpop.f32.mrf.mxu1  ;;  %v2265_v44 = vsel %vm2227_vm13, %v2220_v2, %v2011_v21  ;;  %v5423_v48 = vpop.f32.mrf.mxu3 }
 0x239   : > { %v2679_v6 = vadd.f32 %v2678_v37, %v2589_v24  ;;  %v2904_v3 = vmax.f32 %v2872_v10, 0.0 }
 0x23b   : > { %2628 = vmatmul.bf16.gmra.mxu1 %v2265_v44  ;;  %v2932_v54 = vpack.c.bf16 %v2904_v3, %v2903_v19  ;;  %v2768_v42 = vadd.f32 %v2767_v9, %v2679_v6  ;;  %v2777_v26 = vpop.f32.mrf.mxu0 }
 0x23c   : > { %v2680_v58 = vpop.f32.mrf.mxu2  ;;  %v2068_v53 = vpop.permute.xlu0 %2067 }
 0x23d   : > { %3666 = vmatmul.msk.bf16.gmra.mxu3 %vm2161_vm11, %v2932_v54  ;;  %v2838_v63 = vmul.f32 %v5343_v41, %v2768_v42  ;;  %v2320_v20 = vsel %vm2161_vm11, %v5265_v59, %v2068_v53 }
 0x23e   : > { %v2103_v32 = vpop.permute.xlu1 %2102 }
 0x23f   : > { %v2351_v39 = vsel %vm2194_vm12, %v2317_v22, %v2103_v32  ;;  %v2873_v55 = vadd.f32 %v5352_v51, %v2838_v63 }
 0x240   : > { %v2591_v35 = vpop.f32.mrf.mxu1  ;;  %v2396_v45 = vsel %vm2227_vm13, %v2351_v39, %v2150_v12  ;;  %v5433_v37 = vpop.f32.mrf.mxu3 }
 0x241   : > { %v2681_v1 = vadd.f32 %v2680_v58, %v2591_v35  ;;  %2722 = vmatmul.bf16.gmra.mxu2 %v2396_v45  ;;  %v2905_v21 = vmax.f32 %v2873_v55, 0.0  ;;  %v2015_v12 = vpop.permute.xlu2 %2014 }
 0x243   : > { %v2770_v9 = vadd.f32 %v2769_v29, %v2681_v1 }
 0x244   : > { %v2683_v61 = vpop.f32.mrf.mxu2  ;;  %v1849_v60 = vpop.permute.xlu0 %1848 }
 0x245   : > { %v2839_v25 = vmul.f32 %v5343_v41, %v2770_v9  ;;  %v2191_v10 = vsel %vm2161_vm11, %v5191_v52, %v1849_v60 }
 0x246   : > { %v1976_v62 = vpop.permute.xlu1 %1975 }
 0x247   : > { %v2874_v0 = vadd.f32 %v5352_v51, %v2839_v25  ;;  %v2222_v31 = vsel %vm2194_vm12, %v2189_v23, %v1976_v62 }
 0x248   : > { %v2594_v14 = vpop.f32.mrf.mxu1  ;;  %v2268_v28 = vsel %vm2227_vm13, %v2222_v31, %v2013_v33  ;;  %v5442_v42 = vpop.f32.mrf.mxu3 }
 0x249   : > { %v2684_v34 = vadd.f32 %v2683_v61, %v2594_v14  ;;  %v2906_v29 = vmax.f32 %v2874_v0, 0.0  ;;  %v2154_v52 = vpop.permute.xlu2 %2153 }
 0x24b   : > { %2633 = vmatmul.bf16.gmra.mxu1 %v2268_v28  ;;  %v2933_v36 = vpack.c.bf16 %v2906_v29, %v2905_v21  ;;  %v2773_v47 = vadd.f32 %v2772_v16, %v2684_v34  ;;  %v2779_v16 = vpop.f32.mrf.mxu0 }
 0x24c   : > { %v2685_v17 = vpop.f32.mrf.mxu2  ;;  %v2070_v58 = vpop.permute.xlu0 %2069 }
 0x24d   : > { %3667 = vmatmul.msk.bf16.gmra.mxu3 %vm2161_vm11, %v2933_v36  ;;  %v2840_v18 = vmul.f32 %v5343_v41, %v2773_v47  ;;  %v2323_v35 = vsel %vm2161_vm11, %v5296_v11, %v2070_v58 }
 0x24e   : > { %v2105_v30 = vpop.permute.xlu1 %2104 }
 0x24f   : > { %v2353_v46 = vsel %vm2194_vm12, %v2320_v20, %v2105_v30  ;;  %v2875_v59 = vadd.f32 %v5352_v51, %v2840_v18 }
 0x250   : > { %v2596_v57 = vpop.f32.mrf.mxu1  ;;  %v2399_v38 = vsel %vm2227_vm13, %v2353_v46, %v2152_v5  ;;  %v5450_v55 = vpop.f32.mrf.mxu3 }
 0x251   : > { %v2686_v43 = vadd.f32 %v2685_v17, %v2596_v57  ;;  %2727 = vmatmul.bf16.gmra.mxu2 %v2399_v38  ;;  %v2907_v54 = vmax.f32 %v2875_v59, 0.0  ;;  %v2017_v34 = vpop.permute.xlu2 %2016 }
 0x253   : > { %v2775_v40 = vadd.f32 %v2774_v13, %v2686_v43  ;;  %v2782_v39 = vpop.f32.mrf.mxu0 }
 0x254   : > { %v2688_v49 = vpop.f32.mrf.mxu2  ;;  %v1851_v53 = vpop.permute.xlu0 %1850 }
 0x255   : > { %v2841_v27 = vmul.f32 %v5343_v41, %v2775_v40  ;;  %v2193_v11 = vsel %vm2161_vm11, %v5127_v50, %v1851_v53 }
 0x256   : > { %v1978_v2 = vpop.permute.xlu1 %1977 }
 0x257   : > { %v2876_v24 = vadd.f32 %v5352_v51, %v2841_v27  ;;  %v2224_v6 = vsel %vm2194_vm12, %v2191_v10, %v1978_v2 }
 0x258   : > { %v2599_v44 = vpop.f32.mrf.mxu1  ;;  %v2271_v3 = vsel %vm2227_vm13, %v2224_v6, %v2015_v12  ;;  %v5459_v20 = vpop.f32.mrf.mxu3 }
 0x259   : > { %v2689_v19 = vadd.f32 %v2688_v49, %v2599_v44  ;;  %v2908_v8 = vmax.f32 %v2876_v24, 0.0 }
 0x25b   : > { %2638 = vmatmul.bf16.gmra.mxu1 %v2271_v3  ;;  %v2934_v22 = vpack.c.bf16 %v2908_v8, %v2907_v54  ;;  %v2778_v32 = vadd.f32 %v2777_v26, %v2689_v19  ;;  %v2784_v29 = vpop.f32.mrf.mxu0 }
 0x25c   : > { %v2690_v33 = vpop.f32.mrf.mxu2 }
 0x25d   : > { %3668 = vmatmul.msk.bf16.gmra.mxu3 %vm2161_vm11, %v2934_v22  ;;  %v2842_v45 = vmul.f32 %v5343_v41, %v2778_v32 }
 0x25e   : > { %v2107_v13 = vpop.permute.xlu1 %2106 }
 0x25f   : > { %v2355_v63 = vsel %vm2194_vm12, %v2323_v35, %v2107_v13  ;;  %v2877_v23 = vadd.f32 %v5352_v51, %v2842_v45 }
 0x260   : > { %v2601_v1 = vpop.f32.mrf.mxu1  ;;  %v2402_v25 = vsel %vm2227_vm13, %v2355_v63, %v2154_v52 }
 0x261   : > { %v2691_v9 = vadd.f32 %v2690_v33, %v2601_v1  ;;  %2732 = vmatmul.bf16.gmra.mxu2 %v2402_v25  ;;  %v2909_v5 = vmax.f32 %v2877_v23, 0.0  ;;  %v5481_v23 = vld [vmem:[%s5684_s8] ss:$0 sm:$0xff] }
 0x263   : > { %v2780_v61 = vadd.f32 %v2779_v16, %v2691_v9  ;;  %v2787_v18 = vpop.f32.mrf.mxu0  ;;  %v5465_v16 = vpop.f32.mrf.mxu3 }
 0x264   : > { %v2693_v0 = vpop.f32.mrf.mxu2 }
 0x265   : > { %v2843_v62 = vmul.f32 %v5343_v41, %v2780_v61 }
 0x266   : > { %v1980_v14 = vpop.permute.xlu1 %1979 }
 0x267   : > { %v2878_v31 = vadd.f32 %v5352_v51, %v2843_v62  ;;  %v2226_v28 = vsel %vm2194_vm12, %v2193_v11, %v1980_v14 }
 0x268   : > { %v2604_v21 = vpop.f32.mrf.mxu1  ;;  %v2274_v47 = vsel %vm2227_vm13, %v2226_v28, %v2017_v34 }
 0x269   : > { %v2910_v26 = vmax.f32 %v2878_v31, 0.0  ;;  %v2694_v36 = vadd.f32 %v2693_v0, %v2604_v21  ;;  %v5488_v21 = vld [vmem:[%s5685_s9] ss:$0 sm:$0xff] }
 0x26b   : > { %2643 = vmatmul.bf16.gmra.mxu1 %v2274_v47  ;;  %v2935_v17 = vpack.c.bf16 %v2910_v26, %v2909_v5  ;;  %v2783_v30 = vadd.f32 %v2782_v39, %v2694_v36  ;;  %v2789_v6 = vpop.f32.mrf.mxu0  ;;  %v5469_v3 = vpop.f32.mrf.mxu3 }
 0x26c   : > { %v2695_v60 = vpop.f32.mrf.mxu2 }
 0x26d   : > { %3669 = vmatmul.msk.bf16.gmra.mxu3 %vm2161_vm11, %v2935_v17  ;;  %v2844_v46 = vmul.f32 %v5343_v41, %v2783_v30 }
 0x26f   : > { %v2879_v38 = vadd.f32 %v5352_v51, %v2844_v46 }
 0x270   : > { %v2606_v50 = vpop.f32.mrf.mxu1 }
 0x271   : > { %v2696_v57 = vadd.f32 %v2695_v60, %v2606_v50  ;;  %v2911_v59 = vmax.f32 %v2879_v38, 0.0 }
 0x273   : > { %v2785_v43 = vadd.f32 %v2784_v29, %v2696_v57  ;;  %v2792_v39 = vpop.f32.mrf.mxu0  ;;  %v5475_v13 = vpop.f32.mrf.mxu3  ;;  %v3767_v29 = vld [vmem:[%s4358_s23] sm:$0xff]  }
 0x274   : > { %v2698_v12 = vpop.f32.mrf.mxu2  ;;  %v3768_v30 = vunpack.c.l.bf16 %v3767_v29  ;;  %v3769_v46 = vunpack.c.h.bf16 %v3767_v29 }
 0x275   : > { %v2845_v40 = vmul.f32 %v5343_v41, %v2785_v43 }
 0x277   : > { %v2880_v27 = vadd.f32 %v5352_v51, %v2845_v40 }
 0x278   : > { %v2609_v49 = vpop.f32.mrf.mxu1 }
 0x279   : > { %v2912_v10 = vmax.f32 %v2880_v27, 0.0  ;;  %v2699_v2 = vadd.f32 %v2698_v12, %v2609_v49 }
 0x27b   : > { %v2936_v24 = vpack.c.bf16 %v2912_v10, %v2911_v59  ;;  %v2788_v44 = vadd.f32 %v2787_v18, %v2699_v2  ;;  %v2794_v14 = vpop.f32.mrf.mxu0 }
 0x27c   : > { %v2700_v19 = vpop.f32.mrf.mxu2 }
 0x27d   : > { %3670 = vmatmul.msk.bf16.gmra.mxu3 %vm2161_vm11, %v2936_v24  ;;  %v2846_v8 = vmul.f32 %v5343_v41, %v2788_v44 }
 0x27f   : > { %v2881_v32 = vadd.f32 %v5352_v51, %v2846_v8 }
 0x280   : > { %v2611_v54 = vpop.f32.mrf.mxu1 }
 0x281   : > { %v2701_v58 = vadd.f32 %v2700_v19, %v2611_v54  ;;  %v2913_v1 = vmax.f32 %v2881_v32, 0.0 }
 0x283   : > { %v2790_v22 = vadd.f32 %v2789_v6, %v2701_v58 }
 0x284   : > { %v2703_v52 = vpop.f32.mrf.mxu2 }
 0x285   : > { %v2847_v33 = vmul.f32 %v5343_v41, %v2790_v22  ;;  %v3945_v22 = vld [vmem:[%s4358_s23 + $0x8] sm:$0xff]  }
 0x287   : > { %v2882_v35 = vadd.f32 %v5352_v51, %v2847_v33 }
 0x288   : > { %v2614_v63 = vpop.f32.mrf.mxu1 }
 0x289   : > { %v2914_v45 = vmax.f32 %v2882_v35, 0.0  ;;  %v2704_v9 = vadd.f32 %v2703_v52, %v2614_v63  ;;  %v3772_v63 = vunpack.c.l.bf16 %v3945_v22 }
 0x28b   : > { %v2937_v25 = vpack.c.bf16 %v2914_v45, %v2913_v1  ;;  %v2793_v61 = vadd.f32 %v2792_v39, %v2704_v9  ;;  %v3773_v9 = vunpack.c.h.bf16 %v3945_v22 }
 0x28c   : > { %v2705_v53 = vpop.f32.mrf.mxu2 }
 0x28d   : > { %3671 = vmatmul.msk.bf16.gmra.mxu3 %vm2161_vm11, %v2937_v25  ;;  %v2848_v11 = vmul.f32 %v5343_v41, %v2793_v61 }
 0x28f   : > { %v2883_v5 = vadd.f32 %v5352_v51, %v2848_v11 }
 0x290   : > { %v2616_v62 = vpop.f32.mrf.mxu1  ;;  %v3014_v0 = vpop.f32.mrf.mxu3 }
 0x291   : > { %v2706_v31 = vadd.f32 %v2705_v53, %v2616_v62  ;;  %v3097_v28 = vmul.f32 %v5481_v23, %v3014_v0  ;;  %v2915_v57 = vmax.f32 %v2883_v5, 0.0 }
 0x293   : > { %v2795_v34 = vadd.f32 %v2794_v14, %v2706_v31  ;;  %v3132_v17 = vadd.f32 %v5488_v21, %v3097_v28 }
 0x294   : > { %v2708_v36 = vpop.f32.mrf.mxu2 }
 0x295   : > { %v2849_v26 = vmul.f32 %v5343_v41, %v2795_v34  ;;  %v3228_v40 = vadd.f32 %v3768_v30, %v3132_v17 }
 0x297   : > { %v2884_v47 = vadd.f32 %v5352_v51, %v2849_v26  ;;  %v3260_v2 = vmax.f32 %v3228_v40, 0.0 }
 0x298   : > { %v2619_v60 = vpop.f32.mrf.mxu1  ;;  %v3016_v50 = vpop.f32.mrf.mxu3 }
 0x299   : > { %v2916_v18 = vmax.f32 %v2884_v47, 0.0  ;;  %v2709_v43 = vadd.f32 %v2708_v36, %v2619_v60  ;;  %v3098_v38 = vmul.f32 %v5481_v23, %v3016_v50  ;;  %v3946_v50 = vld [vmem:[%s4358_s23 + $0x10] sm:$0xff]  }
 0x29b   : > { %v3133_v12 = vadd.f32 %v5488_v21, %v3098_v38  ;;  %v2938_v27 = vpack.c.bf16 %v2916_v18, %v2915_v57  ;;  %v2798_v49 = vadd.f32 %v5381_v15, %v2709_v43  ;;  %v3776_v38 = vunpack.c.l.bf16 %v3946_v50 }
 0x29c   : > { %v2710_v10 = vpop.f32.mrf.mxu2 }
 0x29d   : > { %v3229_v59 = vadd.f32 %v3769_v46, %v3133_v12  ;;  %3672 = vmatmul.msk.bf16.gmra.mxu3 %vm2161_vm11, %v2938_v27  ;;  %v2850_v19 = vmul.f32 %v5343_v41, %v2798_v49  ;;  %v3777_v27 = vunpack.c.h.bf16 %v3946_v50 }
 0x29f   : > { %v3261_v24 = vmax.f32 %v3229_v59, 0.0  ;;  %v2885_v32 = vadd.f32 %v5352_v51, %v2850_v19 }
 0x2a0   : > { %v2621_v6 = vpop.f32.mrf.mxu1  ;;  %v3019_v44 = vpop.f32.mrf.mxu3 }
 0x2a1   : > { %v3833_v54 = vpack.c.bf16 %v3261_v24, %v3260_v2  ;;  %v2711_v8 = vadd.f32 %v2710_v10, %v2621_v6  ;;  %v3099_v15 = vmul.f32 %v5481_v23, %v3019_v44  ;;  %v2917_v25 = vmax.f32 %v2885_v32, 0.0 }
 0x2a3   : > { %3834 = vst [vmem:[%s5502_s11] sm:$0xff] %v3833_v54   ;;  %v2800_v58 = vadd.f32 %v5393_v56, %v2711_v8  ;;  %v3134_v35 = vadd.f32 %v5488_v21, %v3099_v15 }
 0x2a4   : > { %v2713_v52 = vpop.f32.mrf.mxu2 }
 0x2a5   : > { %v2851_v33 = vmul.f32 %v5343_v41, %v2800_v58  ;;  %v3230_v62 = vadd.f32 %v3772_v63, %v3134_v35  ;;  %v3947_v63 = vld [vmem:[%s4358_s23 + $0x18] sm:$0xff]  }
 0x2a7   : > { %v2886_v39 = vadd.f32 %v5352_v51, %v2851_v33  ;;  %v3262_v28 = vmax.f32 %v3230_v62, 0.0  ;;  %v3781_v62 = vunpack.c.h.bf16 %v3947_v63 }
 0x2a8   : > { %v2624_v1 = vpop.f32.mrf.mxu1  ;;  %v3021_v45 = vpop.f32.mrf.mxu3 }
 0x2a9   : > { %v2918_v61 = vmax.f32 %v2886_v39, 0.0  ;;  %v2714_v53 = vadd.f32 %v2713_v52, %v2624_v1  ;;  %v3100_v56 = vmul.f32 %v5481_v23, %v3021_v45 }
 0x2ab   : > { %v3135_v0 = vadd.f32 %v5488_v21, %v3100_v56  ;;  %v2939_v11 = vpack.c.bf16 %v2918_v61, %v2917_v25  ;;  %v2803_v31 = vadd.f32 %v5401_v7, %v2714_v53  ;;  %v3780_v61 = vunpack.c.l.bf16 %v3947_v63 }
 0x2ac   : > { %v2715_v34 = vpop.f32.mrf.mxu2 }
 0x2ad   : > { %v3231_v14 = vadd.f32 %v3773_v9, %v3135_v0  ;;  %3673 = vmatmul.msk.bf16.gmra.mxu3 %vm2161_vm11, %v2939_v11  ;;  %v2852_v36 = vmul.f32 %v5343_v41, %v2803_v31 }
 0x2af   : > { %v3263_v29 = vmax.f32 %v3231_v14, 0.0  ;;  %v2887_v7 = vadd.f32 %v5352_v51, %v2852_v36 }
 0x2b0   : > { %v2626_v5 = vpop.f32.mrf.mxu1  ;;  %v3024_v26 = vpop.f32.mrf.mxu3 }
 0x2b1   : > { %v3838_v47 = vpack.c.bf16 %v3263_v29, %v3262_v28  ;;  %v2716_v17 = vadd.f32 %v2715_v34, %v2626_v5  ;;  %v3101_v60 = vmul.f32 %v5481_v23, %v3024_v26  ;;  %v2919_v49 = vmax.f32 %v2887_v7, 0.0 }
 0x2b3   : > { %3960 = vst [vmem:[%s5502_s11 + $0x8] sm:$0xff] %v3838_v47   ;;  %v2805_v30 = vadd.f32 %v5411_v4, %v2716_v17  ;;  %v3136_v43 = vadd.f32 %v5488_v21, %v3101_v60 }
 0x2b4   : > { %v2718_v57 = vpop.f32.mrf.mxu2 }
 0x2b5   : > { %v2853_v46 = vmul.f32 %v5343_v41, %v2805_v30  ;;  %v3232_v2 = vadd.f32 %v3776_v38, %v3136_v43 }
 0x2b7   : > { %v2888_v18 = vadd.f32 %v5352_v51, %v2853_v46  ;;  %v3264_v8 = vmax.f32 %v3232_v2, 0.0 }
 0x2b8   : > { %v2629_v40 = vpop.f32.mrf.mxu1  ;;  %v3026_v12 = vpop.f32.mrf.mxu3 }
 0x2b9   : > { %v2920_v59 = vmax.f32 %v2888_v18, 0.0  ;;  %v2719_v10 = vadd.f32 %v2718_v57, %v2629_v40  ;;  %v3102_v4 = vmul.f32 %v5481_v23, %v3026_v12  ;;  %v3948_v18 = vld [vmem:[%s4358_s23 + $0x20] sm:$0xff]  }
 0x2bb   : > { %v3137_v24 = vadd.f32 %v5488_v21, %v3102_v4  ;;  %v2940_v6 = vpack.c.bf16 %v2920_v59, %v2919_v49  ;;  %v2808_v44 = vadd.f32 %v5423_v48, %v2719_v10  ;;  %v3785_v10 = vunpack.c.h.bf16 %v3948_v18 }
 0x2bc   : > { %v2720_v54 = vpop.f32.mrf.mxu2 }
 0x2bd   : > { %v3233_v19 = vadd.f32 %v3777_v27, %v3137_v24  ;;  %3674 = vmatmul.msk.bf16.gmra.mxu3 %vm2161_vm11, %v2940_v6  ;;  %v2854_v32 = vmul.f32 %v5343_v41, %v2808_v44  ;;  %v3784_v27 = vunpack.c.l.bf16 %v3948_v18  ;;  %v3950_v18 = vld [vmem:[%s4358_s23 + $0x30] sm:$0xff]  }
 0x2bf   : > { %v3265_v58 = vmax.f32 %v3233_v19, 0.0  ;;  %v2889_v48 = vadd.f32 %v5352_v51, %v2854_v32 }
 0x2c0   : > { %v2631_v15 = vpop.f32.mrf.mxu1  ;;  %v3029_v22 = vpop.f32.mrf.mxu3 }
 0x2c1   : > { %v3843_v33 = vpack.c.bf16 %v3265_v58, %v3264_v8  ;;  %v2721_v52 = vadd.f32 %v2720_v54, %v2631_v15  ;;  %v3103_v35 = vmul.f32 %v5481_v23, %v3029_v22  ;;  %v2921_v0 = vmax.f32 %v2889_v48, 0.0 }
 0x2c3   : > { %3961 = vst [vmem:[%s5502_s11 + $0x10] sm:$0xff] %v3843_v33   ;;  %v2810_v39 = vadd.f32 %v5433_v37, %v2721_v52  ;;  %v3138_v25 = vadd.f32 %v5488_v21, %v3103_v35 }
 0x2c4   : > { %v2723_v45 = vpop.f32.mrf.mxu2 }
 0x2c5   : > { %v2855_v1 = vmul.f32 %v5343_v41, %v2810_v39  ;;  %v3234_v14 = vadd.f32 %v3780_v61, %v3138_v25 }
 0x2c7   : > { %v2890_v9 = vadd.f32 %v5352_v51, %v2855_v1  ;;  %v3266_v36 = vmax.f32 %v3234_v14, 0.0  ;;  %v3949_v1 = vld [vmem:[%s4358_s23 + $0x28] sm:$0xff]  }
 0x2c8   : > { %v2634_v53 = vpop.f32.mrf.mxu1  ;;  %v3031_v56 = vpop.f32.mrf.mxu3 }
 0x2c9   : > { %v2922_v11 = vmax.f32 %v2890_v9, 0.0  ;;  %v2724_v31 = vadd.f32 %v2723_v45, %v2634_v53  ;;  %v3104_v37 = vmul.f32 %v5481_v23, %v3031_v56  ;;  %v3788_v53 = vunpack.c.l.bf16 %v3949_v1 }
 0x2cb   : > { %v3139_v34 = vadd.f32 %v5488_v21, %v3104_v37  ;;  %v2941_v28 = vpack.c.bf16 %v2922_v11, %v2921_v0  ;;  %v2813_v29 = vadd.f32 %v5442_v42, %v2724_v31  ;;  %v3789_v0 = vunpack.c.h.bf16 %v3949_v1 }
 0x2cc   : > { %v2725_v26 = vpop.f32.mrf.mxu2 }
 0x2cd   : > { %v3235_v5 = vadd.f32 %v3781_v62, %v3139_v34  ;;  %3675 = vmatmul.msk.bf16.gmra.mxu3 %vm2161_vm11, %v2941_v28  ;;  %v2856_v60 = vmul.f32 %v5343_v41, %v2813_v29 }
 0x2cf   : > { %v3267_v47 = vmax.f32 %v3235_v5, 0.0  ;;  %v2891_v42 = vadd.f32 %v5352_v51, %v2856_v60 }
 0x2d0   : > { %v2636_v17 = vpop.f32.mrf.mxu1  ;;  %v3034_v30 = vpop.f32.mrf.mxu3 }
 0x2d1   : > { %v3848_v50 = vpack.c.bf16 %v3267_v47, %v3266_v36  ;;  %v2726_v7 = vadd.f32 %v2725_v26, %v2636_v17  ;;  %v3105_v57 = vmul.f32 %v5481_v23, %v3034_v30  ;;  %v2923_v4 = vmax.f32 %v2891_v42, 0.0 }
 0x2d3   : > { %3962 = vst [vmem:[%s5502_s11 + $0x18] sm:$0xff] %v3848_v50   ;;  %v2815_v46 = vadd.f32 %v5450_v55, %v2726_v7  ;;  %v3140_v12 = vadd.f32 %v5488_v21, %v3105_v57 }
 0x2d4   : > { %v2728_v38 = vpop.f32.mrf.mxu2 }
 0x2d5   : > { %v2857_v43 = vmul.f32 %v5343_v41, %v2815_v46  ;;  %v3236_v6 = vadd.f32 %v3784_v27, %v3140_v12 }
 0x2d7   : > { %v2892_v40 = vadd.f32 %v5352_v51, %v2857_v43  ;;  %v3268_v15 = vmax.f32 %v3236_v6, 0.0 }
 0x2d8   : > { %v2639_v49 = vpop.f32.mrf.mxu1  ;;  %v3036_v59 = vpop.f32.mrf.mxu3 }
 0x2d9   : > { %v2924_v2 = vmax.f32 %v2892_v40, 0.0  ;;  %v2729_v24 = vadd.f32 %v2728_v38, %v2639_v49  ;;  %v3106_v55 = vmul.f32 %v5481_v23, %v3036_v59  ;;  %v3792_v40 = vunpack.c.l.bf16 %v3950_v18 }
 0x2db   : > { %v3141_v44 = vadd.f32 %v5488_v21, %v3106_v55  ;;  %v2942_v19 = vpack.c.bf16 %v2924_v2, %v2923_v4  ;;  %v2818_v54 = vadd.f32 %v5459_v20, %v2729_v24 }
 0x2dc   : > { %v2730_v58 = vpop.f32.mrf.mxu2 }
 0x2dd   : > { %v3237_v8 = vadd.f32 %v3785_v10, %v3141_v44  ;;  %3676 = vmatmul.msk.bf16.gmra.mxu3 %vm2161_vm11, %v2942_v19  ;;  %v2858_v52 = vmul.f32 %v5343_v41, %v2818_v54  ;;  %v3951_v19 = vld [vmem:[%s4358_s23 + $0x38] sm:$0xff]  }
 0x2df   : > { %v3269_v22 = vmax.f32 %v3237_v8, 0.0  ;;  %v2893_v20 = vadd.f32 %v5352_v51, %v2858_v52  ;;  %v3796_v8 = vunpack.c.l.bf16 %v3951_v19 }
 0x2e0   : > { %v2641_v32 = vpop.f32.mrf.mxu1  ;;  %v3039_v33 = vpop.f32.mrf.mxu3 }
 0x2e1   : > { %v3853_v39 = vpack.c.bf16 %v3269_v22, %v3268_v15  ;;  %v2731_v35 = vadd.f32 %v2730_v58, %v2641_v32  ;;  %v3107_v48 = vmul.f32 %v5481_v23, %v3039_v33  ;;  %v2925_v11 = vmax.f32 %v2893_v20, 0.0  ;;  %v3952_v20 = vld [vmem:[%s4358_s23 + $0x40] sm:$0xff]  }
 0x2e2   : > { %v3797_v22 = vunpack.c.h.bf16 %v3951_v19 }
 0x2e3   : > { %3963 = vst [vmem:[%s5502_s11 + $0x20] sm:$0xff] %v3853_v39   ;;  %v2820_v63 = vadd.f32 %v5465_v16, %v2731_v35  ;;  %v3142_v61 = vadd.f32 %v5488_v21, %v3107_v48 }
 0x2e4   : > { %v2733_v9 = vpop.f32.mrf.mxu2 }
 0x2e5   : > { %v2859_v45 = vmul.f32 %v5343_v41, %v2820_v63  ;;  %v3238_v14 = vadd.f32 %v3788_v53, %v3142_v61  ;;  %v3801_v53 = vunpack.c.h.bf16 %v3952_v20 }
 0x2e7   : > { %v2894_v25 = vadd.f32 %v5352_v51, %v2859_v45  ;;  %v3270_v26 = vmax.f32 %v3238_v14, 0.0 }
 0x2e8   : > { %v2644_v56 = vpop.f32.mrf.mxu1  ;;  %v3041_v62 = vpop.f32.mrf.mxu3 }
 0x2e9   : > { %v2926_v31 = vmax.f32 %v2894_v25, 0.0  ;;  %v2734_v37 = vadd.f32 %v2733_v9, %v2644_v56  ;;  %v3108_v16 = vmul.f32 %v5481_v23, %v3041_v62  ;;  %v3800_v9 = vunpack.c.l.bf16 %v3952_v20 }
 0x2eb   : > { %v3143_v34 = vadd.f32 %v5488_v21, %v3108_v16  ;;  %v2943_v28 = vpack.c.bf16 %v2926_v31, %v2925_v11  ;;  %v2823_v29 = vadd.f32 %v5469_v3, %v2734_v37 }
 0x2ec   : > { %v2735_v47 = vpop.f32.mrf.mxu2 }
 0x2ed   : > { %v3239_v5 = vadd.f32 %v3789_v0, %v3143_v34  ;;  %3677 = vmatmul.msk.bf16.gmra.mxu3 %vm2161_vm11, %v2943_v28  ;;  %v2860_v60 = vmul.f32 %v5343_v41, %v2823_v29  ;;  %v3953_v34 = vld [vmem:[%s4358_s23 + $0x48] sm:$0xff]  }
 0x2ee   : > { %v3804_v29 = vunpack.c.l.bf16 %v3953_v34 }
 0x2ef   : > { %v3271_v36 = vmax.f32 %v3239_v5, 0.0  ;;  %v2895_v3 = vadd.f32 %v5352_v51, %v2860_v60 }
 0x2f0   : > { %v2646_v17 = vpop.f32.mrf.mxu1  ;;  %v3044_v30 = vpop.f32.mrf.mxu3 }
 0x2f1   : > { %v3858_v50 = vpack.c.bf16 %v3271_v36, %v3270_v26  ;;  %v2736_v7 = vadd.f32 %v2735_v47, %v2646_v17  ;;  %v3109_v57 = vmul.f32 %v5481_v23, %v3044_v30  ;;  %v2927_v27 = vmax.f32 %v2895_v3, 0.0 }
 0x2f2   : > { %v3805_v36 = vunpack.c.h.bf16 %v3953_v34 }
 0x2f3   : > { %3964 = vst [vmem:[%s5502_s11 + $0x28] sm:$0xff] %v3858_v50   ;;  %v2825_v46 = vadd.f32 %v5475_v13, %v2736_v7  ;;  %v3144_v38 = vadd.f32 %v5488_v21, %v3109_v57  ;;  %v3793_v13 = vunpack.c.h.bf16 %v3950_v18  ;;  %v3954_v18 = vld [vmem:[%s4358_s23 + $0x50] sm:$0xff]  }
 0x2f5   : > { %v2861_v42 = vmul.f32 %v5343_v41, %v2825_v46  ;;  %v3240_v10 = vadd.f32 %v3792_v40, %v3144_v38  ;;  %v3809_v40 = vunpack.c.h.bf16 %v3954_v18 }
 0x2f7   : > { %v2896_v43 = vadd.f32 %v5352_v51, %v2861_v42  ;;  %v3272_v41 = vmax.f32 %v3240_v10, 0.0  ;;  %v3808_v42 = vunpack.c.l.bf16 %v3954_v18 }
 0x2f8   : > { %v3046_v12 = vpop.f32.mrf.mxu3 }
 0x2f9   : > { %v2928_v49 = vmax.f32 %v2896_v43, 0.0  ;;  %v3110_v59 = vmul.f32 %v5481_v23, %v3046_v12 }
 0x2fb   : > { %v3145_v4 = vadd.f32 %v5488_v21, %v3110_v59  ;;  %v2944_v2 = vpack.c.bf16 %v2928_v49, %v2927_v27 }
 0x2fd   : > { %v3241_v24 = vadd.f32 %v3793_v13, %v3145_v4  ;;  %3678 = vmatmul.msk.bf16.gmra.mxu3 %vm2161_vm11, %v2944_v2 }
 0x2ff   : > { %v3273_v51 = vmax.f32 %v3241_v24, 0.0  ;;  %v3955_v24 = vld [vmem:[%s4358_s23 + $0x58] sm:$0xff]  }
 0x300   : > { %v3049_v55 = vpop.f32.mrf.mxu3 }
 0x301   : > { %v3863_v6 = vpack.c.bf16 %v3273_v51, %v3272_v41  ;;  %v3111_v44 = vmul.f32 %v5481_v23, %v3049_v55  ;;  %v3812_v51 = vunpack.c.l.bf16 %v3955_v24 }
 0x303   : > { %3965 = vst [vmem:[%s5502_s11 + $0x30] sm:$0xff] %v3863_v6   ;;  %v3146_v54 = vadd.f32 %v5488_v21, %v3111_v44  ;;  %v3813_v44 = vunpack.c.h.bf16 %v3955_v24 }
 0x305   : > { %v3242_v32 = vadd.f32 %v3796_v8, %v3146_v54 }
 0x307   : > { %v3274_v39 = vmax.f32 %v3242_v32, 0.0 }
 0x308   : > { %v3051_v58 = vpop.f32.mrf.mxu3 }
 0x309   : > { %v3112_v15 = vmul.f32 %v5481_v23, %v3051_v58 }
 0x30b   : > { %v3147_v33 = vadd.f32 %v5488_v21, %v3112_v15 }
 0x30d   : > { %v3243_v52 = vadd.f32 %v3797_v22, %v3147_v33 }
 0x30f   : > { %v3275_v35 = vmax.f32 %v3243_v52, 0.0  ;;  %v3956_v52 = vld [vmem:[%s4358_s23 + $0x60] sm:$0xff]  }
 0x310   : > { %v3054_v63 = vpop.f32.mrf.mxu3 }
 0x311   : > { %v3868_v48 = vpack.c.bf16 %v3275_v35, %v3274_v39  ;;  %v3113_v1 = vmul.f32 %v5481_v23, %v3054_v63  ;;  %v3816_v35 = vunpack.c.l.bf16 %v3956_v52 }
 0x313   : > { %3966 = vst [vmem:[%s5502_s11 + $0x38] sm:$0xff] %v3868_v48   ;;  %v3148_v45 = vadd.f32 %v5488_v21, %v3113_v1  ;;  %v3817_v1 = vunpack.c.h.bf16 %v3956_v52 }
 0x315   : > { %v3244_v56 = vadd.f32 %v3800_v9, %v3148_v45 }
 0x317   : > { %v3276_v11 = vmax.f32 %v3244_v56, 0.0 }
 0x318   : > { %v3056_v25 = vpop.f32.mrf.mxu3 }
 0x319   : > { %v3114_v61 = vmul.f32 %v5481_v23, %v3056_v25 }
 0x31b   : > { %v3149_v62 = vadd.f32 %v5488_v21, %v3114_v61 }
 0x31d   : > { %v3245_v0 = vadd.f32 %v3801_v53, %v3149_v62 }
 0x31f   : > { %v3277_v31 = vmax.f32 %v3245_v0, 0.0  ;;  %v3957_v0 = vld [vmem:[%s4358_s23 + $0x68] sm:$0xff]  }
 0x320   : > { %v3059_v37 = vpop.f32.mrf.mxu3 }
 0x321   : > { %v3873_v16 = vpack.c.bf16 %v3277_v31, %v3276_v11  ;;  %v3115_v14 = vmul.f32 %v5481_v23, %v3059_v37  ;;  %v3820_v31 = vunpack.c.l.bf16 %v3957_v0 }
 0x323   : > { %3967 = vst [vmem:[%s5502_s11 + $0x40] sm:$0xff] %v3873_v16   ;;  %v3150_v28 = vadd.f32 %v5488_v21, %v3115_v14  ;;  %v3821_v14 = vunpack.c.h.bf16 %v3957_v0 }
 0x325   : > { %v3246_v47 = vadd.f32 %v3804_v29, %v3150_v28 }
 0x327   : > { %v3278_v60 = vmax.f32 %v3246_v47, 0.0 }
 0x328   : > { %v3061_v5 = vpop.f32.mrf.mxu3 }
 0x329   : > { %v3116_v26 = vmul.f32 %v5481_v23, %v3061_v5 }
 0x32b   : > { %v3151_v17 = vadd.f32 %v5488_v21, %v3116_v26 }
 0x32d   : > { %v3247_v30 = vadd.f32 %v3805_v36, %v3151_v17 }
 0x32f   : > { %v3279_v50 = vmax.f32 %v3247_v30, 0.0  ;;  %v3958_v30 = vld [vmem:[%s4358_s23 + $0x70] sm:$0xff]  }
 0x330   : > { %v3064_v7 = vpop.f32.mrf.mxu3 }
 0x331   : > { %v3878_v46 = vpack.c.bf16 %v3279_v50, %v3278_v60  ;;  %v3117_v57 = vmul.f32 %v5481_v23, %v3064_v7  ;;  %v3824_v50 = vunpack.c.l.bf16 %v3958_v30 }
 0x333   : > { %3968 = vst [vmem:[%s5502_s11 + $0x48] sm:$0xff] %v3878_v46   ;;  %v3152_v3 = vadd.f32 %v5488_v21, %v3117_v57  ;;  %v3825_v57 = vunpack.c.h.bf16 %v3958_v30 }
 0x335   : > { %v3248_v12 = vadd.f32 %v3808_v42, %v3152_v3 }
 0x337   : > { %v3280_v59 = vmax.f32 %v3248_v12, 0.0 }
 0x338   : > { %v3066_v43 = vpop.f32.mrf.mxu3 }
 0x339   : > { %v3118_v38 = vmul.f32 %v5481_v23, %v3066_v43 }
 0x33b   : > { %v3153_v27 = vadd.f32 %v5488_v21, %v3118_v38 }
 0x33d   : > { %v3249_v49 = vadd.f32 %v3809_v40, %v3153_v27 }
 0x33f   : > { %v3281_v13 = vmax.f32 %v3249_v49, 0.0  ;;  %v3959_v49 = vld [vmem:[%s4358_s23 + $0x78] sm:$0xff]   ;;  %s3372_s23 = sshll.u32 %s5502_s11, 4  ;;  %s3373_s23 = int_to_ptr.vmem [resolvable:$true] %s3372_s23 }
 0x340   : > { %v3069_v10 = vpop.f32.mrf.mxu3 }
 0x341   : > { %v3883_v4 = vpack.c.bf16 %v3281_v13, %v3280_v59  ;;  %v3119_v2 = vmul.f32 %v5481_v23, %v3069_v10  ;;  %v3828_v13 = vunpack.c.l.bf16 %v3959_v49 }
 0x343   : > { %3969 = vst [vmem:[%s5502_s11 + $0x50] sm:$0xff] %v3883_v4   ;;  %v3154_v41 = vadd.f32 %v5488_v21, %v3119_v2  ;;  %v3829_v2 = vunpack.c.h.bf16 %v3959_v49 }
 0x345   : > { %v3250_v19 = vadd.f32 %v3812_v51, %v3154_v41 }
 0x347   : > { %v3282_v58 = vmax.f32 %v3250_v19, 0.0 }
 0x348   : > { %v3071_v55 = vpop.f32.mrf.mxu3 }
 0x349   : > { %v3120_v6 = vmul.f32 %v5481_v23, %v3071_v55 }
 0x34b   : > { %v3155_v54 = vadd.f32 %v5488_v21, %v3120_v6 }
 0x34d   : > { %v3251_v8 = vadd.f32 %v3813_v44, %v3155_v54 }
 0x34f   : > { %v3283_v15 = vmax.f32 %v3251_v8, 0.0 }
 0x350   : > { %v3074_v22 = vpop.f32.mrf.mxu3 }
 0x351   : > { %v3888_v32 = vpack.c.bf16 %v3283_v15, %v3282_v58  ;;  %v3121_v33 = vmul.f32 %v5481_v23, %v3074_v22 }
 0x353   : > { %3970 = vst [vmem:[%s5502_s11 + $0x58] sm:$0xff] %v3888_v32   ;;  %v3156_v39 = vadd.f32 %v5488_v21, %v3121_v33 }
 0x355   : > { %v3252_v20 = vadd.f32 %v3816_v35, %v3156_v39 }
 0x357   : > { %v3284_v25 = vmax.f32 %v3252_v20, 0.0 }
 0x358   : > { %v3076_v63 = vpop.f32.mrf.mxu3 }
 0x359   : > { %v3122_v48 = vmul.f32 %v5481_v23, %v3076_v63 }
 0x35b   : > { %v3157_v45 = vadd.f32 %v5488_v21, %v3122_v48 }
 0x35d   : > { %v3253_v9 = vadd.f32 %v3817_v1, %v3157_v45 }
 0x35f   : > { %v3285_v61 = vmax.f32 %v3253_v9, 0.0 }
 0x360   : > { %v3079_v53 = vpop.f32.mrf.mxu3 }
 0x361   : > { %v3893_v56 = vpack.c.bf16 %v3285_v61, %v3284_v25  ;;  %v3123_v62 = vmul.f32 %v5481_v23, %v3079_v53 }
 0x363   : > { %3971 = vst [vmem:[%s5502_s11 + $0x60] sm:$0xff] %v3893_v56   ;;  %v3158_v11 = vadd.f32 %v5488_v21, %v3123_v62 }
 0x365   : > { %v3254_v34 = vadd.f32 %v3820_v31, %v3158_v11 }
 0x367   : > { %v3286_v5 = vmax.f32 %v3254_v34, 0.0 }
 0x368   : > { %v3081_v37 = vpop.f32.mrf.mxu3 }
 0x369   : > { %v3124_v16 = vmul.f32 %v5481_v23, %v3081_v37 }
 0x36b   : > { %v3159_v28 = vadd.f32 %v5488_v21, %v3124_v16 }
 0x36d   : > { %v3255_v29 = vadd.f32 %v3821_v14, %v3159_v28 }
 0x36f   : > { %v3287_v26 = vmax.f32 %v3255_v29, 0.0 }
 0x370   : > { %v3084_v36 = vpop.f32.mrf.mxu3 }
 0x371   : > { %v3898_v47 = vpack.c.bf16 %v3287_v26, %v3286_v5  ;;  %v3125_v17 = vmul.f32 %v5481_v23, %v3084_v36 }
 0x373   : > { %3972 = vst [vmem:[%s5502_s11 + $0x68] sm:$0xff] %v3898_v47   ;;  %v3160_v60 = vadd.f32 %v5488_v21, %v3125_v17 }
 0x375   : > { %v3256_v18 = vadd.f32 %v3824_v50, %v3160_v60 }
 0x377   : > { %v3288_v43 = vmax.f32 %v3256_v18, 0.0 }
 0x378   : > { %v3086_v7 = vpop.f32.mrf.mxu3 }
 0x379   : > { %v3126_v46 = vmul.f32 %v5481_v23, %v3086_v7 }
 0x37b   : > { %v3161_v3 = vadd.f32 %v5488_v21, %v3126_v46 }
 0x37d   : > { %v3257_v42 = vadd.f32 %v3825_v57, %v3161_v3 }
 0x37f   : > { %v3289_v38 = vmax.f32 %v3257_v42, 0.0 }
 0x380   : > { %v3089_v40 = vpop.f32.mrf.mxu3 }
 0x381   : > { %v3903_v12 = vpack.c.bf16 %v3289_v38, %v3288_v43  ;;  %v3127_v27 = vmul.f32 %v5481_v23, %v3089_v40 }
 0x383   : > { %3973 = vst [vmem:[%s5502_s11 + $0x70] sm:$0xff] %v3903_v12   ;;  %v3162_v59 = vadd.f32 %v5488_v21, %v3127_v27 }
 0x385   : > { %v3258_v24 = vadd.f32 %v3828_v13, %v3162_v59 }
 0x387   : > { %v3290_v55 = vmax.f32 %v3258_v24, 0.0 }
 0x388   : > { %v3091_v10 = vpop.f32.mrf.mxu3 }
 0x389   : > { %v3128_v4 = vmul.f32 %v5481_v23, %v3091_v10 }
 0x38b   : > { %v3163_v41 = vadd.f32 %v5488_v21, %v3128_v4 }
 0x38d   : > { %v3259_v51 = vadd.f32 %v3829_v2, %v3163_v41 }
 0x38f   : > { %v3291_v6 = vmax.f32 %v3259_v51, 0.0 }
 0x391   : > { %v3908_v44 = vpack.c.bf16 %v3291_v6, %v3290_v55 }
 0x393   : > { %3974 = vst [vmem:[%s5502_s11 + $0x78] sm:$0xff] %v3908_v44  }
 0x394   : > { %4141 = shalt.err (!%p4138_p13)
}
 0x395   : > { %s4222_s17 = smov 4  }
 0x396   : > { %3995 = dma.vmem_to_hbm [thread:$0]  (%p4329_p9), %s3373_s23, 2048, %s3375_s24, %s3357_s16, %s4219_s25, %s4219_s25, %s4222_s17  }
 0x397 PF: > { %s5710_s11 = sld [smem:[#allocation9_spill]]  ;;  %p4002_p0 = pnand %p3464_p12, %p4336_p11 }
 0x399   : > { %p4003_p1 = pneg %p4002_p0 }
 0x39d   : > { %s3389_s19 = sand.u32 1, %s5710_s11  }
 0x39e   : > { %s3390_s26 = scalar_lea.sflag [#allocation5], %s3389_s19 }
 0x39f   : > { %4171 = dma.done.wait (%p4003_p1), %s3390_s26, 2048  }
 0x3a0   : > { %4173 = vsyncadd (%p4003_p1), %s3390_s26, 4294965248  ;;  %s26_s18 = sadd.s32 1, %s4214_s18   ;;  %s5711_s27 = sld [smem:[#allocation13_spill]] }
 0x3a1   : > { %p23_p2 = scmp.ge.s32.totalorder %s26_s18, 4   ;;  %s5712_s16 = sld [smem:[#allocation10_spill]] }
 0x3a2   : > { %s5713_s17 = sld [smem:[#allocation11_spill]]  ;;  %s5714_s13 = smov %s4198_s14 }
 0x3a3   : > { %s5715_s14 = smov %s4202_s15  ;;  %25 = sbr.rel (!%p23_p2) target bundleno = 6 (0x6), region = 108 }
 0x3a6   : > { %s5716_s15 = smov %s5711_s27 }
 0x3a8   :  { %3396 = vsyncpa [#allocation4], 1 }
 0x3a9   :  { %3398 = vsyncpa [#allocation4 + $0x1], 1 }
 0x3aa   :  { %3399 = vsyncpa [#allocation5], 1 }
 0x3ab   :  { %3401 = vsyncpa [#allocation5 + $0x1], 1 }

</bundles_post_ra>
